<compile_context>
chip_gen: v7x
topology: tpu7x:2x2x1
jax: 0.10.0
libtpu: 0.0.40
codegen_flags: <defaults>
</compile_context>

<pallas_src>
import functools
import math

import jax
import jax.numpy as jnp
from jax.experimental import pallas as pl
from jax.experimental.pallas import tpu as pltpu

LN_EPS = 1e-5
_GELU_C = math.sqrt(2.0 / math.pi)


# ----------------------------------------------------------------------------
# Shared math helpers (used by both the kernel body and the JAX references).
# ----------------------------------------------------------------------------
def _gelu(v):
    return 0.5 * v * (1.0 + jnp.tanh(_GELU_C * (v + 0.044715 * v * v * v)))


def _ln_rows(v, g, b):
    """LayerNorm over the last axis.  g, b: (1, feat)."""
    mu = jnp.mean(v, axis=-1, keepdims=True)
    var = jnp.mean(jnp.square(v - mu), axis=-1, keepdims=True)
    return (v - mu) * jax.lax.rsqrt(var + LN_EPS) * g + b


def _ln_cols(v, g, b):
    """LayerNorm over axis 0 (transposed layout).  g, b: (feat, 1)."""
    mu = jnp.mean(v, axis=0, keepdims=True)
    var = jnp.mean(jnp.square(v - mu), axis=0, keepdims=True)
    return (v - mu) * jax.lax.rsqrt(var + LN_EPS) * g + b


def _fnet2d(v, cd, sd, cl_fused):
    """Re(fft(fft(v, -1), -2)) for v: (L, D) f32 via bf16 DFT matmuls.

    cd/sd: (D, D) bf16 cosine/sine DFT matrices; cl_fused: (L, 2L) bf16
    [C_L | -S_L].  f32 accumulation on the MXU."""
    vb = v.astype(jnp.bfloat16)
    vc = jnp.dot(vb, cd, preferred_element_type=jnp.float32)            # (L, D)
    vs = jnp.dot(vb, sd, preferred_element_type=jnp.float32)            # (L, D)
    stacked = jnp.concatenate([vc, vs], axis=0).astype(jnp.bfloat16)    # (2L, D)
    return jnp.dot(cl_fused, stacked, preferred_element_type=jnp.float32)


def _layer_math(xb, cb, c):
    """One decoder layer for a single batch element.

    xb: (Lx, D) f32, cb: (N, D) f32, c: dict of layer operands exactly as the
    kernel receives them (bf16 matmul operands, f32 LN params / biases).
    Returns (x_out (Lx, D), cross_out (N, D))."""
    # ---- x path: FNet mixing + residual -------------------------------------
    x1 = xb + _fnet2d(_ln_rows(xb, c["ln1_g"], c["ln1_b"]),
                      c["cd"], c["sd"], c["clx"])
    # ---- x path: pointwise FFN + residual -----------------------------------
    xn2 = _ln_rows(x1, c["ln2_g"], c["ln2_b"]).astype(jnp.bfloat16)
    h = _gelu(jnp.dot(xn2, c["w1"], preferred_element_type=jnp.float32) + c["b1"])
    x2 = x1 + (jnp.dot(h.astype(jnp.bfloat16), c["w2"],
                       preferred_element_type=jnp.float32) + c["b2"])

    # ---- cross path ----------------------------------------------------------
    cross_new = _fnet2d(_ln_rows(cb, c["ln3_g"], c["ln3_b"]),
                        c["cd"], c["sd"], c["cln"])                     # (N, D)
    # proj^T = P^T @ cross   (einsum 'bnd,nm->bdm', carried as (mlp, dim))
    projt = jnp.dot(c["pt"], cross_new.astype(jnp.bfloat16),
                    preferred_element_type=jnp.float32)                 # (M, D)
    projn = _ln_cols(projt, c["ln4_g"], c["ln4_b"]).astype(jnp.bfloat16)
    ch = _gelu(jnp.dot(c["cw1t"], projn,
                       preferred_element_type=jnp.float32) + c["cb1"])
    cz = jnp.dot(c["cw2t"], ch.astype(jnp.bfloat16),
                 preferred_element_type=jnp.float32) + c["cb2"]         # (M, D)
    # forc = einsum 'bdm,mf->bfd' = R^T @ proj^T
    forc = jnp.dot(c["rt"], cz.astype(jnp.bfloat16),
                   preferred_element_type=jnp.float32)                  # (Fl, D)

    # x = x + F.pad(forc, (0, 0, seq_len, 0))
    seq_len = xb.shape[0] - forc.shape[0]
    pad = jnp.zeros((seq_len, xb.shape[1]), x2.dtype)
    x_out = x2 + jnp.concatenate([pad, forc], axis=0)
    return x_out, cross_new


# ----------------------------------------------------------------------------
# Kernel
# ----------------------------------------------------------------------------
_OPERAND_NAMES = (
    "cd", "sd", "clx", "cln",
    "ln1_g", "ln1_b", "ln2_g", "ln2_b",
    "w1", "b1", "w2", "b2",
    "ln3_g", "ln3_b", "ln4_g", "ln4_b",
    "cw1t", "cb1", "cw2t", "cb2",
    "pt", "rt",
)


def _fnet_decoder_layer_kernel(x_ref, cr_ref, *rest):
    n = len(_OPERAND_NAMES)
    const_refs = rest[:n]
    xo_ref, cro_ref = rest[n:]
    c = {name: r[...] for name, r in zip(_OPERAND_NAMES, const_refs)}
    x_out, cross_out = _layer_math(x_ref[0], cr_ref[0], c)
    xo_ref[0] = x_out.astype(xo_ref.dtype)
    cro_ref[0] = cross_out.astype(cro_ref.dtype)


# ----------------------------------------------------------------------------
# Host-side operand preparation (hoisted out of the per-layer loop)
# ----------------------------------------------------------------------------
def _dft_mats(n):
    """C[k,t]=cos(2πkt/n), S[k,t]=sin(2πkt/n); k*t reduced mod n in int32 so
    the f32 angle stays exact for large n."""
    idx = jnp.arange(n, dtype=jnp.int32)
    km = (idx[:, None] * idx[None, :]) % n
    ang = (2.0 * jnp.pi / n) * km.astype(jnp.float32)
    return jnp.cos(ang), jnp.sin(ang)


def _prepare_operands(params, Lx, N, D):
    """DFT matrices + per-layer kernel operands (bf16 matmul inputs, f32 LN/bias)."""
    bf, f32 = jnp.bfloat16, jnp.float32
    M = params["proj"].shape[1]
    Fl = params["reproj"].shape[1]
    assert Lx == N + Fl, "x sequence length must equal seq_len + forc_len"

    cd_f, sd_f = _dft_mats(D)
    cl_f, sl_f = _dft_mats(Lx)
    cn_f, sn_f = _dft_mats(N)
    shared = dict(
        cd=cd_f.astype(bf), sd=sd_f.astype(bf),
        clx=jnp.concatenate([cl_f, -sl_f], axis=1).astype(bf),   # (Lx, 2Lx)
        cln=jnp.concatenate([cn_f, -sn_f], axis=1).astype(bf),   # (N, 2N)
        pt=params["proj"].T.astype(bf),                          # (M, N)
        rt=params["reproj"].T.astype(bf),                        # (Fl, M)
    )
    layers = []
    for lp in params["layers"]:
        c = dict(shared)
        c.update(
            ln1_g=lp["ln1_g"].reshape(1, D).astype(f32),
            ln1_b=lp["ln1_b"].reshape(1, D).astype(f32),
            ln2_g=lp["ln2_g"].reshape(1, D).astype(f32),
            ln2_b=lp["ln2_b"].reshape(1, D).astype(f32),
            w1=lp["w1"].astype(bf), b1=lp["b1"].reshape(1, M).astype(f32),
            w2=lp["w2"].astype(bf), b2=lp["b2"].reshape(1, D).astype(f32),
            ln3_g=lp["ln3_g"].reshape(1, D).astype(f32),
            ln3_b=lp["ln3_b"].reshape(1, D).astype(f32),
            ln4_g=lp["ln4_g"].reshape(M, 1).astype(f32),
            ln4_b=lp["ln4_b"].reshape(M, 1).astype(f32),
            cw1t=lp["cw1"].T.astype(bf), cb1=lp["cb1"].reshape(M, 1).astype(f32),
            cw2t=lp["cw2"].T.astype(bf), cb2=lp["cb2"].reshape(M, 1).astype(f32),
        )
        layers.append(c)
    return layers


def _layer_pallas_call(x, cross, c):
    B, Lx, D = x.shape
    N = cross.shape[1]
    M = c["pt"].shape[0]
    Fl = c["rt"].shape[0]

    consts = tuple(c[name] for name in _OPERAND_NAMES)
    operands = (x, cross) + consts

    in_specs = [
        pl.BlockSpec((1, Lx, D), lambda b: (b, 0, 0)),
        pl.BlockSpec((1, N, D), lambda b: (b, 0, 0)),
    ] + [
        # Grid-invariant constants: full-array blocks.  (At large S one would
        # add pipeline_mode=pl.Buffered(1) to halve their VMEM footprint.)
        pl.BlockSpec(a.shape, lambda b: (0, 0)) for a in consts
    ]
    out_specs = (
        pl.BlockSpec((1, Lx, D), lambda b: (b, 0, 0)),
        pl.BlockSpec((1, N, D), lambda b: (b, 0, 0)),
    )
    out_shape = (
        jax.ShapeDtypeStruct((B, Lx, D), x.dtype),
        jax.ShapeDtypeStruct((B, N, D), cross.dtype),
    )

    def nb(a):
        return math.prod(a.shape) * a.dtype.itemsize

    # VMEM budget: double-buffered blocks + in-kernel intermediates + slack.
    const_bytes = sum(nb(a) for a in consts)
    act_block_bytes = (Lx * D + N * D) * 4 * 2
    interm_bytes = 4 * (4 * Lx * D + Lx * M + 4 * M * D + 2 * Lx * Lx)
    vmem_limit = int(min(64 * 2**20,
                         max(4 * 2**20,
                             2 * (const_bytes + act_block_bytes)
                             + interm_bytes + (1 << 20))))

    flops_per_item = (4 * Lx * D * D + 4 * Lx * Lx * D      # x-path DFT
                      + 4 * Lx * D * M                      # x-path FFN
                      + 4 * N * D * D + 4 * N * N * D       # cross DFT
                      + 2 * M * N * D + 4 * M * M * D       # proj + cross FFN
                      + 2 * Fl * M * D)                     # reproj
    cost = pl.CostEstimate(
        flops=int(B * flops_per_item),
        transcendentals=int(B * (Lx * M + M * D)),
        bytes_accessed=int(sum(nb(a) for a in operands)
                           + (B * Lx * D + B * N * D) * 4),
    )

    return pl.pallas_call(
        _fnet_decoder_layer_kernel,
        out_shape=out_shape,
        grid=(B,),
        in_specs=in_specs,
        out_specs=out_specs,
        compiler_params=pltpu.CompilerParams(
            dimension_semantics=("parallel",),
            vmem_limit_bytes=vmem_limit),
        cost_estimate=cost,
    )(*operands)


def fnet_decoder_forward(x, cross, params):
    """FNetDecoder.forward (eval mode).  x: (B, seq_len+forc_len, dim),
    cross: (B, seq_len, dim)."""
    B, Lx, D = x.shape
    N = cross.shape[1]
    layer_ops = _prepare_operands(params, Lx, N, D)
    for c in layer_ops:
        x, cross = _layer_pallas_call(x, cross, c)
    return x


# ----------------------------------------------------------------------------
# Parameters (synthetic, deterministic).  Math layout:
#   w1: (dim, mlp)  -> y = x @ w1 + b1   (torch Linear weight transposed)
#   cw1/cw2: (mlp, mlp) -> y = x @ cw1 + cb1
# ----------------------------------------------------------------------------
def init_params(key, dim, mlp_dim, seq_len, forc_len, depth):
    n_layers = 2 * depth
    keys = jax.random.split(key, 2 + n_layers)
    params = {
        "proj": (1.0 / math.sqrt(mlp_dim))
                * jax.random.normal(keys[0], (seq_len, mlp_dim), jnp.float32),
        "reproj": (1.0 / math.sqrt(forc_len))
                  * jax.random.normal(keys[1], (mlp_dim, forc_len), jnp.float32),
        "layers": [],
    }
    s_d = 1.0 / math.sqrt(dim)
    s_m = 1.0 / math.sqrt(mlp_dim)

    def u(kk, shape, s):
        return jax.random.uniform(kk, shape, jnp.float32, -s, s)

    for i in range(n_layers):
        k = jax.random.split(keys[2 + i], 16)
        params["layers"].append({
            "ln1_g": 1.0 + 0.1 * jax.random.normal(k[0], (dim,), jnp.float32),
            "ln1_b": 0.05 * jax.random.normal(k[1], (dim,), jnp.float32),
            "ln2_g": 1.0 + 0.1 * jax.random.normal(k[2], (dim,), jnp.float32),
            "ln2_b": 0.05 * jax.random.normal(k[3], (dim,), jnp.float32),
            "w1": u(k[4], (dim, mlp_dim), s_d),
            "b1": u(k[5], (mlp_dim,), s_d),
            "w2": u(k[6], (mlp_dim, dim), s_m),
            "b2": u(k[7], (dim,), s_m),
            "ln3_g": 1.0 + 0.1 * jax.random.normal(k[8], (dim,), jnp.float32),
            "ln3_b": 0.05 * jax.random.normal(k[9], (dim,), jnp.float32),
            "ln4_g": 1.0 + 0.1 * jax.random.normal(k[10], (mlp_dim,), jnp.float32),
            "ln4_b": 0.05 * jax.random.normal(k[11], (mlp_dim,), jnp.float32),
            "cw1": u(k[12], (mlp_dim, mlp_dim), s_m),
            "cb1": u(k[13], (mlp_dim,), s_m),
            "cw2": u(k[14], (mlp_dim, mlp_dim), s_m),
            "cb2": u(k[15], (mlp_dim,), s_m),
        })
    return params


# ----------------------------------------------------------------------------
# References
# ----------------------------------------------------------------------------
def fnet_decoder_reference_mirror(x, cross, params):
    """Same mixed-precision math as the kernel, in plain JAX (vmap over batch)."""
    B, Lx, D = x.shape
    N = cross.shape[1]
    for c in _prepare_operands(params, Lx, N, D):
        x, cross = jax.vmap(functools.partial(_layer_math, c=c))(x, cross)
    return x


def fnet_decoder_reference_fft(x, cross, params):
    """Literal f32 / jnp.fft mirror of the PyTorch forward (eval mode)."""
    seq_len = cross.shape[1]

    def ln(v, g, b):
        mu = v.mean(-1, keepdims=True)
        var = ((v - mu) ** 2).mean(-1, keepdims=True)
        return (v - mu) * jax.lax.rsqrt(var + LN_EPS) * g + b

    def fnet(v):
        return jnp.real(jnp.fft.fft(jnp.fft.fft(v, axis=-1), axis=-2))

    for lp in params["layers"]:
        x = x + fnet(ln(x, lp["ln1_g"], lp["ln1_b"]))
        xn = ln(x, lp["ln2_g"], lp["ln2_b"])
        x = x + (_gelu(xn @ lp["w1"] + lp["b1"]) @ lp["w2"] + lp["b2"])
        cross = fnet(ln(cross, lp["ln3_g"], lp["ln3_b"]))
        proj = jnp.einsum("bnd,nm->bdm", cross, params["proj"])
        pn = ln(proj, lp["ln4_g"], lp["ln4_b"])
        proj = _gelu(pn @ lp["cw1"] + lp["cb1"]) @ lp["cw2"] + lp["cb2"]
        forc = jnp.einsum("bdm,mf->bfd", proj, params["reproj"])
        x = x + jnp.pad(forc, ((0, 0), (seq_len, 0), (0, 0)))
    return x


# ----------------------------------------------------------------------------
if __name__ == "__main__":
    dim, mlp_dim, seq_len, forc_len, depth, batch = 32, 64, 8, 8, 1, 2
    key = jax.random.PRNGKey(0)
    kx, kc, kp = jax.random.split(key, 3)
    x = jax.random.normal(kx, (batch, seq_len + forc_len, dim), jnp.float32)
    cross = jax.random.normal(kc, (batch, seq_len, dim), jnp.float32)
    params = init_params(kp, dim, mlp_dim, seq_len, forc_len, depth)

    out = jax.block_until_ready(jax.jit(fnet_decoder_forward)(x, cross, params))
    ref_mirror = jax.block_until_ready(fnet_decoder_reference_mirror(x, cross, params))
    ref_fft = jax.block_until_ready(fnet_decoder_reference_fft(x, cross, params))

    assert out.shape == x.shape
    # Kernel must match the identical mixed-precision JAX math tightly.
    assert jnp.allclose(out, ref_mirror, atol=1e-2, rtol=1e-2), (
        f"mirror max abs err {jnp.max(jnp.abs(out - ref_mirror))}")
    # Sanity: close to the literal f32 jnp.fft reference (bf16 MXU inputs => loose tol).
    assert jnp.allclose(out, ref_fft, atol=2.0, rtol=0.1), (
        f"fft-ref max abs err {jnp.max(jnp.abs(out - ref_fft))}")
    print("KERNEL_OK")
</pallas_src>

<mosaic_0001>
module attributes {stable_mosaic.version = 11 : i64} {
  func.func @_fnet_decoder_layer_kernel(%arg0: i32, %arg1: memref<1x16x32xf32, #tpu.memory_space<vmem>>, %arg2: memref<1x8x32xf32, #tpu.memory_space<vmem>>, %arg3: memref<32x32xbf16, #tpu.memory_space<vmem>>, %arg4: memref<32x32xbf16, #tpu.memory_space<vmem>>, %arg5: memref<16x32xbf16, #tpu.memory_space<vmem>>, %arg6: memref<8x16xbf16, #tpu.memory_space<vmem>>, %arg7: memref<1x32xf32, #tpu.memory_space<vmem>>, %arg8: memref<1x32xf32, #tpu.memory_space<vmem>>, %arg9: memref<1x32xf32, #tpu.memory_space<vmem>>, %arg10: memref<1x32xf32, #tpu.memory_space<vmem>>, %arg11: memref<32x64xbf16, #tpu.memory_space<vmem>>, %arg12: memref<1x64xf32, #tpu.memory_space<vmem>>, %arg13: memref<64x32xbf16, #tpu.memory_space<vmem>>, %arg14: memref<1x32xf32, #tpu.memory_space<vmem>>, %arg15: memref<1x32xf32, #tpu.memory_space<vmem>>, %arg16: memref<1x32xf32, #tpu.memory_space<vmem>>, %arg17: memref<64x1xf32, #tpu.memory_space<vmem>>, %arg18: memref<64x1xf32, #tpu.memory_space<vmem>>, %arg19: memref<64x64xbf16, #tpu.memory_space<vmem>>, %arg20: memref<64x1xf32, #tpu.memory_space<vmem>>, %arg21: memref<64x64xbf16, #tpu.memory_space<vmem>>, %arg22: memref<64x1xf32, #tpu.memory_space<vmem>>, %arg23: memref<64x8xbf16, #tpu.memory_space<vmem>>, %arg24: memref<8x64xbf16, #tpu.memory_space<vmem>>, %arg25: memref<1x16x32xf32, #tpu.memory_space<vmem>>, %arg26: memref<1x8x32xf32, #tpu.memory_space<vmem>>) attributes {dimension_semantics = [#tpu.dimension_semantics<parallel>], iteration_bounds = array<i64: 2>, scalar_prefetch = 0 : i64, scratch_operands = 0 : i64, tpu.core_type = #tpu.core_type<tc>, window_params = [{transform_indices = @transform_0, window_bounds = array<i64: 1, 16, 32>}, {transform_indices = @transform_1, window_bounds = array<i64: 1, 8, 32>}, {pipeline_mode = #tpu.pipeline_mode<synchronous>, transform_indices = @transform_2, window_bounds = array<i64: 32, 32>}, {pipeline_mode = #tpu.pipeline_mode<synchronous>, transform_indices = @transform_3, window_bounds = array<i64: 32, 32>}, {pipeline_mode = #tpu.pipeline_mode<synchronous>, transform_indices = @transform_4, window_bounds = array<i64: 16, 32>}, {pipeline_mode = #tpu.pipeline_mode<synchronous>, transform_indices = @transform_5, window_bounds = array<i64: 8, 16>}, {pipeline_mode = #tpu.pipeline_mode<synchronous>, transform_indices = @transform_6, window_bounds = array<i64: 1, 32>}, {pipeline_mode = #tpu.pipeline_mode<synchronous>, transform_indices = @transform_7, window_bounds = array<i64: 1, 32>}, {pipeline_mode = #tpu.pipeline_mode<synchronous>, transform_indices = @transform_8, window_bounds = array<i64: 1, 32>}, {pipeline_mode = #tpu.pipeline_mode<synchronous>, transform_indices = @transform_9, window_bounds = array<i64: 1, 32>}, {pipeline_mode = #tpu.pipeline_mode<synchronous>, transform_indices = @transform_10, window_bounds = array<i64: 32, 64>}, {pipeline_mode = #tpu.pipeline_mode<synchronous>, transform_indices = @transform_11, window_bounds = array<i64: 1, 64>}, {pipeline_mode = #tpu.pipeline_mode<synchronous>, transform_indices = @transform_12, window_bounds = array<i64: 64, 32>}, {pipeline_mode = #tpu.pipeline_mode<synchronous>, transform_indices = @transform_13, window_bounds = array<i64: 1, 32>}, {pipeline_mode = #tpu.pipeline_mode<synchronous>, transform_indices = @transform_14, window_bounds = array<i64: 1, 32>}, {pipeline_mode = #tpu.pipeline_mode<synchronous>, transform_indices = @transform_15, window_bounds = array<i64: 1, 32>}, {pipeline_mode = #tpu.pipeline_mode<synchronous>, transform_indices = @transform_16, window_bounds = array<i64: 64, 1>}, {pipeline_mode = #tpu.pipeline_mode<synchronous>, transform_indices = @transform_17, window_bounds = array<i64: 64, 1>}, {pipeline_mode = #tpu.pipeline_mode<synchronous>, transform_indices = @transform_18, window_bounds = array<i64: 64, 64>}, {pipeline_mode = #tpu.pipeline_mode<synchronous>, transform_indices = @transform_19, window_bounds = array<i64: 64, 1>}, {pipeline_mode = #tpu.pipeline_mode<synchronous>, transform_indices = @transform_20, window_bounds = array<i64: 64, 64>}, {pipeline_mode = #tpu.pipeline_mode<synchronous>, transform_indices = @transform_21, window_bounds = array<i64: 64, 1>}, {pipeline_mode = #tpu.pipeline_mode<synchronous>, transform_indices = @transform_22, window_bounds = array<i64: 64, 8>}, {pipeline_mode = #tpu.pipeline_mode<synchronous>, transform_indices = @transform_23, window_bounds = array<i64: 8, 64>}, {transform_indices = @transform_24, window_bounds = array<i64: 1, 16, 32>}, {transform_indices = @transform_25, window_bounds = array<i64: 1, 8, 32>}]} {
    %c0 = arith.constant 0 : index
    %c0_0 = arith.constant 0 : index
    %0 = vector.load %arg3[%c0, %c0_0] : memref<32x32xbf16, #tpu.memory_space<vmem>>, vector<32x32xbf16>
    %c0_1 = arith.constant 0 : index
    %c0_2 = arith.constant 0 : index
    %1 = vector.load %arg4[%c0_1, %c0_2] : memref<32x32xbf16, #tpu.memory_space<vmem>>, vector<32x32xbf16>
    %c0_3 = arith.constant 0 : index
    %c0_4 = arith.constant 0 : index
    %2 = vector.load %arg5[%c0_3, %c0_4] : memref<16x32xbf16, #tpu.memory_space<vmem>>, vector<16x32xbf16>
    %c0_5 = arith.constant 0 : index
    %c0_6 = arith.constant 0 : index
    %3 = vector.load %arg6[%c0_5, %c0_6] : memref<8x16xbf16, #tpu.memory_space<vmem>>, vector<8x16xbf16>
    %c0_7 = arith.constant 0 : index
    %c0_8 = arith.constant 0 : index
    %4 = vector.load %arg7[%c0_7, %c0_8] : memref<1x32xf32, #tpu.memory_space<vmem>>, vector<1x32xf32>
    %c0_9 = arith.constant 0 : index
    %c0_10 = arith.constant 0 : index
    %5 = vector.load %arg8[%c0_9, %c0_10] : memref<1x32xf32, #tpu.memory_space<vmem>>, vector<1x32xf32>
    %c0_11 = arith.constant 0 : index
    %c0_12 = arith.constant 0 : index
    %6 = vector.load %arg9[%c0_11, %c0_12] : memref<1x32xf32, #tpu.memory_space<vmem>>, vector<1x32xf32>
    %c0_13 = arith.constant 0 : index
    %c0_14 = arith.constant 0 : index
    %7 = vector.load %arg10[%c0_13, %c0_14] : memref<1x32xf32, #tpu.memory_space<vmem>>, vector<1x32xf32>
    %c0_15 = arith.constant 0 : index
    %c0_16 = arith.constant 0 : index
    %8 = vector.load %arg11[%c0_15, %c0_16] : memref<32x64xbf16, #tpu.memory_space<vmem>>, vector<32x64xbf16>
    %c0_17 = arith.constant 0 : index
    %c0_18 = arith.constant 0 : index
    %9 = vector.load %arg12[%c0_17, %c0_18] : memref<1x64xf32, #tpu.memory_space<vmem>>, vector<1x64xf32>
    %c0_19 = arith.constant 0 : index
    %c0_20 = arith.constant 0 : index
    %10 = vector.load %arg13[%c0_19, %c0_20] : memref<64x32xbf16, #tpu.memory_space<vmem>>, vector<64x32xbf16>
    %c0_21 = arith.constant 0 : index
    %c0_22 = arith.constant 0 : index
    %11 = vector.load %arg14[%c0_21, %c0_22] : memref<1x32xf32, #tpu.memory_space<vmem>>, vector<1x32xf32>
    %c0_23 = arith.constant 0 : index
    %c0_24 = arith.constant 0 : index
    %12 = vector.load %arg15[%c0_23, %c0_24] : memref<1x32xf32, #tpu.memory_space<vmem>>, vector<1x32xf32>
    %c0_25 = arith.constant 0 : index
    %c0_26 = arith.constant 0 : index
    %13 = vector.load %arg16[%c0_25, %c0_26] : memref<1x32xf32, #tpu.memory_space<vmem>>, vector<1x32xf32>
    %c0_27 = arith.constant 0 : index
    %c0_28 = arith.constant 0 : index
    %14 = vector.load %arg17[%c0_27, %c0_28] : memref<64x1xf32, #tpu.memory_space<vmem>>, vector<64x1xf32>
    %c0_29 = arith.constant 0 : index
    %c0_30 = arith.constant 0 : index
    %15 = vector.load %arg18[%c0_29, %c0_30] : memref<64x1xf32, #tpu.memory_space<vmem>>, vector<64x1xf32>
    %c0_31 = arith.constant 0 : index
    %c0_32 = arith.constant 0 : index
    %16 = vector.load %arg19[%c0_31, %c0_32] : memref<64x64xbf16, #tpu.memory_space<vmem>>, vector<64x64xbf16>
    %c0_33 = arith.constant 0 : index
    %c0_34 = arith.constant 0 : index
    %17 = vector.load %arg20[%c0_33, %c0_34] : memref<64x1xf32, #tpu.memory_space<vmem>>, vector<64x1xf32>
    %c0_35 = arith.constant 0 : index
    %c0_36 = arith.constant 0 : index
    %18 = vector.load %arg21[%c0_35, %c0_36] : memref<64x64xbf16, #tpu.memory_space<vmem>>, vector<64x64xbf16>
    %c0_37 = arith.constant 0 : index
    %c0_38 = arith.constant 0 : index
    %19 = vector.load %arg22[%c0_37, %c0_38] : memref<64x1xf32, #tpu.memory_space<vmem>>, vector<64x1xf32>
    %c0_39 = arith.constant 0 : index
    %c0_40 = arith.constant 0 : index
    %20 = vector.load %arg23[%c0_39, %c0_40] : memref<64x8xbf16, #tpu.memory_space<vmem>>, vector<64x8xbf16>
    %c0_41 = arith.constant 0 : index
    %c0_42 = arith.constant 0 : index
    %21 = vector.load %arg24[%c0_41, %c0_42] : memref<8x64xbf16, #tpu.memory_space<vmem>>, vector<8x64xbf16>
    %c0_43 = arith.constant 0 : index
    %c0_44 = arith.constant 0 : index
    %c0_45 = arith.constant 0 : index
    %22 = vector.load %arg1[%c0_43, %c0_44, %c0_45] : memref<1x16x32xf32, #tpu.memory_space<vmem>>, vector<1x16x32xf32>
    %23 = vector.shape_cast %22 : vector<1x16x32xf32> to vector<16x32xf32>
    %c0_46 = arith.constant 0 : index
    %c0_47 = arith.constant 0 : index
    %c0_48 = arith.constant 0 : index
    %24 = vector.load %arg2[%c0_46, %c0_47, %c0_48] : memref<1x8x32xf32, #tpu.memory_space<vmem>>, vector<1x8x32xf32>
    %25 = vector.shape_cast %24 : vector<1x8x32xf32> to vector<8x32xf32>
    %cst = arith.constant dense<0.000000e+00> : vector<16xf32>
    %26 = vector.multi_reduction <add>, %23, %cst [1] : vector<16x32xf32> to vector<16xf32>
    %27 = vector.shape_cast %26 : vector<16xf32> to vector<16x1xf32>
    %cst_49 = arith.constant 3.200000e+01 : f32
    %28 = vector.broadcast %cst_49 : f32 to vector<16x1xf32>
    %29 = arith.divf %27, %28 : vector<16x1xf32>
    %30 = vector.broadcast %29 : vector<16x1xf32> to vector<16x32xf32>
    %31 = arith.subf %23, %30 : vector<16x32xf32>
    %32 = arith.mulf %31, %31 : vector<16x32xf32>
    %cst_50 = arith.constant dense<0.000000e+00> : vector<16xf32>
    %33 = vector.multi_reduction <add>, %32, %cst_50 [1] : vector<16x32xf32> to vector<16xf32>
    %34 = vector.shape_cast %33 : vector<16xf32> to vector<16x1xf32>
    %cst_51 = arith.constant 3.200000e+01 : f32
    %35 = vector.broadcast %cst_51 : f32 to vector<16x1xf32>
    %36 = arith.divf %34, %35 : vector<16x1xf32>
    %37 = vector.broadcast %29 : vector<16x1xf32> to vector<16x32xf32>
    %38 = arith.subf %23, %37 : vector<16x32xf32>
    %cst_52 = arith.constant 9.99999974E-6 : f32
    %39 = vector.broadcast %cst_52 : f32 to vector<16x1xf32>
    %40 = arith.addf %36, %39 : vector<16x1xf32>
    %41 = math.rsqrt %40 : vector<16x1xf32>
    %42 = vector.broadcast %41 : vector<16x1xf32> to vector<16x32xf32>
    %43 = arith.mulf %38, %42 : vector<16x32xf32>
    %44 = vector.broadcast %4 : vector<1x32xf32> to vector<16x32xf32>
    %45 = arith.mulf %43, %44 : vector<16x32xf32>
    %46 = vector.broadcast %5 : vector<1x32xf32> to vector<16x32xf32>
    %47 = arith.addf %45, %46 : vector<16x32xf32>
    %48 = arith.truncf %47 : vector<16x32xf32> to vector<16x32xbf16>
    %cst_53 = arith.constant dense<0.000000e+00> : vector<16x32xf32>
    %49 = tpu.matmul %48, %0, %cst_53 {dimension_numbers = #tpu.dot_dimension_numbers<[1], [0], [0], [1], [0, 0, 1, 1], [], []>} : vector<16x32xbf16>, vector<32x32xbf16>, vector<16x32xf32> -> vector<16x32xf32>
    %cst_54 = arith.constant dense<0.000000e+00> : vector<16x32xf32>
    %50 = tpu.matmul %48, %1, %cst_54 {dimension_numbers = #tpu.dot_dimension_numbers<[1], [0], [0], [1], [0, 0, 1, 1], [], []>} : vector<16x32xbf16>, vector<32x32xbf16>, vector<16x32xf32> -> vector<16x32xf32>
    %51 = tpu.concatenate %49, %50 in 0 : vector<16x32xf32>, vector<16x32xf32> -> vector<32x32xf32>
    %52 = arith.truncf %51 : vector<32x32xf32> to vector<32x32xbf16>
    %cst_55 = arith.constant dense<0.000000e+00> : vector<16x32xf32>
    %53 = tpu.matmul %2, %52, %cst_55 {dimension_numbers = #tpu.dot_dimension_numbers<[1], [0], [0], [1], [0, 0, 1, 1], [], []>} : vector<16x32xbf16>, vector<32x32xbf16>, vector<16x32xf32> -> vector<16x32xf32>
    %54 = arith.addf %23, %53 : vector<16x32xf32>
    %cst_56 = arith.constant dense<0.000000e+00> : vector<16xf32>
    %55 = vector.multi_reduction <add>, %54, %cst_56 [1] : vector<16x32xf32> to vector<16xf32>
    %56 = vector.shape_cast %55 : vector<16xf32> to vector<16x1xf32>
    %cst_57 = arith.constant 3.200000e+01 : f32
    %57 = vector.broadcast %cst_57 : f32 to vector<16x1xf32>
    %58 = arith.divf %56, %57 : vector<16x1xf32>
    %59 = vector.broadcast %58 : vector<16x1xf32> to vector<16x32xf32>
    %60 = arith.subf %54, %59 : vector<16x32xf32>
    %61 = arith.mulf %60, %60 : vector<16x32xf32>
    %cst_58 = arith.constant dense<0.000000e+00> : vector<16xf32>
    %62 = vector.multi_reduction <add>, %61, %cst_58 [1] : vector<16x32xf32> to vector<16xf32>
    %63 = vector.shape_cast %62 : vector<16xf32> to vector<16x1xf32>
    %cst_59 = arith.constant 3.200000e+01 : f32
    %64 = vector.broadcast %cst_59 : f32 to vector<16x1xf32>
    %65 = arith.divf %63, %64 : vector<16x1xf32>
    %66 = vector.broadcast %58 : vector<16x1xf32> to vector<16x32xf32>
    %67 = arith.subf %54, %66 : vector<16x32xf32>
    %cst_60 = arith.constant 9.99999974E-6 : f32
    %68 = vector.broadcast %cst_60 : f32 to vector<16x1xf32>
    %69 = arith.addf %65, %68 : vector<16x1xf32>
    %70 = math.rsqrt %69 : vector<16x1xf32>
    %71 = vector.broadcast %70 : vector<16x1xf32> to vector<16x32xf32>
    %72 = arith.mulf %67, %71 : vector<16x32xf32>
    %73 = vector.broadcast %6 : vector<1x32xf32> to vector<16x32xf32>
    %74 = arith.mulf %72, %73 : vector<16x32xf32>
    %75 = vector.broadcast %7 : vector<1x32xf32> to vector<16x32xf32>
    %76 = arith.addf %74, %75 : vector<16x32xf32>
    %77 = arith.truncf %76 : vector<16x32xf32> to vector<16x32xbf16>
    %cst_61 = arith.constant dense<0.000000e+00> : vector<16x64xf32>
    %78 = tpu.matmul %77, %8, %cst_61 {dimension_numbers = #tpu.dot_dimension_numbers<[1], [0], [0], [1], [0, 0, 1, 1], [], []>} : vector<16x32xbf16>, vector<32x64xbf16>, vector<16x64xf32> -> vector<16x64xf32>
    %79 = vector.broadcast %9 : vector<1x64xf32> to vector<16x64xf32>
    %80 = arith.addf %78, %79 : vector<16x64xf32>
    %cst_62 = arith.constant 5.000000e-01 : f32
    %81 = vector.broadcast %cst_62 : f32 to vector<16x64xf32>
    %82 = arith.mulf %81, %80 : vector<16x64xf32>
    %cst_63 = arith.constant 4.471500e-02 : f32
    %83 = vector.broadcast %cst_63 : f32 to vector<16x64xf32>
    %84 = arith.mulf %83, %80 : vector<16x64xf32>
    %85 = arith.mulf %84, %80 : vector<16x64xf32>
    %86 = arith.mulf %85, %80 : vector<16x64xf32>
    %87 = arith.addf %80, %86 : vector<16x64xf32>
    %cst_64 = arith.constant 0.797884583 : f32
    %88 = vector.broadcast %cst_64 : f32 to vector<16x64xf32>
    %89 = arith.mulf %88, %87 : vector<16x64xf32>
    %90 = math.tanh %89 : vector<16x64xf32>
    %cst_65 = arith.constant 1.000000e+00 : f32
    %91 = vector.broadcast %cst_65 : f32 to vector<16x64xf32>
    %92 = arith.addf %91, %90 : vector<16x64xf32>
    %93 = arith.mulf %82, %92 : vector<16x64xf32>
    %94 = arith.truncf %93 : vector<16x64xf32> to vector<16x64xbf16>
    %cst_66 = arith.constant dense<0.000000e+00> : vector<16x32xf32>
    %95 = tpu.matmul %94, %10, %cst_66 {dimension_numbers = #tpu.dot_dimension_numbers<[1], [0], [0], [1], [0, 0, 1, 1], [], []>} : vector<16x64xbf16>, vector<64x32xbf16>, vector<16x32xf32> -> vector<16x32xf32>
    %96 = vector.broadcast %11 : vector<1x32xf32> to vector<16x32xf32>
    %97 = arith.addf %95, %96 : vector<16x32xf32>
    %98 = arith.addf %54, %97 : vector<16x32xf32>
    %cst_67 = arith.constant dense<0.000000e+00> : vector<8xf32>
    %99 = vector.multi_reduction <add>, %25, %cst_67 [1] : vector<8x32xf32> to vector<8xf32>
    %100 = vector.shape_cast %99 : vector<8xf32> to vector<8x1xf32>
    %cst_68 = arith.constant 3.200000e+01 : f32
    %101 = vector.broadcast %cst_68 : f32 to vector<8x1xf32>
    %102 = arith.divf %100, %101 : vector<8x1xf32>
    %103 = vector.broadcast %102 : vector<8x1xf32> to vector<8x32xf32>
    %104 = arith.subf %25, %103 : vector<8x32xf32>
    %105 = arith.mulf %104, %104 : vector<8x32xf32>
    %cst_69 = arith.constant dense<0.000000e+00> : vector<8xf32>
    %106 = vector.multi_reduction <add>, %105, %cst_69 [1] : vector<8x32xf32> to vector<8xf32>
    %107 = vector.shape_cast %106 : vector<8xf32> to vector<8x1xf32>
    %cst_70 = arith.constant 3.200000e+01 : f32
    %108 = vector.broadcast %cst_70 : f32 to vector<8x1xf32>
    %109 = arith.divf %107, %108 : vector<8x1xf32>
    %110 = vector.broadcast %102 : vector<8x1xf32> to vector<8x32xf32>
    %111 = arith.subf %25, %110 : vector<8x32xf32>
    %cst_71 = arith.constant 9.99999974E-6 : f32
    %112 = vector.broadcast %cst_71 : f32 to vector<8x1xf32>
    %113 = arith.addf %109, %112 : vector<8x1xf32>
    %114 = math.rsqrt %113 : vector<8x1xf32>
    %115 = vector.broadcast %114 : vector<8x1xf32> to vector<8x32xf32>
    %116 = arith.mulf %111, %115 : vector<8x32xf32>
    %117 = vector.broadcast %12 : vector<1x32xf32> to vector<8x32xf32>
    %118 = arith.mulf %116, %117 : vector<8x32xf32>
    %119 = vector.broadcast %13 : vector<1x32xf32> to vector<8x32xf32>
    %120 = arith.addf %118, %119 : vector<8x32xf32>
    %121 = arith.truncf %120 : vector<8x32xf32> to vector<8x32xbf16>
    %cst_72 = arith.constant dense<0.000000e+00> : vector<8x32xf32>
    %122 = tpu.matmul %121, %0, %cst_72 {dimension_numbers = #tpu.dot_dimension_numbers<[1], [0], [0], [1], [0, 0, 1, 1], [], []>} : vector<8x32xbf16>, vector<32x32xbf16>, vector<8x32xf32> -> vector<8x32xf32>
    %cst_73 = arith.constant dense<0.000000e+00> : vector<8x32xf32>
    %123 = tpu.matmul %121, %1, %cst_73 {dimension_numbers = #tpu.dot_dimension_numbers<[1], [0], [0], [1], [0, 0, 1, 1], [], []>} : vector<8x32xbf16>, vector<32x32xbf16>, vector<8x32xf32> -> vector<8x32xf32>
    %124 = tpu.concatenate %122, %123 in 0 : vector<8x32xf32>, vector<8x32xf32> -> vector<16x32xf32>
    %125 = arith.truncf %124 : vector<16x32xf32> to vector<16x32xbf16>
    %cst_74 = arith.constant dense<0.000000e+00> : vector<8x32xf32>
    %126 = tpu.matmul %3, %125, %cst_74 {dimension_numbers = #tpu.dot_dimension_numbers<[1], [0], [0], [1], [0, 0, 1, 1], [], []>} : vector<8x16xbf16>, vector<16x32xbf16>, vector<8x32xf32> -> vector<8x32xf32>
    %127 = arith.truncf %126 : vector<8x32xf32> to vector<8x32xbf16>
    %cst_75 = arith.constant dense<0.000000e+00> : vector<64x32xf32>
    %128 = tpu.matmul %20, %127, %cst_75 {dimension_numbers = #tpu.dot_dimension_numbers<[1], [0], [0], [1], [0, 0, 1, 1], [], []>} : vector<64x8xbf16>, vector<8x32xbf16>, vector<64x32xf32> -> vector<64x32xf32>
    %cst_76 = arith.constant dense<0.000000e+00> : vector<32xf32>
    %129 = vector.multi_reduction <add>, %128, %cst_76 [0] : vector<64x32xf32> to vector<32xf32>
    %130 = vector.shape_cast %129 : vector<32xf32> to vector<1x32xf32>
    %cst_77 = arith.constant 6.400000e+01 : f32
    %131 = vector.broadcast %cst_77 : f32 to vector<1x32xf32>
    %132 = arith.divf %130, %131 : vector<1x32xf32>
    %133 = vector.broadcast %132 : vector<1x32xf32> to vector<64x32xf32>
    %134 = arith.subf %128, %133 : vector<64x32xf32>
    %135 = arith.mulf %134, %134 : vector<64x32xf32>
    %cst_78 = arith.constant dense<0.000000e+00> : vector<32xf32>
    %136 = vector.multi_reduction <add>, %135, %cst_78 [0] : vector<64x32xf32> to vector<32xf32>
    %137 = vector.shape_cast %136 : vector<32xf32> to vector<1x32xf32>
    %cst_79 = arith.constant 6.400000e+01 : f32
    %138 = vector.broadcast %cst_79 : f32 to vector<1x32xf32>
    %139 = arith.divf %137, %138 : vector<1x32xf32>
    %140 = vector.broadcast %132 : vector<1x32xf32> to vector<64x32xf32>
    %141 = arith.subf %128, %140 : vector<64x32xf32>
    %cst_80 = arith.constant 9.99999974E-6 : f32
    %142 = vector.broadcast %cst_80 : f32 to vector<1x32xf32>
    %143 = arith.addf %139, %142 : vector<1x32xf32>
    %144 = math.rsqrt %143 : vector<1x32xf32>
    %145 = vector.broadcast %144 : vector<1x32xf32> to vector<64x32xf32>
    %146 = arith.mulf %141, %145 : vector<64x32xf32>
    %147 = vector.broadcast %14 : vector<64x1xf32> to vector<64x32xf32>
    %148 = arith.mulf %146, %147 : vector<64x32xf32>
    %149 = vector.broadcast %15 : vector<64x1xf32> to vector<64x32xf32>
    %150 = arith.addf %148, %149 : vector<64x32xf32>
    %151 = arith.truncf %150 : vector<64x32xf32> to vector<64x32xbf16>
    %cst_81 = arith.constant dense<0.000000e+00> : vector<64x32xf32>
    %152 = tpu.matmul %16, %151, %cst_81 {dimension_numbers = #tpu.dot_dimension_numbers<[1], [0], [0], [1], [0, 0, 1, 1], [], []>} : vector<64x64xbf16>, vector<64x32xbf16>, vector<64x32xf32> -> vector<64x32xf32>
    %153 = vector.broadcast %17 : vector<64x1xf32> to vector<64x32xf32>
    %154 = arith.addf %152, %153 : vector<64x32xf32>
    %cst_82 = arith.constant 5.000000e-01 : f32
    %155 = vector.broadcast %cst_82 : f32 to vector<64x32xf32>
    %156 = arith.mulf %155, %154 : vector<64x32xf32>
    %cst_83 = arith.constant 4.471500e-02 : f32
    %157 = vector.broadcast %cst_83 : f32 to vector<64x32xf32>
    %158 = arith.mulf %157, %154 : vector<64x32xf32>
    %159 = arith.mulf %158, %154 : vector<64x32xf32>
    %160 = arith.mulf %159, %154 : vector<64x32xf32>
    %161 = arith.addf %154, %160 : vector<64x32xf32>
    %cst_84 = arith.constant 0.797884583 : f32
    %162 = vector.broadcast %cst_84 : f32 to vector<64x32xf32>
    %163 = arith.mulf %162, %161 : vector<64x32xf32>
    %164 = math.tanh %163 : vector<64x32xf32>
    %cst_85 = arith.constant 1.000000e+00 : f32
    %165 = vector.broadcast %cst_85 : f32 to vector<64x32xf32>
    %166 = arith.addf %165, %164 : vector<64x32xf32>
    %167 = arith.mulf %156, %166 : vector<64x32xf32>
    %168 = arith.truncf %167 : vector<64x32xf32> to vector<64x32xbf16>
    %cst_86 = arith.constant dense<0.000000e+00> : vector<64x32xf32>
    %169 = tpu.matmul %18, %168, %cst_86 {dimension_numbers = #tpu.dot_dimension_numbers<[1], [0], [0], [1], [0, 0, 1, 1], [], []>} : vector<64x64xbf16>, vector<64x32xbf16>, vector<64x32xf32> -> vector<64x32xf32>
    %170 = vector.broadcast %19 : vector<64x1xf32> to vector<64x32xf32>
    %171 = arith.addf %169, %170 : vector<64x32xf32>
    %172 = arith.truncf %171 : vector<64x32xf32> to vector<64x32xbf16>
    %cst_87 = arith.constant dense<0.000000e+00> : vector<8x32xf32>
    %173 = tpu.matmul %21, %172, %cst_87 {dimension_numbers = #tpu.dot_dimension_numbers<[1], [0], [0], [1], [0, 0, 1, 1], [], []>} : vector<8x64xbf16>, vector<64x32xbf16>, vector<8x32xf32> -> vector<8x32xf32>
    %cst_88 = arith.constant 0.000000e+00 : f32
    %174 = vector.broadcast %cst_88 : f32 to vector<8x32xf32>
    %175 = tpu.concatenate %174, %173 in 0 : vector<8x32xf32>, vector<8x32xf32> -> vector<16x32xf32>
    %176 = arith.addf %98, %175 : vector<16x32xf32>
    %c0_89 = arith.constant 0 : index
    %c0_90 = arith.constant 0 : index
    %c0_91 = arith.constant 0 : index
    %177 = vector.load %arg25[%c0_89, %c0_90, %c0_91] : memref<1x16x32xf32, #tpu.memory_space<vmem>>, vector<1x16x32xf32>
    %178 = vector.shape_cast %177 : vector<1x16x32xf32> to vector<16x32xf32>
    %179 = vector.shape_cast %176 : vector<16x32xf32> to vector<1x16x32xf32>
    tpu.vector_store %arg25[%c0_89, %c0_90, %c0_91], %179 {strides = array<i32>} : memref<1x16x32xf32, #tpu.memory_space<vmem>>, vector<1x16x32xf32>,
    %c0_92 = arith.constant 0 : index
    %c0_93 = arith.constant 0 : index
    %c0_94 = arith.constant 0 : index
    %180 = vector.load %arg26[%c0_92, %c0_93, %c0_94] : memref<1x8x32xf32, #tpu.memory_space<vmem>>, vector<1x8x32xf32>
    %181 = vector.shape_cast %180 : vector<1x8x32xf32> to vector<8x32xf32>
    %182 = vector.shape_cast %126 : vector<8x32xf32> to vector<1x8x32xf32>
    tpu.vector_store %arg26[%c0_92, %c0_93, %c0_94], %182 {strides = array<i32>} : memref<1x8x32xf32, #tpu.memory_space<vmem>>, vector<1x8x32xf32>,
    return
  }
  func.func @transform_0(%arg0: i32) -> (i32, i32, i32) {
    %c0_i32 = arith.constant 0 : i32
    %c0_i32_0 = arith.constant 0 : i32
    %c0_i32_1 = arith.constant 0 : i32
    return %arg0, %c0_i32, %c0_i32_0 : i32, i32, i32
  }
  func.func @transform_1(%arg0: i32) -> (i32, i32, i32) {
    %c0_i32 = arith.constant 0 : i32
    %c0_i32_0 = arith.constant 0 : i32
    %c0_i32_1 = arith.constant 0 : i32
    return %arg0, %c0_i32, %c0_i32_0 : i32, i32, i32
  }
  func.func @transform_2(%arg0: i32) -> (i32, i32) {
    %c0_i32 = arith.constant 0 : i32
    %c0_i32_0 = arith.constant 0 : i32
    %c0_i32_1 = arith.constant 0 : i32
    return %c0_i32, %c0_i32_0 : i32, i32
  }
  func.func @transform_3(%arg0: i32) -> (i32, i32) {
    %c0_i32 = arith.constant 0 : i32
    %c0_i32_0 = arith.constant 0 : i32
    %c0_i32_1 = arith.constant 0 : i32
    return %c0_i32, %c0_i32_0 : i32, i32
  }
  func.func @transform_4(%arg0: i32) -> (i32, i32) {
    %c0_i32 = arith.constant 0 : i32
    %c0_i32_0 = arith.constant 0 : i32
    %c0_i32_1 = arith.constant 0 : i32
    return %c0_i32, %c0_i32_0 : i32, i32
  }
  func.func @transform_5(%arg0: i32) -> (i32, i32) {
    %c0_i32 = arith.constant 0 : i32
    %c0_i32_0 = arith.constant 0 : i32
    %c0_i32_1 = arith.constant 0 : i32
    return %c0_i32, %c0_i32_0 : i32, i32
  }
  func.func @transform_6(%arg0: i32) -> (i32, i32) {
    %c0_i32 = arith.constant 0 : i32
    %c0_i32_0 = arith.constant 0 : i32
    %c0_i32_1 = arith.constant 0 : i32
    return %c0_i32, %c0_i32_0 : i32, i32
  }
  func.func @transform_7(%arg0: i32) -> (i32, i32) {
    %c0_i32 = arith.constant 0 : i32
    %c0_i32_0 = arith.constant 0 : i32
    %c0_i32_1 = arith.constant 0 : i32
    return %c0_i32, %c0_i32_0 : i32, i32
  }
  func.func @transform_8(%arg0: i32) -> (i32, i32) {
    %c0_i32 = arith.constant 0 : i32
    %c0_i32_0 = arith.constant 0 : i32
    %c0_i32_1 = arith.constant 0 : i32
    return %c0_i32, %c0_i32_0 : i32, i32
  }
  func.func @transform_9(%arg0: i32) -> (i32, i32) {
    %c0_i32 = arith.constant 0 : i32
    %c0_i32_0 = arith.constant 0 : i32
    %c0_i32_1 = arith.constant 0 : i32
    return %c0_i32, %c0_i32_0 : i32, i32
  }
  func.func @transform_10(%arg0: i32) -> (i32, i32) {
    %c0_i32 = arith.constant 0 : i32
    %c0_i32_0 = arith.constant 0 : i32
    %c0_i32_1 = arith.constant 0 : i32
    return %c0_i32, %c0_i32_0 : i32, i32
  }
  func.func @transform_11(%arg0: i32) -> (i32, i32) {
    %c0_i32 = arith.constant 0 : i32
    %c0_i32_0 = arith.constant 0 : i32
    %c0_i32_1 = arith.constant 0 : i32
    return %c0_i32, %c0_i32_0 : i32, i32
  }
  func.func @transform_12(%arg0: i32) -> (i32, i32) {
    %c0_i32 = arith.constant 0 : i32
    %c0_i32_0 = arith.constant 0 : i32
    %c0_i32_1 = arith.constant 0 : i32
    return %c0_i32, %c0_i32_0 : i32, i32
  }
  func.func @transform_13(%arg0: i32) -> (i32, i32) {
    %c0_i32 = arith.constant 0 : i32
    %c0_i32_0 = arith.constant 0 : i32
    %c0_i32_1 = arith.constant 0 : i32
    return %c0_i32, %c0_i32_0 : i32, i32
  }
  func.func @transform_14(%arg0: i32) -> (i32, i32) {
    %c0_i32 = arith.constant 0 : i32
    %c0_i32_0 = arith.constant 0 : i32
    %c0_i32_1 = arith.constant 0 : i32
    return %c0_i32, %c0_i32_0 : i32, i32
  }
  func.func @transform_15(%arg0: i32) -> (i32, i32) {
    %c0_i32 = arith.constant 0 : i32
    %c0_i32_0 = arith.constant 0 : i32
    %c0_i32_1 = arith.constant 0 : i32
    return %c0_i32, %c0_i32_0 : i32, i32
  }
  func.func @transform_16(%arg0: i32) -> (i32, i32) {
    %c0_i32 = arith.constant 0 : i32
    %c0_i32_0 = arith.constant 0 : i32
    %c0_i32_1 = arith.constant 0 : i32
    return %c0_i32, %c0_i32_0 : i32, i32
  }
  func.func @transform_17(%arg0: i32) -> (i32, i32) {
    %c0_i32 = arith.constant 0 : i32
    %c0_i32_0 = arith.constant 0 : i32
    %c0_i32_1 = arith.constant 0 : i32
    return %c0_i32, %c0_i32_0 : i32, i32
  }
  func.func @transform_18(%arg0: i32) -> (i32, i32) {
    %c0_i32 = arith.constant 0 : i32
    %c0_i32_0 = arith.constant 0 : i32
    %c0_i32_1 = arith.constant 0 : i32
    return %c0_i32, %c0_i32_0 : i32, i32
  }
  func.func @transform_19(%arg0: i32) -> (i32, i32) {
    %c0_i32 = arith.constant 0 : i32
    %c0_i32_0 = arith.constant 0 : i32
    %c0_i32_1 = arith.constant 0 : i32
    return %c0_i32, %c0_i32_0 : i32, i32
  }
  func.func @transform_20(%arg0: i32) -> (i32, i32) {
    %c0_i32 = arith.constant 0 : i32
    %c0_i32_0 = arith.constant 0 : i32
    %c0_i32_1 = arith.constant 0 : i32
    return %c0_i32, %c0_i32_0 : i32, i32
  }
  func.func @transform_21(%arg0: i32) -> (i32, i32) {
    %c0_i32 = arith.constant 0 : i32
    %c0_i32_0 = arith.constant 0 : i32
    %c0_i32_1 = arith.constant 0 : i32
    return %c0_i32, %c0_i32_0 : i32, i32
  }
  func.func @transform_22(%arg0: i32) -> (i32, i32) {
    %c0_i32 = arith.constant 0 : i32
    %c0_i32_0 = arith.constant 0 : i32
    %c0_i32_1 = arith.constant 0 : i32
    return %c0_i32, %c0_i32_0 : i32, i32
  }
  func.func @transform_23(%arg0: i32) -> (i32, i32) {
    %c0_i32 = arith.constant 0 : i32
    %c0_i32_0 = arith.constant 0 : i32
    %c0_i32_1 = arith.constant 0 : i32
    return %c0_i32, %c0_i32_0 : i32, i32
  }
  func.func @transform_24(%arg0: i32) -> (i32, i32, i32) {
    %c0_i32 = arith.constant 0 : i32
    %c0_i32_0 = arith.constant 0 : i32
    %c0_i32_1 = arith.constant 0 : i32
    return %arg0, %c0_i32, %c0_i32_0 : i32, i32, i32
  }
  func.func @transform_25(%arg0: i32) -> (i32, i32, i32) {
    %c0_i32 = arith.constant 0 : i32
    %c0_i32_0 = arith.constant 0 : i32
    %c0_i32_1 = arith.constant 0 : i32
    return %arg0, %c0_i32, %c0_i32_0 : i32, i32, i32
  }
}

module attributes {stable_mosaic.version = 11 : i64} {
  func.func @_fnet_decoder_layer_kernel(%arg0: i32, %arg1: memref<1x16x32xf32, #tpu.memory_space<vmem>>, %arg2: memref<1x8x32xf32, #tpu.memory_space<vmem>>, %arg3: memref<32x32xbf16, #tpu.memory_space<vmem>>, %arg4: memref<32x32xbf16, #tpu.memory_space<vmem>>, %arg5: memref<16x32xbf16, #tpu.memory_space<vmem>>, %arg6: memref<8x16xbf16, #tpu.memory_space<vmem>>, %arg7: memref<1x32xf32, #tpu.memory_space<vmem>>, %arg8: memref<1x32xf32, #tpu.memory_space<vmem>>, %arg9: memref<1x32xf32, #tpu.memory_space<vmem>>, %arg10: memref<1x32xf32, #tpu.memory_space<vmem>>, %arg11: memref<32x64xbf16, #tpu.memory_space<vmem>>, %arg12: memref<1x64xf32, #tpu.memory_space<vmem>>, %arg13: memref<64x32xbf16, #tpu.memory_space<vmem>>, %arg14: memref<1x32xf32, #tpu.memory_space<vmem>>, %arg15: memref<1x32xf32, #tpu.memory_space<vmem>>, %arg16: memref<1x32xf32, #tpu.memory_space<vmem>>, %arg17: memref<64x1xf32, #tpu.memory_space<vmem>>, %arg18: memref<64x1xf32, #tpu.memory_space<vmem>>, %arg19: memref<64x64xbf16, #tpu.memory_space<vmem>>, %arg20: memref<64x1xf32, #tpu.memory_space<vmem>>, %arg21: memref<64x64xbf16, #tpu.memory_space<vmem>>, %arg22: memref<64x1xf32, #tpu.memory_space<vmem>>, %arg23: memref<64x8xbf16, #tpu.memory_space<vmem>>, %arg24: memref<8x64xbf16, #tpu.memory_space<vmem>>, %arg25: memref<1x16x32xf32, #tpu.memory_space<vmem>>, %arg26: memref<1x8x32xf32, #tpu.memory_space<vmem>>) attributes {dimension_semantics = [#tpu.dimension_semantics<parallel>], iteration_bounds = array<i64: 2>, scalar_prefetch = 0 : i64, scratch_operands = 0 : i64, tpu.core_type = #tpu.core_type<tc>, window_params = [{transform_indices = @transform_0, window_bounds = array<i64: 1, 16, 32>}, {transform_indices = @transform_1, window_bounds = array<i64: 1, 8, 32>}, {pipeline_mode = #tpu.pipeline_mode<synchronous>, transform_indices = @transform_2, window_bounds = array<i64: 32, 32>}, {pipeline_mode = #tpu.pipeline_mode<synchronous>, transform_indices = @transform_3, window_bounds = array<i64: 32, 32>}, {pipeline_mode = #tpu.pipeline_mode<synchronous>, transform_indices = @transform_4, window_bounds = array<i64: 16, 32>}, {pipeline_mode = #tpu.pipeline_mode<synchronous>, transform_indices = @transform_5, window_bounds = array<i64: 8, 16>}, {pipeline_mode = #tpu.pipeline_mode<synchronous>, transform_indices = @transform_6, window_bounds = array<i64: 1, 32>}, {pipeline_mode = #tpu.pipeline_mode<synchronous>, transform_indices = @transform_7, window_bounds = array<i64: 1, 32>}, {pipeline_mode = #tpu.pipeline_mode<synchronous>, transform_indices = @transform_8, window_bounds = array<i64: 1, 32>}, {pipeline_mode = #tpu.pipeline_mode<synchronous>, transform_indices = @transform_9, window_bounds = array<i64: 1, 32>}, {pipeline_mode = #tpu.pipeline_mode<synchronous>, transform_indices = @transform_10, window_bounds = array<i64: 32, 64>}, {pipeline_mode = #tpu.pipeline_mode<synchronous>, transform_indices = @transform_11, window_bounds = array<i64: 1, 64>}, {pipeline_mode = #tpu.pipeline_mode<synchronous>, transform_indices = @transform_12, window_bounds = array<i64: 64, 32>}, {pipeline_mode = #tpu.pipeline_mode<synchronous>, transform_indices = @transform_13, window_bounds = array<i64: 1, 32>}, {pipeline_mode = #tpu.pipeline_mode<synchronous>, transform_indices = @transform_14, window_bounds = array<i64: 1, 32>}, {pipeline_mode = #tpu.pipeline_mode<synchronous>, transform_indices = @transform_15, window_bounds = array<i64: 1, 32>}, {pipeline_mode = #tpu.pipeline_mode<synchronous>, transform_indices = @transform_16, window_bounds = array<i64: 64, 1>}, {pipeline_mode = #tpu.pipeline_mode<synchronous>, transform_indices = @transform_17, window_bounds = array<i64: 64, 1>}, {pipeline_mode = #tpu.pipeline_mode<synchronous>, transform_indices = @transform_18, window_bounds = array<i64: 64, 64>}, {pipeline_mode = #tpu.pipeline_mode<synchronous>, transform_indices = @transform_19, window_bounds = array<i64: 64, 1>}, {pipeline_mode = #tpu.pipeline_mode<synchronous>, transform_indices = @transform_20, window_bounds = array<i64: 64, 64>}, {pipeline_mode = #tpu.pipeline_mode<synchronous>, transform_indices = @transform_21, window_bounds = array<i64: 64, 1>}, {pipeline_mode = #tpu.pipeline_mode<synchronous>, transform_indices = @transform_22, window_bounds = array<i64: 64, 8>}, {pipeline_mode = #tpu.pipeline_mode<synchronous>, transform_indices = @transform_23, window_bounds = array<i64: 8, 64>}, {transform_indices = @transform_24, window_bounds = array<i64: 1, 16, 32>}, {transform_indices = @transform_25, window_bounds = array<i64: 1, 8, 32>}]} {
    %c0 = arith.constant 0 : index
    %c0_0 = arith.constant 0 : index
    %0 = vector.load %arg3[%c0, %c0_0] : memref<32x32xbf16, #tpu.memory_space<vmem>>, vector<32x32xbf16>
    %c0_1 = arith.constant 0 : index
    %c0_2 = arith.constant 0 : index
    %1 = vector.load %arg4[%c0_1, %c0_2] : memref<32x32xbf16, #tpu.memory_space<vmem>>, vector<32x32xbf16>
    %c0_3 = arith.constant 0 : index
    %c0_4 = arith.constant 0 : index
    %2 = vector.load %arg5[%c0_3, %c0_4] : memref<16x32xbf16, #tpu.memory_space<vmem>>, vector<16x32xbf16>
    %c0_5 = arith.constant 0 : index
    %c0_6 = arith.constant 0 : index
    %3 = vector.load %arg6[%c0_5, %c0_6] : memref<8x16xbf16, #tpu.memory_space<vmem>>, vector<8x16xbf16>
    %c0_7 = arith.constant 0 : index
    %c0_8 = arith.constant 0 : index
    %4 = vector.load %arg7[%c0_7, %c0_8] : memref<1x32xf32, #tpu.memory_space<vmem>>, vector<1x32xf32>
    %c0_9 = arith.constant 0 : index
    %c0_10 = arith.constant 0 : index
    %5 = vector.load %arg8[%c0_9, %c0_10] : memref<1x32xf32, #tpu.memory_space<vmem>>, vector<1x32xf32>
    %c0_11 = arith.constant 0 : index
    %c0_12 = arith.constant 0 : index
    %6 = vector.load %arg9[%c0_11, %c0_12] : memref<1x32xf32, #tpu.memory_space<vmem>>, vector<1x32xf32>
    %c0_13 = arith.constant 0 : index
    %c0_14 = arith.constant 0 : index
    %7 = vector.load %arg10[%c0_13, %c0_14] : memref<1x32xf32, #tpu.memory_space<vmem>>, vector<1x32xf32>
    %c0_15 = arith.constant 0 : index
    %c0_16 = arith.constant 0 : index
    %8 = vector.load %arg11[%c0_15, %c0_16] : memref<32x64xbf16, #tpu.memory_space<vmem>>, vector<32x64xbf16>
    %c0_17 = arith.constant 0 : index
    %c0_18 = arith.constant 0 : index
    %9 = vector.load %arg12[%c0_17, %c0_18] : memref<1x64xf32, #tpu.memory_space<vmem>>, vector<1x64xf32>
    %c0_19 = arith.constant 0 : index
    %c0_20 = arith.constant 0 : index
    %10 = vector.load %arg13[%c0_19, %c0_20] : memref<64x32xbf16, #tpu.memory_space<vmem>>, vector<64x32xbf16>
    %c0_21 = arith.constant 0 : index
    %c0_22 = arith.constant 0 : index
    %11 = vector.load %arg14[%c0_21, %c0_22] : memref<1x32xf32, #tpu.memory_space<vmem>>, vector<1x32xf32>
    %c0_23 = arith.constant 0 : index
    %c0_24 = arith.constant 0 : index
    %12 = vector.load %arg15[%c0_23, %c0_24] : memref<1x32xf32, #tpu.memory_space<vmem>>, vector<1x32xf32>
    %c0_25 = arith.constant 0 : index
    %c0_26 = arith.constant 0 : index
    %13 = vector.load %arg16[%c0_25, %c0_26] : memref<1x32xf32, #tpu.memory_space<vmem>>, vector<1x32xf32>
    %c0_27 = arith.constant 0 : index
    %c0_28 = arith.constant 0 : index
    %14 = vector.load %arg17[%c0_27, %c0_28] : memref<64x1xf32, #tpu.memory_space<vmem>>, vector<64x1xf32>
    %c0_29 = arith.constant 0 : index
    %c0_30 = arith.constant 0 : index
    %15 = vector.load %arg18[%c0_29, %c0_30] : memref<64x1xf32, #tpu.memory_space<vmem>>, vector<64x1xf32>
    %c0_31 = arith.constant 0 : index
    %c0_32 = arith.constant 0 : index
    %16 = vector.load %arg19[%c0_31, %c0_32] : memref<64x64xbf16, #tpu.memory_space<vmem>>, vector<64x64xbf16>
    %c0_33 = arith.constant 0 : index
    %c0_34 = arith.constant 0 : index
    %17 = vector.load %arg20[%c0_33, %c0_34] : memref<64x1xf32, #tpu.memory_space<vmem>>, vector<64x1xf32>
    %c0_35 = arith.constant 0 : index
    %c0_36 = arith.constant 0 : index
    %18 = vector.load %arg21[%c0_35, %c0_36] : memref<64x64xbf16, #tpu.memory_space<vmem>>, vector<64x64xbf16>
    %c0_37 = arith.constant 0 : index
    %c0_38 = arith.constant 0 : index
    %19 = vector.load %arg22[%c0_37, %c0_38] : memref<64x1xf32, #tpu.memory_space<vmem>>, vector<64x1xf32>
    %c0_39 = arith.constant 0 : index
    %c0_40 = arith.constant 0 : index
    %20 = vector.load %arg23[%c0_39, %c0_40] : memref<64x8xbf16, #tpu.memory_space<vmem>>, vector<64x8xbf16>
    %c0_41 = arith.constant 0 : index
    %c0_42 = arith.constant 0 : index
    %21 = vector.load %arg24[%c0_41, %c0_42] : memref<8x64xbf16, #tpu.memory_space<vmem>>, vector<8x64xbf16>
    %c0_43 = arith.constant 0 : index
    %c0_44 = arith.constant 0 : index
    %c0_45 = arith.constant 0 : index
    %22 = vector.load %arg1[%c0_43, %c0_44, %c0_45] : memref<1x16x32xf32, #tpu.memory_space<vmem>>, vector<1x16x32xf32>
    %23 = vector.shape_cast %22 : vector<1x16x32xf32> to vector<16x32xf32>
    %c0_46 = arith.constant 0 : index
    %c0_47 = arith.constant 0 : index
    %c0_48 = arith.constant 0 : index
    %24 = vector.load %arg2[%c0_46, %c0_47, %c0_48] : memref<1x8x32xf32, #tpu.memory_space<vmem>>, vector<1x8x32xf32>
    %25 = vector.shape_cast %24 : vector<1x8x32xf32> to vector<8x32xf32>
    %cst = arith.constant dense<0.000000e+00> : vector<16xf32>
    %26 = vector.multi_reduction <add>, %23, %cst [1] : vector<16x32xf32> to vector<16xf32>
    %27 = vector.shape_cast %26 : vector<16xf32> to vector<16x1xf32>
    %cst_49 = arith.constant 3.200000e+01 : f32
    %28 = vector.broadcast %cst_49 : f32 to vector<16x1xf32>
    %29 = arith.divf %27, %28 : vector<16x1xf32>
    %30 = vector.broadcast %29 : vector<16x1xf32> to vector<16x32xf32>
    %31 = arith.subf %23, %30 : vector<16x32xf32>
    %32 = arith.mulf %31, %31 : vector<16x32xf32>
    %cst_50 = arith.constant dense<0.000000e+00> : vector<16xf32>
    %33 = vector.multi_reduction <add>, %32, %cst_50 [1] : vector<16x32xf32> to vector<16xf32>
    %34 = vector.shape_cast %33 : vector<16xf32> to vector<16x1xf32>
    %cst_51 = arith.constant 3.200000e+01 : f32
    %35 = vector.broadcast %cst_51 : f32 to vector<16x1xf32>
    %36 = arith.divf %34, %35 : vector<16x1xf32>
    %37 = vector.broadcast %29 : vector<16x1xf32> to vector<16x32xf32>
    %38 = arith.subf %23, %37 : vector<16x32xf32>
    %cst_52 = arith.constant 9.99999974E-6 : f32
    %39 = vector.broadcast %cst_52 : f32 to vector<16x1xf32>
    %40 = arith.addf %36, %39 : vector<16x1xf32>
    %41 = math.rsqrt %40 : vector<16x1xf32>
    %42 = vector.broadcast %41 : vector<16x1xf32> to vector<16x32xf32>
    %43 = arith.mulf %38, %42 : vector<16x32xf32>
    %44 = vector.broadcast %4 : vector<1x32xf32> to vector<16x32xf32>
    %45 = arith.mulf %43, %44 : vector<16x32xf32>
    %46 = vector.broadcast %5 : vector<1x32xf32> to vector<16x32xf32>
    %47 = arith.addf %45, %46 : vector<16x32xf32>
    %48 = arith.truncf %47 : vector<16x32xf32> to vector<16x32xbf16>
    %cst_53 = arith.constant dense<0.000000e+00> : vector<16x32xf32>
    %49 = tpu.matmul %48, %0, %cst_53 {dimension_numbers = #tpu.dot_dimension_numbers<[1], [0], [0], [1], [0, 0, 1, 1], [], []>} : vector<16x32xbf16>, vector<32x32xbf16>, vector<16x32xf32> -> vector<16x32xf32>
    %cst_54 = arith.constant dense<0.000000e+00> : vector<16x32xf32>
    %50 = tpu.matmul %48, %1, %cst_54 {dimension_numbers = #tpu.dot_dimension_numbers<[1], [0], [0], [1], [0, 0, 1, 1], [], []>} : vector<16x32xbf16>, vector<32x32xbf16>, vector<16x32xf32> -> vector<16x32xf32>
    %51 = tpu.concatenate %49, %50 in 0 : vector<16x32xf32>, vector<16x32xf32> -> vector<32x32xf32>
    %52 = arith.truncf %51 : vector<32x32xf32> to vector<32x32xbf16>
    %cst_55 = arith.constant dense<0.000000e+00> : vector<16x32xf32>
    %53 = tpu.matmul %2, %52, %cst_55 {dimension_numbers = #tpu.dot_dimension_numbers<[1], [0], [0], [1], [0, 0, 1, 1], [], []>} : vector<16x32xbf16>, vector<32x32xbf16>, vector<16x32xf32> -> vector<16x32xf32>
    %54 = arith.addf %23, %53 : vector<16x32xf32>
    %cst_56 = arith.constant dense<0.000000e+00> : vector<16xf32>
    %55 = vector.multi_reduction <add>, %54, %cst_56 [1] : vector<16x32xf32> to vector<16xf32>
    %56 = vector.shape_cast %55 : vector<16xf32> to vector<16x1xf32>
    %cst_57 = arith.constant 3.200000e+01 : f32
    %57 = vector.broadcast %cst_57 : f32 to vector<16x1xf32>
    %58 = arith.divf %56, %57 : vector<16x1xf32>
    %59 = vector.broadcast %58 : vector<16x1xf32> to vector<16x32xf32>
    %60 = arith.subf %54, %59 : vector<16x32xf32>
    %61 = arith.mulf %60, %60 : vector<16x32xf32>
    %cst_58 = arith.constant dense<0.000000e+00> : vector<16xf32>
    %62 = vector.multi_reduction <add>, %61, %cst_58 [1] : vector<16x32xf32> to vector<16xf32>
    %63 = vector.shape_cast %62 : vector<16xf32> to vector<16x1xf32>
    %cst_59 = arith.constant 3.200000e+01 : f32
    %64 = vector.broadcast %cst_59 : f32 to vector<16x1xf32>
    %65 = arith.divf %63, %64 : vector<16x1xf32>
    %66 = vector.broadcast %58 : vector<16x1xf32> to vector<16x32xf32>
    %67 = arith.subf %54, %66 : vector<16x32xf32>
    %cst_60 = arith.constant 9.99999974E-6 : f32
    %68 = vector.broadcast %cst_60 : f32 to vector<16x1xf32>
    %69 = arith.addf %65, %68 : vector<16x1xf32>
    %70 = math.rsqrt %69 : vector<16x1xf32>
    %71 = vector.broadcast %70 : vector<16x1xf32> to vector<16x32xf32>
    %72 = arith.mulf %67, %71 : vector<16x32xf32>
    %73 = vector.broadcast %6 : vector<1x32xf32> to vector<16x32xf32>
    %74 = arith.mulf %72, %73 : vector<16x32xf32>
    %75 = vector.broadcast %7 : vector<1x32xf32> to vector<16x32xf32>
    %76 = arith.addf %74, %75 : vector<16x32xf32>
    %77 = arith.truncf %76 : vector<16x32xf32> to vector<16x32xbf16>
    %cst_61 = arith.constant dense<0.000000e+00> : vector<16x64xf32>
    %78 = tpu.matmul %77, %8, %cst_61 {dimension_numbers = #tpu.dot_dimension_numbers<[1], [0], [0], [1], [0, 0, 1, 1], [], []>} : vector<16x32xbf16>, vector<32x64xbf16>, vector<16x64xf32> -> vector<16x64xf32>
    %79 = vector.broadcast %9 : vector<1x64xf32> to vector<16x64xf32>
    %80 = arith.addf %78, %79 : vector<16x64xf32>
    %cst_62 = arith.constant 5.000000e-01 : f32
    %81 = vector.broadcast %cst_62 : f32 to vector<16x64xf32>
    %82 = arith.mulf %81, %80 : vector<16x64xf32>
    %cst_63 = arith.constant 4.471500e-02 : f32
    %83 = vector.broadcast %cst_63 : f32 to vector<16x64xf32>
    %84 = arith.mulf %83, %80 : vector<16x64xf32>
    %85 = arith.mulf %84, %80 : vector<16x64xf32>
    %86 = arith.mulf %85, %80 : vector<16x64xf32>
    %87 = arith.addf %80, %86 : vector<16x64xf32>
    %cst_64 = arith.constant 0.797884583 : f32
    %88 = vector.broadcast %cst_64 : f32 to vector<16x64xf32>
    %89 = arith.mulf %88, %87 : vector<16x64xf32>
    %90 = math.tanh %89 : vector<16x64xf32>
    %cst_65 = arith.constant 1.000000e+00 : f32
    %91 = vector.broadcast %cst_65 : f32 to vector<16x64xf32>
    %92 = arith.addf %91, %90 : vector<16x64xf32>
    %93 = arith.mulf %82, %92 : vector<16x64xf32>
    %94 = arith.truncf %93 : vector<16x64xf32> to vector<16x64xbf16>
    %cst_66 = arith.constant dense<0.000000e+00> : vector<16x32xf32>
    %95 = tpu.matmul %94, %10, %cst_66 {dimension_numbers = #tpu.dot_dimension_numbers<[1], [0], [0], [1], [0, 0, 1, 1], [], []>} : vector<16x64xbf16>, vector<64x32xbf16>, vector<16x32xf32> -> vector<16x32xf32>
    %96 = vector.broadcast %11 : vector<1x32xf32> to vector<16x32xf32>
    %97 = arith.addf %95, %96 : vector<16x32xf32>
    %98 = arith.addf %54, %97 : vector<16x32xf32>
    %cst_67 = arith.constant dense<0.000000e+00> : vector<8xf32>
    %99 = vector.multi_reduction <add>, %25, %cst_67 [1] : vector<8x32xf32> to vector<8xf32>
    %100 = vector.shape_cast %99 : vector<8xf32> to vector<8x1xf32>
    %cst_68 = arith.constant 3.200000e+01 : f32
    %101 = vector.broadcast %cst_68 : f32 to vector<8x1xf32>
    %102 = arith.divf %100, %101 : vector<8x1xf32>
    %103 = vector.broadcast %102 : vector<8x1xf32> to vector<8x32xf32>
    %104 = arith.subf %25, %103 : vector<8x32xf32>
    %105 = arith.mulf %104, %104 : vector<8x32xf32>
    %cst_69 = arith.constant dense<0.000000e+00> : vector<8xf32>
    %106 = vector.multi_reduction <add>, %105, %cst_69 [1] : vector<8x32xf32> to vector<8xf32>
    %107 = vector.shape_cast %106 : vector<8xf32> to vector<8x1xf32>
    %cst_70 = arith.constant 3.200000e+01 : f32
    %108 = vector.broadcast %cst_70 : f32 to vector<8x1xf32>
    %109 = arith.divf %107, %108 : vector<8x1xf32>
    %110 = vector.broadcast %102 : vector<8x1xf32> to vector<8x32xf32>
    %111 = arith.subf %25, %110 : vector<8x32xf32>
    %cst_71 = arith.constant 9.99999974E-6 : f32
    %112 = vector.broadcast %cst_71 : f32 to vector<8x1xf32>
    %113 = arith.addf %109, %112 : vector<8x1xf32>
    %114 = math.rsqrt %113 : vector<8x1xf32>
    %115 = vector.broadcast %114 : vector<8x1xf32> to vector<8x32xf32>
    %116 = arith.mulf %111, %115 : vector<8x32xf32>
    %117 = vector.broadcast %12 : vector<1x32xf32> to vector<8x32xf32>
    %118 = arith.mulf %116, %117 : vector<8x32xf32>
    %119 = vector.broadcast %13 : vector<1x32xf32> to vector<8x32xf32>
    %120 = arith.addf %118, %119 : vector<8x32xf32>
    %121 = arith.truncf %120 : vector<8x32xf32> to vector<8x32xbf16>
    %cst_72 = arith.constant dense<0.000000e+00> : vector<8x32xf32>
    %122 = tpu.matmul %121, %0, %cst_72 {dimension_numbers = #tpu.dot_dimension_numbers<[1], [0], [0], [1], [0, 0, 1, 1], [], []>} : vector<8x32xbf16>, vector<32x32xbf16>, vector<8x32xf32> -> vector<8x32xf32>
    %cst_73 = arith.constant dense<0.000000e+00> : vector<8x32xf32>
    %123 = tpu.matmul %121, %1, %cst_73 {dimension_numbers = #tpu.dot_dimension_numbers<[1], [0], [0], [1], [0, 0, 1, 1], [], []>} : vector<8x32xbf16>, vector<32x32xbf16>, vector<8x32xf32> -> vector<8x32xf32>
    %124 = tpu.concatenate %122, %123 in 0 : vector<8x32xf32>, vector<8x32xf32> -> vector<16x32xf32>
    %125 = arith.truncf %124 : vector<16x32xf32> to vector<16x32xbf16>
    %cst_74 = arith.constant dense<0.000000e+00> : vector<8x32xf32>
    %126 = tpu.matmul %3, %125, %cst_74 {dimension_numbers = #tpu.dot_dimension_numbers<[1], [0], [0], [1], [0, 0, 1, 1], [], []>} : vector<8x16xbf16>, vector<16x32xbf16>, vector<8x32xf32> -> vector<8x32xf32>
    %127 = arith.truncf %126 : vector<8x32xf32> to vector<8x32xbf16>
    %cst_75 = arith.constant dense<0.000000e+00> : vector<64x32xf32>
    %128 = tpu.matmul %20, %127, %cst_75 {dimension_numbers = #tpu.dot_dimension_numbers<[1], [0], [0], [1], [0, 0, 1, 1], [], []>} : vector<64x8xbf16>, vector<8x32xbf16>, vector<64x32xf32> -> vector<64x32xf32>
    %cst_76 = arith.constant dense<0.000000e+00> : vector<32xf32>
    %129 = vector.multi_reduction <add>, %128, %cst_76 [0] : vector<64x32xf32> to vector<32xf32>
    %130 = vector.shape_cast %129 : vector<32xf32> to vector<1x32xf32>
    %cst_77 = arith.constant 6.400000e+01 : f32
    %131 = vector.broadcast %cst_77 : f32 to vector<1x32xf32>
    %132 = arith.divf %130, %131 : vector<1x32xf32>
    %133 = vector.broadcast %132 : vector<1x32xf32> to vector<64x32xf32>
    %134 = arith.subf %128, %133 : vector<64x32xf32>
    %135 = arith.mulf %134, %134 : vector<64x32xf32>
    %cst_78 = arith.constant dense<0.000000e+00> : vector<32xf32>
    %136 = vector.multi_reduction <add>, %135, %cst_78 [0] : vector<64x32xf32> to vector<32xf32>
    %137 = vector.shape_cast %136 : vector<32xf32> to vector<1x32xf32>
    %cst_79 = arith.constant 6.400000e+01 : f32
    %138 = vector.broadcast %cst_79 : f32 to vector<1x32xf32>
    %139 = arith.divf %137, %138 : vector<1x32xf32>
    %140 = vector.broadcast %132 : vector<1x32xf32> to vector<64x32xf32>
    %141 = arith.subf %128, %140 : vector<64x32xf32>
    %cst_80 = arith.constant 9.99999974E-6 : f32
    %142 = vector.broadcast %cst_80 : f32 to vector<1x32xf32>
    %143 = arith.addf %139, %142 : vector<1x32xf32>
    %144 = math.rsqrt %143 : vector<1x32xf32>
    %145 = vector.broadcast %144 : vector<1x32xf32> to vector<64x32xf32>
    %146 = arith.mulf %141, %145 : vector<64x32xf32>
    %147 = vector.broadcast %14 : vector<64x1xf32> to vector<64x32xf32>
    %148 = arith.mulf %146, %147 : vector<64x32xf32>
    %149 = vector.broadcast %15 : vector<64x1xf32> to vector<64x32xf32>
    %150 = arith.addf %148, %149 : vector<64x32xf32>
    %151 = arith.truncf %150 : vector<64x32xf32> to vector<64x32xbf16>
    %cst_81 = arith.constant dense<0.000000e+00> : vector<64x32xf32>
    %152 = tpu.matmul %16, %151, %cst_81 {dimension_numbers = #tpu.dot_dimension_numbers<[1], [0], [0], [1], [0, 0, 1, 1], [], []>} : vector<64x64xbf16>, vector<64x32xbf16>, vector<64x32xf32> -> vector<64x32xf32>
    %153 = vector.broadcast %17 : vector<64x1xf32> to vector<64x32xf32>
    %154 = arith.addf %152, %153 : vector<64x32xf32>
    %cst_82 = arith.constant 5.000000e-01 : f32
    %155 = vector.broadcast %cst_82 : f32 to vector<64x32xf32>
    %156 = arith.mulf %155, %154 : vector<64x32xf32>
    %cst_83 = arith.constant 4.471500e-02 : f32
    %157 = vector.broadcast %cst_83 : f32 to vector<64x32xf32>
    %158 = arith.mulf %157, %154 : vector<64x32xf32>
    %159 = arith.mulf %158, %154 : vector<64x32xf32>
    %160 = arith.mulf %159, %154 : vector<64x32xf32>
    %161 = arith.addf %154, %160 : vector<64x32xf32>
    %cst_84 = arith.constant 0.797884583 : f32
    %162 = vector.broadcast %cst_84 : f32 to vector<64x32xf32>
    %163 = arith.mulf %162, %161 : vector<64x32xf32>
    %164 = math.tanh %163 : vector<64x32xf32>
    %cst_85 = arith.constant 1.000000e+00 : f32
    %165 = vector.broadcast %cst_85 : f32 to vector<64x32xf32>
    %166 = arith.addf %165, %164 : vector<64x32xf32>
    %167 = arith.mulf %156, %166 : vector<64x32xf32>
    %168 = arith.truncf %167 : vector<64x32xf32> to vector<64x32xbf16>
    %cst_86 = arith.constant dense<0.000000e+00> : vector<64x32xf32>
    %169 = tpu.matmul %18, %168, %cst_86 {dimension_numbers = #tpu.dot_dimension_numbers<[1], [0], [0], [1], [0, 0, 1, 1], [], []>} : vector<64x64xbf16>, vector<64x32xbf16>, vector<64x32xf32> -> vector<64x32xf32>
    %170 = vector.broadcast %19 : vector<64x1xf32> to vector<64x32xf32>
    %171 = arith.addf %169, %170 : vector<64x32xf32>
    %172 = arith.truncf %171 : vector<64x32xf32> to vector<64x32xbf16>
    %cst_87 = arith.constant dense<0.000000e+00> : vector<8x32xf32>
    %173 = tpu.matmul %21, %172, %cst_87 {dimension_numbers = #tpu.dot_dimension_numbers<[1], [0], [0], [1], [0, 0, 1, 1], [], []>} : vector<8x64xbf16>, vector<64x32xbf16>, vector<8x32xf32> -> vector<8x32xf32>
    %cst_88 = arith.constant 0.000000e+00 : f32
    %174 = vector.broadcast %cst_88 : f32 to vector<8x32xf32>
    %175 = tpu.concatenate %174, %173 in 0 : vector<8x32xf32>, vector<8x32xf32> -> vector<16x32xf32>
    %176 = arith.addf %98, %175 : vector<16x32xf32>
    %c0_89 = arith.constant 0 : index
    %c0_90 = arith.constant 0 : index
    %c0_91 = arith.constant 0 : index
    %177 = vector.load %arg25[%c0_89, %c0_90, %c0_91] : memref<1x16x32xf32, #tpu.memory_space<vmem>>, vector<1x16x32xf32>
    %178 = vector.shape_cast %177 : vector<1x16x32xf32> to vector<16x32xf32>
    %179 = vector.shape_cast %176 : vector<16x32xf32> to vector<1x16x32xf32>
    tpu.vector_store %arg25[%c0_89, %c0_90, %c0_91], %179 {strides = array<i32>} : memref<1x16x32xf32, #tpu.memory_space<vmem>>, vector<1x16x32xf32>,
    %c0_92 = arith.constant 0 : index
    %c0_93 = arith.constant 0 : index
    %c0_94 = arith.constant 0 : index
    %180 = vector.load %arg26[%c0_92, %c0_93, %c0_94] : memref<1x8x32xf32, #tpu.memory_space<vmem>>, vector<1x8x32xf32>
    %181 = vector.shape_cast %180 : vector<1x8x32xf32> to vector<8x32xf32>
    %182 = vector.shape_cast %126 : vector<8x32xf32> to vector<1x8x32xf32>
    tpu.vector_store %arg26[%c0_92, %c0_93, %c0_94], %182 {strides = array<i32>} : memref<1x8x32xf32, #tpu.memory_space<vmem>>, vector<1x8x32xf32>,
    return
  }
  func.func @transform_0(%arg0: i32) -> (i32, i32, i32) {
    %c0_i32 = arith.constant 0 : i32
    %c0_i32_0 = arith.constant 0 : i32
    %c0_i32_1 = arith.constant 0 : i32
    return %arg0, %c0_i32, %c0_i32_0 : i32, i32, i32
  }
  func.func @transform_1(%arg0: i32) -> (i32, i32, i32) {
    %c0_i32 = arith.constant 0 : i32
    %c0_i32_0 = arith.constant 0 : i32
    %c0_i32_1 = arith.constant 0 : i32
    return %arg0, %c0_i32, %c0_i32_0 : i32, i32, i32
  }
  func.func @transform_2(%arg0: i32) -> (i32, i32) {
    %c0_i32 = arith.constant 0 : i32
    %c0_i32_0 = arith.constant 0 : i32
    %c0_i32_1 = arith.constant 0 : i32
    return %c0_i32, %c0_i32_0 : i32, i32
  }
  func.func @transform_3(%arg0: i32) -> (i32, i32) {
    %c0_i32 = arith.constant 0 : i32
    %c0_i32_0 = arith.constant 0 : i32
    %c0_i32_1 = arith.constant 0 : i32
    return %c0_i32, %c0_i32_0 : i32, i32
  }
  func.func @transform_4(%arg0: i32) -> (i32, i32) {
    %c0_i32 = arith.constant 0 : i32
    %c0_i32_0 = arith.constant 0 : i32
    %c0_i32_1 = arith.constant 0 : i32
    return %c0_i32, %c0_i32_0 : i32, i32
  }
  func.func @transform_5(%arg0: i32) -> (i32, i32) {
    %c0_i32 = arith.constant 0 : i32
    %c0_i32_0 = arith.constant 0 : i32
    %c0_i32_1 = arith.constant 0 : i32
    return %c0_i32, %c0_i32_0 : i32, i32
  }
  func.func @transform_6(%arg0: i32) -> (i32, i32) {
    %c0_i32 = arith.constant 0 : i32
    %c0_i32_0 = arith.constant 0 : i32
    %c0_i32_1 = arith.constant 0 : i32
    return %c0_i32, %c0_i32_0 : i32, i32
  }
  func.func @transform_7(%arg0: i32) -> (i32, i32) {
    %c0_i32 = arith.constant 0 : i32
    %c0_i32_0 = arith.constant 0 : i32
    %c0_i32_1 = arith.constant 0 : i32
    return %c0_i32, %c0_i32_0 : i32, i32
  }
  func.func @transform_8(%arg0: i32) -> (i32, i32) {
    %c0_i32 = arith.constant 0 : i32
    %c0_i32_0 = arith.constant 0 : i32
    %c0_i32_1 = arith.constant 0 : i32
    return %c0_i32, %c0_i32_0 : i32, i32
  }
  func.func @transform_9(%arg0: i32) -> (i32, i32) {
    %c0_i32 = arith.constant 0 : i32
    %c0_i32_0 = arith.constant 0 : i32
    %c0_i32_1 = arith.constant 0 : i32
    return %c0_i32, %c0_i32_0 : i32, i32
  }
  func.func @transform_10(%arg0: i32) -> (i32, i32) {
    %c0_i32 = arith.constant 0 : i32
    %c0_i32_0 = arith.constant 0 : i32
    %c0_i32_1 = arith.constant 0 : i32
    return %c0_i32, %c0_i32_0 : i32, i32
  }
  func.func @transform_11(%arg0: i32) -> (i32, i32) {
    %c0_i32 = arith.constant 0 : i32
    %c0_i32_0 = arith.constant 0 : i32
    %c0_i32_1 = arith.constant 0 : i32
    return %c0_i32, %c0_i32_0 : i32, i32
  }
  func.func @transform_12(%arg0: i32) -> (i32, i32) {
    %c0_i32 = arith.constant 0 : i32
    %c0_i32_0 = arith.constant 0 : i32
    %c0_i32_1 = arith.constant 0 : i32
    return %c0_i32, %c0_i32_0 : i32, i32
  }
  func.func @transform_13(%arg0: i32) -> (i32, i32) {
    %c0_i32 = arith.constant 0 : i32
    %c0_i32_0 = arith.constant 0 : i32
    %c0_i32_1 = arith.constant 0 : i32
    return %c0_i32, %c0_i32_0 : i32, i32
  }
  func.func @transform_14(%arg0: i32) -> (i32, i32) {
    %c0_i32 = arith.constant 0 : i32
    %c0_i32_0 = arith.constant 0 : i32
    %c0_i32_1 = arith.constant 0 : i32
    return %c0_i32, %c0_i32_0 : i32, i32
  }
  func.func @transform_15(%arg0: i32) -> (i32, i32) {
    %c0_i32 = arith.constant 0 : i32
    %c0_i32_0 = arith.constant 0 : i32
    %c0_i32_1 = arith.constant 0 : i32
    return %c0_i32, %c0_i32_0 : i32, i32
  }
  func.func @transform_16(%arg0: i32) -> (i32, i32) {
    %c0_i32 = arith.constant 0 : i32
    %c0_i32_0 = arith.constant 0 : i32
    %c0_i32_1 = arith.constant 0 : i32
    return %c0_i32, %c0_i32_0 : i32, i32
  }
  func.func @transform_17(%arg0: i32) -> (i32, i32) {
    %c0_i32 = arith.constant 0 : i32
    %c0_i32_0 = arith.constant 0 : i32
    %c0_i32_1 = arith.constant 0 : i32
    return %c0_i32, %c0_i32_0 : i32, i32
  }
  func.func @transform_18(%arg0: i32) -> (i32, i32) {
    %c0_i32 = arith.constant 0 : i32
    %c0_i32_0 = arith.constant 0 : i32
    %c0_i32_1 = arith.constant 0 : i32
    return %c0_i32, %c0_i32_0 : i32, i32
  }
  func.func @transform_19(%arg0: i32) -> (i32, i32) {
    %c0_i32 = arith.constant 0 : i32
    %c0_i32_0 = arith.constant 0 : i32
    %c0_i32_1 = arith.constant 0 : i32
    return %c0_i32, %c0_i32_0 : i32, i32
  }
  func.func @transform_20(%arg0: i32) -> (i32, i32) {
    %c0_i32 = arith.constant 0 : i32
    %c0_i32_0 = arith.constant 0 : i32
    %c0_i32_1 = arith.constant 0 : i32
    return %c0_i32, %c0_i32_0 : i32, i32
  }
  func.func @transform_21(%arg0: i32) -> (i32, i32) {
    %c0_i32 = arith.constant 0 : i32
    %c0_i32_0 = arith.constant 0 : i32
    %c0_i32_1 = arith.constant 0 : i32
    return %c0_i32, %c0_i32_0 : i32, i32
  }
  func.func @transform_22(%arg0: i32) -> (i32, i32) {
    %c0_i32 = arith.constant 0 : i32
    %c0_i32_0 = arith.constant 0 : i32
    %c0_i32_1 = arith.constant 0 : i32
    return %c0_i32, %c0_i32_0 : i32, i32
  }
  func.func @transform_23(%arg0: i32) -> (i32, i32) {
    %c0_i32 = arith.constant 0 : i32
    %c0_i32_0 = arith.constant 0 : i32
    %c0_i32_1 = arith.constant 0 : i32
    return %c0_i32, %c0_i32_0 : i32, i32
  }
  func.func @transform_24(%arg0: i32) -> (i32, i32, i32) {
    %c0_i32 = arith.constant 0 : i32
    %c0_i32_0 = arith.constant 0 : i32
    %c0_i32_1 = arith.constant 0 : i32
    return %arg0, %c0_i32, %c0_i32_0 : i32, i32, i32
  }
  func.func @transform_25(%arg0: i32) -> (i32, i32, i32) {
    %c0_i32 = arith.constant 0 : i32
    %c0_i32_0 = arith.constant 0 : i32
    %c0_i32_1 = arith.constant 0 : i32
    return %arg0, %c0_i32, %c0_i32_0 : i32, i32, i32
  }
}

</mosaic_0001>

<bundles_post_ra>
// kernel: fnet_decoder_forward.2
= control target key start
LH: loop header
LB: loop body
LE: loop exit
PB: predicated region body
PF: predicated region fallthrough
CT: control target
= control target key end

     0   :  { %s2671_s29 = smov 0   ;;  %s3083_s0 = inlined_call_operand.vmem [shape: f32[2,16,32], index: 0, kind: input, shape index: {}]   ;;  %s3084_s1 = inlined_call_operand.vmem [shape: f32[2,8,32], index: 1, kind: input, shape index: {}]   ;;  %s3085_s2 = inlined_call_operand.vmem [shape: bf16[32,32], index: 2, kind: input, shape index: {}]   ;;  %s3086_s3 = inlined_call_operand.vmem [shape: bf16[32,32], index: 3, kind: input, shape index: {}]   ;;  %s3087_s4 = inlined_call_operand.vmem [shape: bf16[16,32], index: 4, kind: input, shape index: {}]   ;;  %s3088_s5 = inlined_call_operand.vmem [shape: bf16[8,16], index: 5, kind: input, shape index: {}]   ;;  %s3089_s6 = inlined_call_operand.vmem [shape: f32[1,32], index: 6, kind: input, shape index: {}]   ;;  %s3090_s7 = inlined_call_operand.vmem [shape: f32[1,32], index: 7, kind: input, shape index: {}]   ;;  %s3091_s8 = inlined_call_operand.vmem [shape: f32[1,32], index: 8, kind: input, shape index: {}]   ;;  %s3092_s9 = inlined_call_operand.vmem [shape: f32[1,32], index: 9, kind: input, shape index: {}]   ;;  %s3093_s10 = inlined_call_operand.vmem [shape: bf16[32,64], index: 10, kind: input, shape index: {}]   ;;  %s3094_s11 = inlined_call_operand.vmem [shape: f32[1,64], index: 11, kind: input, shape index: {}]   ;;  %s3095_s12 = inlined_call_operand.vmem [shape: bf16[64,32], index: 12, kind: input, shape index: {}]   ;;  %s3096_s13 = inlined_call_operand.vmem [shape: f32[1,32], index: 13, kind: input, shape index: {}]   ;;  %s3097_s14 = inlined_call_operand.vmem [shape: f32[1,32], index: 14, kind: input, shape index: {}]   ;;  %s3098_s15 = inlined_call_operand.vmem [shape: f32[1,32], index: 15, kind: input, shape index: {}]   ;;  %s3099_s16 = inlined_call_operand.vmem [shape: f32[64,1], index: 16, kind: input, shape index: {}]   ;;  %s3100_s17 = inlined_call_operand.vmem [shape: f32[64,1], index: 17, kind: input, shape index: {}]   ;;  %s3101_s18 = inlined_call_operand.vmem [shape: bf16[64,64], index: 18, kind: input, shape index: {}]   ;;  %s3102_s19 = inlined_call_operand.vmem [shape: f32[64,1], index: 19, kind: input, shape index: {}]   ;;  %s3103_s20 = inlined_call_operand.vmem [shape: bf16[64,64], index: 20, kind: input, shape index: {}]   ;;  %s3104_s21 = inlined_call_operand.vmem [shape: f32[64,1], index: 21, kind: input, shape index: {}]   ;;  %s3105_s22 = inlined_call_operand.vmem [shape: bf16[64,8], index: 22, kind: input, shape index: {}]   ;;  %s3106_s23 = inlined_call_operand.vmem [shape: bf16[8,64], index: 23, kind: input, shape index: {}]   ;;  %s3107_s24 = inlined_call_operand.vmem [shape: f32[2,16,32], index: 24, kind: output, shape index: {0}]   ;;  %s3108_s25 = inlined_call_operand.vmem [shape: f32[2,8,32], index: 25, kind: output, shape index: {1}]  }
   0x1   :  { %3112 = sst [smem:[#allocation2_spill]] %s3083_s0 }
   0x2   :  { %3113 = sst [smem:[#allocation3_spill]] %s3084_s1 }
   0x3   :  { %3114 = sst [smem:[#allocation4_spill]] %s3085_s2 }
   0x4   :  { %3115 = sst [smem:[#allocation5_spill]] %s3086_s3 }
   0x5   :  { %3116 = sst [smem:[#allocation6_spill]] %s3087_s4 }
   0x6   :  { %3117 = sst [smem:[#allocation7_spill]] %s3088_s5 }
   0x7   :  { %3118 = sst [smem:[#allocation8_spill]] %s3089_s6 }
   0x8   :  { %3119 = sst [smem:[#allocation9_spill]] %s3090_s7 }
   0x9   :  { %3120 = sst [smem:[#allocation10_spill]] %s3091_s8 }
   0xa   :  { %3121 = sst [smem:[#allocation11_spill]] %s3092_s9 }
   0xb LB: > { %s2223_s2 = sadd.s32 4294967295, %s2536_s29   ;;  %p2227_p0 = scmp.ge.s32.totalorder %s2536_s29, 1  ;;  %s2536_s29 = sphi %s2671_s29, %s36_s29  }
   0xc   : > { %p699_p1 = scmp.lt.s32.totalorder %s2536_s29, 3 }
   0xe   : > { %p700_p2 = pnand %p2227_p0, %p699_p1 }
   0xf   : > { %p775_p3 = scmp.lt.s32.totalorder (!%p700_p2), %s2223_s2, 1  ;;  %vm885_vm0 = vcmask (!%p700_p2), 261120   ;;  %s3122_s3 = sld [smem:[#allocation2_spill]] (!%p700_p2)  ;;  %v2538_v16 = vmov (!%p700_p2), 0.0   ;;  %vm2539_vm1 = vmmov (!%p700_p2), 0   ;;  %vm1246_vm2 = vcmask (!%p700_p2), 523264  }
  0x10   : > { %703 = sbr.rel (%p700_p2) target bundleno = 2594 (0xa22), region = 116  ;;  %s3123_s27 = sld [smem:[#allocation4_spill]] (!%p700_p2)  ;;  %2341 = vmatprep.subr.bf16.mxu0 (!%p700_p2), %v2538_v16  ;;  %2349 = vmatprep.subr.bf16.mxu1 (!%p700_p2), %v2538_v16  ;;  %vm1405_vm3 = vcmask (!%p700_p2), 130048   ;;  %vm1470_vm4 = vcmask (!%p700_p2), 64512   ;;  %vm1483_vm5 = vcmask (!%p700_p2), 1043456  }
  0x11   : > { %s3124_s9 = sld [smem:[#allocation5_spill]] (!%p700_p2)  ;;  %2345 = vmatprep.mubr.msk.bf16.mxu0 (!%p700_p2), %vm2539_vm1, %v2538_v16  ;;  %2353 = vmatprep.mubr.msk.bf16.mxu1 (!%p700_p2), %vm2539_vm1, %v2538_v16  ;;  %s3125_s1 = sld [smem:[#allocation8_spill]] (!%p700_p2) }
  0x12   : > { %s3126_s28 = sld [smem:[#allocation9_spill]] (!%p700_p2)  ;;  %s3127_s30 = sld [smem:[#allocation6_spill]] (!%p700_p2) }
  0x13   : > { %s3130_s4 = sld [smem:[#allocation11_spill]] (!%p700_p2) }
  0x16   : > { %v2702_v14 = vld [vmem:[%s3123_s27] sm:$0xff] (!%p700_p2)   ;;  %v2716_v17 = vld [vmem:[%s3123_s27 + $0x8] sm:$0xff] (!%p700_p2)  }
  0x17   : > { %s3134_s2 = smov (!%p775_p3, %s2223_s2), 1  ;;  %v2707_v15 = vld [vmem:[%s3124_s9] sm:$0xff]   ;;  %2342 = vmatpush3.bf16.msra.mxu0 %v2702_v14  ;;  %v2721_v18 = vld [vmem:[%s3124_s9 + $0x8] sm:$0xff]  }
  0x18   : > { %s2288_s6 = sshll.u32 %s3134_s2, 4  ;;  %2350 = vmatpush3.bf16.msra.mxu1 %v2707_v15  ;;  %2343 = vmatprep.subr.bf16.mxu0 %v2538_v16  ;;  %v2234_v27 = vld [vmem:[%s3125_s1] ss:$0 sm:$0xff]  ;;  %s3111_s7 = sshll.u32 %s3134_s2, 3 }
  0x19   : > { %s779_s26 = scalar_lea.vmem %s3122_s3, %s2288_s6  ;;  %2351 = vmatprep.subr.bf16.mxu1 %v2538_v16  ;;  %v2235_v31 = vld [vmem:[%s3126_s28] ss:$0 sm:$0xff]  ;;  %s3128_s1 = sld [smem:[#allocation3_spill]] }
  0x1a   : > { %v2687_v0 = vld [vmem:[%s779_s26] sm:$0xff]  ;;  %v2689_v1 = vld [vmem:[%s779_s26 + $0x8] sm:$0xff]  ;;  %s3129_s26 = sld [smem:[#allocation10_spill]]  ;;  %s2942_s28 = scalar_lea.vmem %s3107_s24, %s2288_s6 }
  0x1b   : > { %v886_v2 = vsel %vm885_vm0, %v2687_v0, 0.0  ;;  %v889_v3 = vsel %vm885_vm0, %v2689_v1, 0.0  ;;  %2344 = vmatpush3.bf16.msra.mxu0 %v2716_v17  ;;  %v2479_v46 = vld [vmem:[%s3127_s30] sm:$0xff]   ;;  %s3132_s5 = sshll.u32 %s3134_s2, 3 }
  0x1c   : > { %887 = vadd.xlane.f32.xlu0 %v886_v2  ;;  %2352 = vmatpush3.bf16.msra.mxu1 %v2721_v18  ;;  %s792_s30 = scalar_lea.vmem %s3108_s25, %s3132_s5 }
  0x1d   : > { %2357 = vmatprep.subr.bf16.mxu0 %v2538_v16  ;;  %2365 = vmatprep.subr.bf16.mxu1 %v2538_v16 }
  0x1f   : > { %s783_s8 = scalar_lea.vmem %s3128_s1, %s3111_s7 }
  0x20   : > { %890 = vadd.xlane.f32.xlu0 %v889_v3  ;;  %v884_v51 = vld [vmem:[%s783_s8] sm:$0xff]  ;;  %s3131_s8 = sld [smem:[#allocation7_spill]] }
  0x21   : > { %v1293_v56 = vsel %vm885_vm0, %v884_v51, 0.0 }
  0xa9   : > { %v888_v4 = vpop.xlane.xlu0 %887 }
  0xaa   : > { %v893_v5 = vmul.f32 0.03125, %v888_v4 }
  0xac   : > { %v895_v6 = vsub.f32 %v2687_v0, %v893_v5 }
  0xad   : > { %v891_v7 = vpop.xlane.xlu0 %890 }
  0xae   : > { %v894_v8 = vmul.f32 0.03125, %v891_v7  ;;  %v897_v9 = vmul.f32 %v895_v6, %v895_v6 }
  0xb0   : > { %v896_v10 = vsub.f32 %v2689_v1, %v894_v8  ;;  %v899_v11 = vsel %vm885_vm0, %v897_v9, 0.0  ;;  %v2480_v8 = vld [vmem:[%s3093_s10] sm:$0xff]   ;;  %v2481_v9 = vld [vmem:[%s3093_s10 + $0x8] sm:$0xff]  }
  0xb1   : > { %900 = vadd.xlane.f32.xlu1 %v899_v11 }
  0xb2   : > { %v898_v12 = vmul.f32 %v896_v10, %v896_v10 }
  0xb4   : > { %v902_v13 = vsel %vm885_vm0, %v898_v12, 0.0 }
  0xb5   : > { %903 = vadd.xlane.f32.xlu1 %v902_v13 }
 0x13e   : > { %v901_v19 = vpop.xlane.xlu1 %900 }
 0x13f   : > { %v905_v20 = vmul.f32 0.03125, %v901_v19 }
 0x141   : > { %v907_v21 = vadd.f32 1e-05, %v905_v20 }
 0x142   : > { %v904_v22 = vpop.xlane.xlu1 %903 }
 0x143   : > { %2498 = vrsqrt.f32 %v907_v21  ;;  %v906_v23 = vmul.f32 0.03125, %v904_v22 }
 0x145   : > { %v908_v24 = vadd.f32 1e-05, %v906_v23 }
 0x147   : > { %2500 = vrsqrt.f32 %v908_v24 }
 0x14d   : > { %v2499_v25 = vpop.eup %2498 }
 0x14e   : > { %v911_v26 = vmul.f32 %v2499_v25, %v895_v6  ;;  %v2244_v25 = vld [vmem:[%s3129_s26] ss:$0 sm:$0xff] }
 0x150   : > { %v919_v30 = vmul.f32 %v2234_v27, %v911_v26 }
 0x151   : > { %v2501_v28 = vpop.eup %2500 }
 0x152   : > { %v912_v29 = vmul.f32 %v2501_v28, %v896_v10  ;;  %v927_v33 = vadd.f32 %v2235_v31, %v919_v30 }
 0x154   : > { %v920_v32 = vmul.f32 %v2234_v27, %v912_v29 }
 0x156   : > { %v928_v34 = vadd.f32 %v2235_v31, %v920_v32  ;;  %v2245_v31 = vld [vmem:[%s3130_s4] ss:$0 sm:$0xff] }
 0x158   : > { %v929_v35 = vpack.c.bf16 %v928_v34, %v927_v33  ;;  %v2256_v34 = vld [vmem:[%s3097_s14] ss:$0 sm:$0xff] }
 0x15a   : > { %2346 = vmatmul.mubr.msk.bf16.vlgmr.msra.gmra.mrb[0].mxu0 %vm885_vm0, %v929_v35  ;;  %2354 = vmatmul.mubr.msk.bf16.vlgmr.msra.gmra.mrb[0].mxu1 %vm885_vm0, %v929_v35 }
 0x15b   : > { %2361 = vmatprep.mubr.msk.bf16.mxu0 %vm2539_vm1, %v2538_v16  ;;  %2369 = vmatprep.mubr.msk.bf16.mxu1 %vm2539_vm1, %v2538_v16 }
 0x15c   : > { %2366 = vmatpush3.bf16.msra.mxu1 %v2480_v8 }
 0x15d   : > { %2367 = vmatprep.subr.bf16.mxu1 %v2538_v16 }
 0x160   : > { %2368 = vmatpush3.bf16.msra.mxu1 %v2481_v9 }
 0x161   : > { %2385 = vmatprep.subr.bf16.mxu1 %v2538_v16 }
 0x22d   : > { %v979_v36 = vpop.f32.mrb[0].mxu0  ;;  %v1032_v37 = vpop.f32.mrb[0].mxu1 }
 0x22e   : > { %v2347_v38 = vpop.f32.mrb[1].mxu0  ;;  %v2355_v39 = vpop.f32.mrb[1].mxu1 }
 0x22f   : > { %v982_v40 = vpop.f32.mrb[2].mxu0  ;;  %v1035_v41 = vpop.f32.mrb[2].mxu1  ;;  %v2257_v39 = vld [vmem:[%s3098_s15] ss:$0 sm:$0xff] }
 0x230   : > { %v1039_v42 = vpack.c.bf16 %v982_v40, %v979_v36  ;;  %v1040_v43 = vpack.c.bf16 %v1035_v41, %v1032_v37  ;;  %v2348_v44 = vpop.f32.mrb[3].mxu0  ;;  %v2356_v45 = vpop.f32.mrb[3].mxu1 }
 0x232   : > { %2358 = vmatpush3.bf16.msra.mxu0 %v1039_v42  ;;  %v2246_v42 = vld [vmem:[%s3094_s11] ss:$0 sm:$0xff] }
 0x233   : > { %2359 = vmatprep.subr.bf16.mxu0 %v2538_v16 }
 0x236   : > { %2360 = vmatpush3.bf16.msra.mxu0 %v1040_v43 }
 0x237   : > { %2373 = vmatprep.subr.bf16.mxu0 %v2538_v16 }
 0x239   : > { %2362 = vmatmul.mubr.msk.bf16.vlgmr.msra.gmra.mrb[4].mxu0 %vm885_vm0, %v2479_v46 }
 0x23a   : > { %2381 = vmatprep.mubr.msk.bf16.mxu0 %vm2539_vm1, %v2538_v16 }
 0x30c   : > { %v1083_v47 = vpop.f32.mrb[4].mxu0 }
 0x30d   : > { %v2760_v48 = vadd.f32 %v1083_v47, %v2687_v0  ;;  %v2363_v49 = vpop.f32.mrb[5].mxu0 }
 0x30e   : > { %v1086_v50 = vpop.f32.mrb[6].mxu0 }
 0x30f   : > { %v2763_v52 = vadd.f32 %v1086_v50, %v2689_v1  ;;  %v2364_v53 = vpop.f32.mrb[7].mxu0  ;;  %v1092_v54 = vsel %vm885_vm0, %v2760_v48, 0.0 }
 0x310   : > { %1093 = vadd.xlane.f32.xlu0 %v1092_v54 }
 0x311   : > { %v1095_v55 = vsel %vm885_vm0, %v2763_v52, 0.0 }
 0x312   : > { %1096 = vadd.xlane.f32.xlu1 %v1095_v55 }
 0x314   : > { %1294 = vadd.xlane.f32.xlu0 %v1293_v56 }
 0x39d   : > { %v1094_v57 = vpop.xlane.xlu0 %1093 }
 0x39e   : > { %v1098_v58 = vmul.f32 0.03125, %v1094_v57 }
 0x39f   : > { %v1097_v59 = vpop.xlane.xlu1 %1096 }
 0x3a0   : > { %v1100_v60 = vsub.f32 %v2760_v48, %v1098_v58  ;;  %v1099_v61 = vmul.f32 0.03125, %v1097_v59 }
 0x3a1   : > { %v1295_v62 = vpop.xlane.xlu0 %1294 }
 0x3a2   : > { %v1101_v63 = vsub.f32 %v2763_v52, %v1099_v61  ;;  %v1296_v0 = vmul.f32 0.03125, %v1295_v62  ;;  %v1102_v1 = vmul.f32 %v1100_v60, %v1100_v60 }
 0x3a4   : > { %v1297_v2 = vsub.f32 %v884_v51, %v1296_v0  ;;  %v1104_v3 = vsel %vm885_vm0, %v1102_v1, 0.0  ;;  %v1103_v4 = vmul.f32 %v1101_v63, %v1101_v63 }
 0x3a5   : > { %1105 = vadd.xlane.f32.xlu1 %v1104_v3 }
 0x3a6   : > { %v1107_v5 = vsel %vm885_vm0, %v1103_v4, 0.0  ;;  %v1298_v6 = vmul.f32 %v1297_v2, %v1297_v2 }
 0x3a7   : > { %1108 = vadd.xlane.f32.xlu0 %v1107_v5 }
 0x3a8   : > { %v1299_v7 = vsel %vm885_vm0, %v1298_v6, 0.0 }
 0x3a9   : > { %1300 = vadd.xlane.f32.xlu1 %v1299_v7 }
 0x432   : > { %v1106_v10 = vpop.xlane.xlu1 %1105 }
 0x433   : > { %v1110_v11 = vmul.f32 0.03125, %v1106_v10 }
 0x434   : > { %v1109_v12 = vpop.xlane.xlu0 %1108 }
 0x435   : > { %v1112_v13 = vadd.f32 1e-05, %v1110_v11  ;;  %v1111_v19 = vmul.f32 0.03125, %v1109_v12 }
 0x436   : > { %v1301_v20 = vpop.xlane.xlu1 %1300 }
 0x437   : > { %2502 = vrsqrt.f32 %v1112_v13  ;;  %v1113_v21 = vadd.f32 1e-05, %v1111_v19  ;;  %v1302_v22 = vmul.f32 0.03125, %v1301_v20  ;;  %v804_v20 = vld [vmem:[%s3131_s8] sm:$0xf] }
 0x439   : > { %2504 = vrsqrt.f32 %v1113_v21  ;;  %v1303_v23 = vadd.f32 1e-05, %v1302_v22  ;;  %v2486_v21 = vld [vmem:[%s3105_s22] sm:$0xff]   ;;  %v826_v22 = vld [vmem:[%s3099_s16 + $0x8] sm:$0xff] }
 0x43b   : > { %2506 = vrsqrt.f32 %v1303_v23  ;;  %v2540_v23 = vmov 0  }
 0x43c   : > { %2474 = vset.pattern.permute.xlu1 %v2540_v23  ;;  %2473 = vset.pattern.permute.xlu0 %v2540_v23 }
 0x43d   : > { %1630 = vperm.xlu1 %2474, %v826_v22  }
 0x441   : > { %v2503_v24 = vpop.eup %2502 }
 0x442   : > { %v1116_v26 = vmul.f32 %v2503_v24, %v1100_v60  ;;  %v833_v24 = vld [vmem:[%s3100_s17] sm:$0xff] }
 0x443   : > { %v2505_v27 = vpop.eup %2504  ;;  %1673 = vperm.xlu1 %2474, %v833_v24  }
 0x444   : > { %v1124_v28 = vmul.f32 %v2244_v25, %v1116_v26  ;;  %v1117_v29 = vmul.f32 %v2505_v27, %v1101_v63  ;;  %v830_v26 = vld [vmem:[%s3099_s16 + $0x28] sm:$0xff] }
 0x445   : > { %v2507_v30 = vpop.eup %2506  ;;  %v834_v27 = vld [vmem:[%s3100_s17 + $0x8] sm:$0xff] }
 0x446   : > { %v1125_v32 = vmul.f32 %v2244_v25, %v1117_v29  ;;  %v1305_v33 = vmul.f32 %v2507_v30, %v1297_v2  ;;  %v1132_v35 = vadd.f32 %v2245_v31, %v1124_v28  ;;  %v825_v25 = vld [vmem:[%s3099_s16] sm:$0xff]  ;;  %v838_v28 = vld [vmem:[%s3100_s17 + $0x28] sm:$0xff]  ;;  %v827_v29 = vld [vmem:[%s3099_s16 + $0x10] sm:$0xff] }
 0x447   : > { %1625 = vperm.xlu0 %2473, %v825_v25   ;;  %1678 = vperm.xlu1 %2474, %v834_v27   ;;  %v832_v30 = vld [vmem:[%s3099_s16 + $0x38] sm:$0xff] }
 0x448   : > { %v1133_v36 = vadd.f32 %v2245_v31, %v1125_v32  ;;  %v1312_v38 = vmul.f32 %v2256_v34, %v1305_v33  ;;  %v828_v31 = vld [vmem:[%s3099_s16 + $0x18] sm:$0xff]  ;;  %v835_v33 = vld [vmem:[%s3100_s17 + $0x10] sm:$0xff]  ;;  %v850_v34 = vld [vmem:[%s3102_s19 + $0x8] sm:$0xff] }
 0x449   : > { %v840_v32 = vld [vmem:[%s3100_s17 + $0x38] sm:$0xff] }
 0x44a   : > { %v1134_v37 = vpack.c.bf16 %v1133_v36, %v1132_v35  ;;  %v1319_v40 = vadd.f32 %v2257_v39, %v1312_v38  ;;  %v836_v35 = vld [vmem:[%s3100_s17 + $0x18] sm:$0xff]  ;;  %v854_v38 = vld [vmem:[%s3102_s19 + $0x28] sm:$0xff]  ;;  %v837_v39 = vld [vmem:[%s3100_s17 + $0x20] sm:$0xff] }
 0x44b   : > { %1650 = vperm.xlu0 %2473, %v830_v26   ;;  %1635 = vperm.xlu1 %2474, %v827_v29   ;;  %v852_v36 = vld [vmem:[%s3102_s19 + $0x18] sm:$0xff] }
 0x44c   : > { %2370 = vmatmul.mubr.msk.bf16.vlgmr.msra.gmra.mrb[4].mxu1 %vm885_vm0, %v1134_v37  ;;  %v1320_v41 = vpack.c.bf16 %v1319_v40, %v1319_v40  ;;  %v829_v37 = vld [vmem:[%s3099_s16 + $0x20] sm:$0xff]  ;;  %v856_v40 = vld [vmem:[%s3102_s19 + $0x38] sm:$0xff] }
 0x44d   : > { %2386 = vmatpush3.bf16.msra.mxu1 %v2702_v14  ;;  %2389 = vmatprep.mubr.msk.bf16.mxu1 %vm2539_vm1, %v2538_v16  ;;  %v2482_v14 = vld [vmem:[%s3095_s12] sm:$0xff]  }
 0x44e   : > { %2387 = vmatprep.subr.bf16.mxu1 %v2538_v16  ;;  %2374 = vmatpush3.bf16.msra.mxu0 %v2482_v14  ;;  %v866_v14 = vld [vmem:[%s3104_s21 + $0x8] sm:$0xff] }
 0x44f   : > { %2375 = vmatprep.subr.bf16.mxu0 %v2538_v16  ;;  %1698 = vperm.xlu0 %2473, %v838_v28  }
 0x450   : > { %1640 = vperm.xlu1 %2474, %v828_v31  }
 0x451   : > { %2388 = vmatpush3.bf16.msra.mxu1 %v2716_v17  ;;  %v2484_v17 = vld [vmem:[%s3095_s12 + $0x10] sm:$0xff]  }
 0x452   : > { %2393 = vmatprep.subr.bf16.mxu1 %v2538_v16 }
 0x453   : > { %1660 = vperm.xlu0 %2473, %v832_v30  }
 0x454   : > { %2390 = vmatmul.mubr.msk.bf16.vlgmr.msra.gmra.mrb[8].mxu1 %vm885_vm0, %v1320_v41  ;;  %1683 = vperm.xlu1 %2474, %v835_v33  }
 0x455   : > { %2394 = vmatpush3.bf16.msra.mxu1 %v2707_v15  ;;  %2397 = vmatprep.mubr.msk.bf16.mxu1 %vm2539_vm1, %v2538_v16  ;;  %v2483_v15 = vld [vmem:[%s3095_s12 + $0x8] sm:$0xff]  }
 0x456   : > { %2395 = vmatprep.subr.bf16.mxu1 %v2538_v16  ;;  %2376 = vmatpush3.bf16.msra.mxu0 %v2483_v15  ;;  %v839_v15 = vld [vmem:[%s3100_s17 + $0x30] sm:$0xff] }
 0x457   : > { %2377 = vmatprep.subr.bf16.mxu0 %v2538_v16  ;;  %1708 = vperm.xlu0 %2473, %v840_v32  }
 0x458   : > { %1688 = vperm.xlu1 %2474, %v836_v35  }
 0x459   : > { %2396 = vmatpush3.bf16.msra.mxu1 %v2721_v18  ;;  %v2485_v18 = vld [vmem:[%s3095_s12 + $0x18] sm:$0xff]  }
 0x45a   : > { %2378 = vmatpush3.bf16.msra.mxu0 %v2484_v17  ;;  %v868_v17 = vld [vmem:[%s3104_s21 + $0x18] sm:$0xff] }
 0x45b   : > { %2379 = vmatprep.subr.bf16.mxu0 %v2538_v16  ;;  %1730 = vperm.xlu0 %2473, %v850_v34  }
 0x45c   : > { %2398 = vmatmul.mubr.msk.bf16.vlgmr.msra.gmra.mrb[12].mxu1 %vm885_vm0, %v1320_v41  ;;  %1645 = vperm.xlu1 %2474, %v829_v37   ;;  %v831_v41 = vld [vmem:[%s3099_s16 + $0x30] sm:$0xff] }
 0x45d   : > { %2409 = vmatprep.mubr.msk.bf16.mxu1 %vm1470_vm4, %v2486_v21 }
 0x45e   : > { %2380 = vmatpush3.bf16.msra.mxu0 %v2485_v18  ;;  %v849_v18 = vld [vmem:[%s3102_s19] sm:$0xff] }
 0x45f   : > { %2401 = vmatprep.subr.bf16.mxu0 %v2538_v16  ;;  %1740 = vperm.xlu0 %2473, %v852_v36  }
 0x460   : > { %1693 = vperm.xlu1 %2474, %v837_v39  }
 0x463   : > { %1750 = vperm.xlu0 %2473, %v854_v38  }
 0x464   : > { %1655 = vperm.xlu1 %2474, %v831_v41  }
 0x467   : > { %1760 = vperm.xlu0 %2473, %v856_v40  }
 0x468   : > { %1703 = vperm.xlu1 %2474, %v839_v15  }
 0x46b   : > { %1943 = vperm.xlu0 %2473, %v866_v14  }
 0x46c   : > { %1725 = vperm.xlu1 %2474, %v849_v18  }
 0x46f   : > { %1953 = vperm.xlu0 %2473, %v868_v17  }
 0x4bc   : > { %v2979_v36 = vpop.permute.xlu1 %1630 }
 0x4c2   : > { %v2981_v40 = vpop.permute.xlu1 %1673 }
 0x51f   : > { %v1190_v43 = vpop.f32.mrb[4].mxu1 }
 0x520   : > { %v1191_v44 = vadd.f32 %v2246_v42, %v1190_v43  ;;  %v2371_v45 = vpop.f32.mrb[5].mxu1  ;;  %v851_v43 = vld [vmem:[%s3102_s19 + $0x10] sm:$0xff] }
 0x521   : > { %v1193_v46 = vpop.f32.mrb[6].mxu1  ;;  %1735 = vperm.xlu1 %2474, %v851_v43   ;;  %v853_v45 = vld [vmem:[%s3102_s19 + $0x20] sm:$0xff] }
 0x522   : > { %v1199_v47 = vmul.f32 0.044715, %v1191_v44  ;;  %v1194_v49 = vadd.f32 %v2246_v42, %v1193_v46  ;;  %v2372_v50 = vpop.f32.mrb[7].mxu1  ;;  %v1197_v9 = vmul.f32 0.5, %v1191_v44  ;;  %v870_v42 = vld [vmem:[%s3104_s21 + $0x28] sm:$0xff]  ;;  %v855_v46 = vld [vmem:[%s3102_s19 + $0x30] sm:$0xff] }
 0x523   : > { %1963 = vperm.xlu0 %2473, %v870_v42   ;;  %v869_v50 = vld [vmem:[%s3104_s21 + $0x20] sm:$0xff] }
 0x524   : > { %v1201_v51 = vmul.f32 %v1199_v47, %v1191_v44  ;;  %v1200_v53 = vmul.f32 0.044715, %v1194_v49  ;;  %v1198_v10 = vmul.f32 0.5, %v1194_v49  ;;  %v865_v47 = vld [vmem:[%s3104_s21] sm:$0xff] }
 0x525   : > { %1745 = vperm.xlu1 %2474, %v853_v45  }
 0x526   : > { %v1203_v54 = vmul.f32 %v1201_v51, %v1191_v44  ;;  %v1202_v55 = vmul.f32 %v1200_v53, %v1194_v49  ;;  %v871_v51 = vld [vmem:[%s3104_s21 + $0x30] sm:$0xff]  ;;  %v2250_v53 = vld [vmem:[%s3096_s13] ss:$0 sm:$0xff] }
 0x527   : > { %v1358_v56 = vpop.f32.mrb[8].mxu1 }
 0x528   : > { %v1205_v57 = vadd.f32 %v1203_v54, %v1191_v44  ;;  %v1204_v58 = vmul.f32 %v1202_v55, %v1194_v49  ;;  %v2391_v59 = vpop.f32.mrb[9].mxu1  ;;  %v872_v44 = vld [vmem:[%s3104_s21 + $0x38] sm:$0xff] }
 0x529   : > { %v1361_v60 = vpop.f32.mrb[10].mxu1  ;;  %1973 = vperm.xlu0 %2473, %v872_v44   ;;  %1755 = vperm.xlu1 %2474, %v855_v46  }
 0x52a   : > { %v1207_v61 = vmul.f32 0.7978846, %v1205_v57  ;;  %v1206_v62 = vadd.f32 %v1204_v58, %v1194_v49  ;;  %v2392_v63 = vpop.f32.mrb[11].mxu1  ;;  %v867_v49 = vld [vmem:[%s3104_s21 + $0x10] sm:$0xff] }
 0x52c   : > { %2508 = vtanh.f32 %v1207_v61  ;;  %v1208_v0 = vmul.f32 0.7978846, %v1206_v62 }
 0x52d   : > { %1938 = vperm.xlu1 %2474, %v865_v47   ;;  %v2983_v47 = vpop.permute.xlu1 %1678 }
 0x52e   : > { %2510 = vtanh.f32 %v1208_v0 }
 0x52f   : > { %v1398_v1 = vpop.f32.mrb[12].mxu1 }
 0x530   : > { %v1404_v2 = vpack.c.bf16 %v1398_v1, %v1358_v56  ;;  %v2399_v3 = vpop.f32.mrb[13].mxu1 }
 0x531   : > { %v1401_v4 = vpop.f32.mrb[14].mxu1  ;;  %1948 = vperm.xlu1 %2474, %v867_v49   ;;  %v2488_v3 = vld [vmem:[%s3105_s22 + $0x10] sm:$0xff]  }
 0x532   : > { %v2400_v5 = vpop.f32.mrb[15].mxu1  ;;  %v2489_v4 = vld [vmem:[%s3105_s22 + $0x18] sm:$0xff]  }
 0x533   : > { %v2490_v5 = vld [vmem:[%s3101_s18] sm:$0xff]  }
 0x535   : > { %1958 = vperm.xlu1 %2474, %v869_v50  }
 0x536   : > { %v2509_v6 = vpop.eup %2508 }
 0x537   : > { %v1211_v7 = vadd.f32 1.0, %v2509_v6 }
 0x538   : > { %v2511_v8 = vpop.eup %2510 }
 0x539   : > { %v1212_v11 = vadd.f32 1.0, %v2511_v8  ;;  %v1213_v12 = vmul.f32 %v1211_v7, %v1197_v9  ;;  %1968 = vperm.xlu1 %2474, %v871_v51  }
 0x53b   : > { %v1214_v13 = vmul.f32 %v1212_v11, %v1198_v10 }
 0x53d   : > { %v1215_v19 = vpack.c.bf16 %v1214_v13, %v1213_v12 }
 0x53f   : > { %2382 = vmatmul.mubr.msk.bf16.vlgmr.msra.gmra.mrb[8].mxu0 %vm1246_vm2, %v1215_v19 }
 0x540   : > { %2402 = vmatpush3.bf16.msra.mxu0 %v1404_v2  ;;  %2403 = vmatprep.mubr.msk.bf16.mxu0 %vm2539_vm1, %v2538_v16  ;;  %v2487_v2 = vld [vmem:[%s3105_s22 + $0x8] sm:$0xff]  }
 0x547   : > { %2404 = vmatmul.mubr.msk.bf16.vlgmr.msra.gmra.mrb[12].mxu0 %vm1405_vm3, %v804_v20 }
 0x548   : > { %2425 = vmatprep.mubr.msk.bf16.mxu0 %vm1246_vm2, %v2490_v5 }
 0x612   : > { %v1284_v54 = vpop.f32.mrb[8].mxu0 }
 0x613   : > { %v1285_v55 = vadd.f32 %v2250_v53, %v1284_v54  ;;  %v2383_v56 = vpop.f32.mrb[9].mxu0 }
 0x614   : > { %v1287_v57 = vpop.f32.mrb[10].mxu0 }
 0x615   : > { %v1291_v58 = vadd.f32 %v1285_v55, %v2760_v48  ;;  %v2945_v59 = vadd.f32 %v2250_v53, %v1287_v57  ;;  %v2384_v60 = vpop.f32.mrb[11].mxu0 }
 0x616   : > { %v1636_v60 = vpop.permute.xlu1 %1635 }
 0x617   : > { %2122 = vst.msk [vmem:[%s2942_s28] sm:$0xff] %vm885_vm0, %v1291_v58 }
 0x61a   : > { %v1443_v61 = vpop.f32.mrb[12].mxu0  ;;  %v1641_v5 = vpop.permute.xlu1 %1640 }
 0x61b   : > { %v1449_v62 = vpack.c.bf16 %v1443_v61, %v1443_v61  ;;  %2124 = vst.msk [vmem:[%s792_s30] sm:$0xff] %vm885_vm0, %v1443_v61  ;;  %v2405_v63 = vpop.f32.mrb[13].mxu0 }
 0x61c   : > { %v1446_v0 = vpop.f32.mrb[14].mxu0 }
 0x61d   : > { %v2406_v1 = vpop.f32.mrb[15].mxu0  ;;  %2461 = vmatprep.subr.msk.bf16.mxu1 %vm1483_vm5, %v1449_v62  ;;  %v1485_v48 = vsel %vm1483_vm5, %v1449_v62, 0 }
 0x61e   : > { %2408 = vmatpush3.bf16.msra.mxu1 %v1485_v48 }
 0x621   : > { %2410 = vmatmul.mubr.msk.bf16.vlgmr.msra.gmra.mrb[16].mxu1 %vm1470_vm4, %v2487_v2 }
 0x622   : > { %2413 = vmatprep.mubr.msk.bf16.mxu1 %vm1470_vm4, %v2488_v3 }
 0x629   : > { %2414 = vmatmul.mubr.msk.bf16.gmra.mrb[20].mxu1 %vm1470_vm4, %v2489_v4 }
 0x6f4   : > { %v2411_v6 = vpop.f32.mrb[16].mxu1 }
 0x6f5   : > { %v1521_v7 = vpop.f32.mrb[17].mxu1  ;;  %v1555_v13 = vsel %vm885_vm0, %v2411_v6, 0.0 }
 0x6f6   : > { %v2412_v8 = vpop.f32.mrb[18].mxu1  ;;  %v1552_v10 = vsel %vm885_vm0, %v1521_v7, 0.0 }
 0x6f7   : > { %v1524_v9 = vpop.f32.mrb[19].mxu1  ;;  %v1557_v20 = vsel %vm885_vm0, %v2412_v8, 0.0 }
 0x6f8   : > { %v1553_v11 = vsel %vm885_vm0, %v1524_v9, 0.0 }
 0x6f9   : > { %v1554_v12 = vadd.f32 %v1553_v11, %v1552_v10  ;;  %v1684_v11 = vpop.permute.xlu1 %1683 }
 0x6fb   : > { %v1556_v19 = vadd.f32 %v1555_v13, %v1554_v12 }
 0x6fc   : > { %v2415_v21 = vpop.f32.mrb[20].mxu1 }
 0x6fd   : > { %v1537_v22 = vpop.f32.mrb[21].mxu1  ;;  %v1558_v23 = vadd.f32 %v1557_v20, %v1556_v19  ;;  %v1563_v30 = vsel %vm885_vm0, %v2415_v21, 0.0  ;;  %v1689_v20 = vpop.permute.xlu1 %1688 }
 0x6fe   : > { %v1559_v24 = vsel %vm885_vm0, %v1537_v22, 0.0  ;;  %v2416_v25 = vpop.f32.mrb[22].mxu1 }
 0x6ff   : > { %v1560_v26 = vadd.f32 %v1559_v24, %v1558_v23  ;;  %v1540_v27 = vpop.f32.mrb[23].mxu1  ;;  %v1565_v32 = vsel %vm885_vm0, %v2416_v25, 0.0 }
 0x700   : > { %v1561_v28 = vsel %vm885_vm0, %v1540_v27, 0.0 }
 0x701   : > { %v1562_v29 = vadd.f32 %v1561_v28, %v1560_v26 }
 0x703   : > { %v1564_v31 = vadd.f32 %v1563_v30, %v1562_v29 }
 0x705   : > { %v1566_v33 = vadd.f32 %v1565_v32, %v1564_v31 }
 0x707   : > { %v1567_v34 = vrot.slane %v1566_v33, 4 }
 0x709   : > { %v1568_v35 = vadd.f32 %v1567_v34, %v1566_v33 }
 0x70b   : > { %v1569_v37 = vrot.slane %v1568_v35, 2 }
 0x70d   : > { %v1570_v38 = vadd.f32 %v1569_v37, %v1568_v35 }
 0x70f   : > { %v1571_v39 = vrot.slane %v1570_v38, 1 }
 0x711   : > { %v1572_v41 = vadd.f32 %v1571_v39, %v1570_v38 }
 0x713   : > { %v1574_v14 = vmul.f32 0.015625, %v1572_v41 }
 0x715   : > { %v1580_v15 = vsub.f32 %v1540_v27, %v1574_v14  ;;  %v1581_v17 = vsub.f32 %v2415_v21, %v1574_v14  ;;  %v1582_v18 = vsub.f32 %v2416_v25, %v1574_v14  ;;  %v1575_v42 = vsub.f32 %v1521_v7, %v1574_v14  ;;  %v1646_v25 = vpop.permute.xlu1 %1645 }
 0x716   : > { %v1576_v43 = vsub.f32 %v1524_v9, %v1574_v14  ;;  %v1577_v44 = vsub.f32 %v2411_v6, %v1574_v14  ;;  %v1578_v45 = vsub.f32 %v2412_v8, %v1574_v14  ;;  %v1579_v46 = vsub.f32 %v1537_v22, %v1574_v14  ;;  %v1626_v22 = vpop.permute.xlu0 %1625 }
 0x717   : > { %v1583_v49 = vmul.f32 %v1575_v42, %v1575_v42  ;;  %v1588_v62 = vmul.f32 %v1580_v15, %v1580_v15  ;;  %v1589_v1 = vmul.f32 %v1581_v17, %v1581_v17  ;;  %v1590_v4 = vmul.f32 %v1582_v18, %v1582_v18 }
 0x718   : > { %v1584_v50 = vmul.f32 %v1576_v43, %v1576_v43  ;;  %v1585_v51 = vmul.f32 %v1577_v44, %v1577_v44  ;;  %v1586_v54 = vmul.f32 %v1578_v45, %v1578_v45  ;;  %v1587_v57 = vmul.f32 %v1579_v46, %v1579_v46 }
 0x719   : > { %v1591_v53 = vsel %vm885_vm0, %v1583_v49, 0.0  ;;  %v1600_v3 = vsel %vm885_vm0, %v1588_v62, 0.0  ;;  %v1602_v7 = vsel %vm885_vm0, %v1589_v1, 0.0  ;;  %v1604_v9 = vsel %vm885_vm0, %v1590_v4, 0.0  ;;  %v1694_v29 = vpop.permute.xlu1 %1693 }
 0x71a   : > { %v1592_v55 = vsel %vm885_vm0, %v1584_v50, 0.0  ;;  %v1594_v58 = vsel %vm885_vm0, %v1585_v51, 0.0  ;;  %v1596_v63 = vsel %vm885_vm0, %v1586_v54, 0.0  ;;  %v1598_v48 = vsel %vm885_vm0, %v1587_v57, 0.0  ;;  %v1651_v27 = vpop.permute.xlu0 %1650 }
 0x71b   : > { %v1593_v56 = vadd.f32 %v1592_v55, %v1591_v53 }
 0x71d   : > { %v1595_v61 = vadd.f32 %v1594_v58, %v1593_v56  ;;  %v1656_v31 = vpop.permute.xlu1 %1655 }
 0x71e   : > { %v1699_v30 = vpop.permute.xlu0 %1698 }
 0x71f   : > { %v1597_v0 = vadd.f32 %v1596_v63, %v1595_v61 }
 0x721   : > { %v1599_v2 = vadd.f32 %v1598_v48, %v1597_v0  ;;  %v1704_v55 = vpop.permute.xlu1 %1703 }
 0x722   : > { %v1661_v32 = vpop.permute.xlu0 %1660 }
 0x723   : > { %v1601_v6 = vadd.f32 %v1600_v3, %v1599_v2 }
 0x725   : > { %v1603_v8 = vadd.f32 %v1602_v7, %v1601_v6  ;;  %v1726_v2 = vpop.permute.xlu1 %1725 }
 0x727   : > { %v1605_v10 = vadd.f32 %v1604_v9, %v1603_v8 }
 0x729   : > { %v1606_v12 = vrot.slane %v1605_v10, 4  ;;  %v1736_v4 = vpop.permute.xlu1 %1735 }
 0x72b   : > { %v1607_v13 = vadd.f32 %v1606_v12, %v1605_v10 }
 0x72d   : > { %v1608_v19 = vrot.slane %v1607_v13, 2  ;;  %v1746_v9 = vpop.permute.xlu1 %1745 }
 0x72f   : > { %v1609_v21 = vadd.f32 %v1608_v19, %v1607_v13 }
 0x731   : > { %v1610_v23 = vrot.slane %v1609_v21, 1 }
 0x733   : > { %v1611_v24 = vadd.f32 %v1610_v23, %v1609_v21 }
 0x735   : > { %v1612_v26 = vmul.f32 0.015625, %v1611_v24 }
 0x737   : > { %v1613_v28 = vadd.f32 1e-05, %v1612_v26 }
 0x739   : > { %2512 = vrsqrt.f32 %v1613_v28 }
 0x743   : > { %v2513_v33 = vpop.eup %2512 }
 0x744   : > { %v1619_v34 = vmul.f32 %v2513_v33, %v1579_v46  ;;  %v1621_v35 = vmul.f32 %v2513_v33, %v1581_v17  ;;  %v1615_v37 = vmul.f32 %v2513_v33, %v1575_v42  ;;  %v1620_v38 = vmul.f32 %v2513_v33, %v1580_v15  ;;  %v1709_v15 = vpop.permute.xlu0 %1708 }
 0x745   : > { %v1622_v39 = vmul.f32 %v2513_v33, %v1582_v18  ;;  %v1616_v41 = vmul.f32 %v2513_v33, %v1576_v43  ;;  %v1617_v14 = vmul.f32 %v2513_v33, %v1577_v44  ;;  %v1618_v49 = vmul.f32 %v2513_v33, %v1578_v45 }
 0x746   : > { %v1667_v50 = vmul.f32 %v1646_v25, %v1619_v34  ;;  %v1669_v51 = vmul.f32 %v1656_v31, %v1621_v35  ;;  %v1663_v53 = vmul.f32 %v1626_v22, %v1615_v37  ;;  %v1668_v54 = vmul.f32 %v1651_v27, %v1620_v38 }
 0x747   : > { %v1670_v56 = vmul.f32 %v1661_v32, %v1622_v39  ;;  %v1664_v57 = vmul.f32 %v2979_v36, %v1616_v41  ;;  %v1665_v58 = vmul.f32 %v1636_v60, %v1617_v14  ;;  %v1666_v61 = vmul.f32 %v1641_v5, %v1618_v49  ;;  %v2491_v36 = vld [vmem:[%s3101_s18 + $0x8] sm:$0xff]   ;;  %v2494_v60 = vld [vmem:[%s3103_s20] sm:$0xff]  }
 0x748   : > { %v1715_v62 = vadd.f32 %v1694_v29, %v1667_v50  ;;  %v1717_v63 = vadd.f32 %v1704_v55, %v1669_v51  ;;  %v1711_v17 = vadd.f32 %v2981_v40, %v1663_v53  ;;  %v1716_v42 = vadd.f32 %v1699_v30, %v1668_v54  ;;  %v2492_v40 = vld [vmem:[%s3101_s18 + $0x10] sm:$0xff]   ;;  %2441 = vmatprep.mubr.msk.bf16.mxu1 %vm1246_vm2, %v2494_v60  ;;  %v1731_v3 = vpop.permute.xlu0 %1730  ;;  %v1756_v29 = vpop.permute.xlu1 %1755 }
 0x749   : > { %v1718_v18 = vadd.f32 %v1709_v15, %v1670_v56  ;;  %v1712_v43 = vadd.f32 %v2983_v47, %v1664_v57  ;;  %v1713_v44 = vadd.f32 %v1684_v11, %v1665_v58  ;;  %v1714_v45 = vadd.f32 %v1689_v20, %v1666_v61  ;;  %v2493_v47 = vld [vmem:[%s3101_s18 + $0x18] sm:$0xff]  }
 0x74a   : > { %v1721_v46 = vpack.c.bf16 %v1716_v42, %v1715_v62 }
 0x74b   : > { %v1722_v0 = vpack.c.bf16 %v1718_v18, %v1717_v63  ;;  %v1719_v1 = vpack.c.bf16 %v1712_v43, %v1711_v17  ;;  %v1720_v48 = vpack.c.bf16 %v1714_v45, %v1713_v44 }
 0x74c   : > { %v1741_v5 = vpop.permute.xlu0 %1740 }
 0x74d   : > { %2417 = vmatprep.subr.bf16.mxu0 %v1719_v1 }
 0x74e   : > { %2418 = vmatpush3.bf16.msra.mxu0 %v1719_v1 }
 0x74f   : > { %2419 = vmatprep.subr.bf16.mxu0 %v1720_v48 }
 0x750   : > { %v1751_v20 = vpop.permute.xlu0 %1750 }
 0x752   : > { %2420 = vmatpush3.bf16.msra.mxu0 %v1720_v48 }
 0x753   : > { %2421 = vmatprep.subr.bf16.mxu0 %v1721_v46 }
 0x754   : > { %v1761_v38 = vpop.permute.xlu0 %1760 }
 0x756   : > { %2422 = vmatpush3.bf16.msra.mxu0 %v1721_v46 }
 0x757   : > { %2423 = vmatprep.subr.bf16.mxu0 %v1722_v0 }
 0x75a   : > { %2424 = vmatpush3.bf16.msra.mxu0 %v1722_v0 }
 0x75b   : > { %2449 = vmatprep.subr.bf16.mxu0 %v2538_v16 }
 0x75d   : > { %2426 = vmatmul.mubr.msk.bf16.vlgmr.msra.gmra.mrb[16].mxu0 %vm1246_vm2, %v2491_v36 }
 0x75e   : > { %2429 = vmatprep.mubr.msk.bf16.mxu0 %vm1246_vm2, %v2492_v40 }
 0x765   : > { %2430 = vmatmul.mubr.msk.bf16.gmra.mrb[20].mxu0 %vm1246_vm2, %v2493_v47 }
 0x766   : > { %2457 = vmatprep.mubr.msk.bf16.mxu0 %vm2539_vm1, %v2538_v16 }
 0x830   : > { %v2427_v6 = vpop.f32.mrb[16].mxu0 }
 0x831   : > { %v3015_v7 = vadd.f32 %v2427_v6, %v1736_v4  ;;  %v1829_v8 = vpop.f32.mrb[17].mxu0 }
 0x832   : > { %v3017_v10 = vadd.f32 %v1829_v8, %v1726_v2  ;;  %v2428_v11 = vpop.f32.mrb[18].mxu0 }
 0x833   : > { %v1870_v12 = vmul.f32 0.044715, %v3015_v7  ;;  %v3020_v13 = vadd.f32 %v2428_v11, %v1741_v5  ;;  %v1832_v19 = vpop.f32.mrb[19].mxu0 }
 0x834   : > { %v1868_v21 = vmul.f32 0.044715, %v3017_v10  ;;  %v3023_v22 = vadd.f32 %v1832_v19, %v1731_v3  ;;  %v1862_v19 = vmul.f32 0.5, %v3015_v7 }
 0x835   : > { %v1878_v23 = vmul.f32 %v1870_v12, %v3015_v7  ;;  %v1871_v24 = vmul.f32 0.044715, %v3020_v13 }
 0x836   : > { %v1876_v25 = vmul.f32 %v1868_v21, %v3017_v10  ;;  %v1869_v26 = vmul.f32 0.044715, %v3023_v22 }
 0x837   : > { %v1886_v27 = vmul.f32 %v1878_v23, %v3015_v7  ;;  %v1879_v28 = vmul.f32 %v1871_v24, %v3020_v13  ;;  %v1860_v23 = vmul.f32 0.5, %v3017_v10  ;;  %v1861_v24 = vmul.f32 0.5, %v3023_v22 }
 0x838   : > { %v1884_v30 = vmul.f32 %v1876_v25, %v3017_v10  ;;  %v1877_v31 = vmul.f32 %v1869_v26, %v3023_v22  ;;  %v2431_v32 = vpop.f32.mrb[20].mxu0 }
 0x839   : > { %v1887_v33 = vmul.f32 %v1879_v28, %v3020_v13  ;;  %v3034_v34 = vadd.f32 %v2431_v32, %v1756_v29  ;;  %v1845_v35 = vpop.f32.mrb[21].mxu0  ;;  %v1894_v37 = vadd.f32 %v1886_v27, %v3015_v7 }
 0x83a   : > { %v1885_v39 = vmul.f32 %v1877_v31, %v3023_v22  ;;  %v3038_v41 = vadd.f32 %v1845_v35, %v1746_v9  ;;  %v2432_v14 = vpop.f32.mrb[22].mxu0  ;;  %v1892_v49 = vadd.f32 %v1884_v30, %v3017_v10 }
 0x83b   : > { %v1874_v50 = vmul.f32 0.044715, %v3034_v34  ;;  %v1857_v51 = vadd.f32 %v2432_v14, %v1761_v38  ;;  %v1848_v53 = vpop.f32.mrb[23].mxu0  ;;  %v1895_v54 = vadd.f32 %v1887_v33, %v3020_v13  ;;  %v1902_v55 = vmul.f32 0.7978846, %v1894_v37 }
 0x83c   : > { %v1872_v56 = vmul.f32 0.044715, %v3038_v41  ;;  %v1849_v57 = vadd.f32 %v1848_v53, %v1751_v20  ;;  %v1893_v58 = vadd.f32 %v1885_v39, %v3023_v22  ;;  %v1900_v61 = vmul.f32 0.7978846, %v1892_v49 }
 0x83d   : > { %v1882_v62 = vmul.f32 %v1874_v50, %v3034_v34  ;;  %v1875_v63 = vmul.f32 0.044715, %v1857_v51  ;;  %v1903_v17 = vmul.f32 0.7978846, %v1895_v54  ;;  %2514 = vtanh.f32 %v1902_v55 }
 0x83e   : > { %v1880_v42 = vmul.f32 %v1872_v56, %v3038_v41  ;;  %v1873_v15 = vmul.f32 0.044715, %v1849_v57  ;;  %v1901_v18 = vmul.f32 0.7978846, %v1893_v58  ;;  %2516 = vtanh.f32 %v1900_v61  ;;  %v1944_v61 = vpop.permute.xlu0 %1943 }
 0x83f   : > { %v1890_v43 = vmul.f32 %v1882_v62, %v3034_v34  ;;  %v1883_v44 = vmul.f32 %v1875_v63, %v1857_v51  ;;  %2518 = vtanh.f32 %v1903_v17  ;;  %v1863_v20 = vmul.f32 0.5, %v3020_v13 }
 0x840   : > { %v1888_v45 = vmul.f32 %v1880_v42, %v3038_v41  ;;  %v1881_v46 = vmul.f32 %v1873_v15, %v1849_v57  ;;  %2520 = vtanh.f32 %v1901_v18  ;;  %v1866_v13 = vmul.f32 0.5, %v3034_v34 }
 0x841   : > { %v1891_v0 = vmul.f32 %v1883_v44, %v1857_v51  ;;  %v1898_v1 = vadd.f32 %v1890_v43, %v3034_v34  ;;  %v1867_v10 = vmul.f32 0.5, %v1857_v51  ;;  %v1864_v22 = vmul.f32 0.5, %v3038_v41  ;;  %v2495_v34 = vld [vmem:[%s3103_s20 + $0x8] sm:$0xff]  }
 0x842   : > { %v1889_v48 = vmul.f32 %v1881_v46, %v1849_v57  ;;  %v1896_v36 = vadd.f32 %v1888_v45, %v3038_v41  ;;  %v1865_v14 = vmul.f32 0.5, %v1849_v57  ;;  %v2496_v41 = vld [vmem:[%s3103_s20 + $0x10] sm:$0xff]   ;;  %v1954_v63 = vpop.permute.xlu0 %1953 }
 0x843   : > { %v1899_v40 = vadd.f32 %v1891_v0, %v1857_v51  ;;  %v1906_v47 = vmul.f32 0.7978846, %v1898_v1  ;;  %v2497_v51 = vld [vmem:[%s3103_s20 + $0x18] sm:$0xff]  }
 0x844   : > { %v1897_v60 = vadd.f32 %v1889_v48, %v1849_v57  ;;  %v1904_v2 = vmul.f32 0.7978846, %v1896_v36  ;;  %v1939_v57 = vpop.permute.xlu1 %1938 }
 0x845   : > { %v1907_v3 = vmul.f32 0.7978846, %v1899_v40  ;;  %2522 = vtanh.f32 %v1906_v47 }
 0x846   : > { %v1905_v4 = vmul.f32 0.7978846, %v1897_v60  ;;  %2524 = vtanh.f32 %v1904_v2  ;;  %v1964_v46 = vpop.permute.xlu0 %1963 }
 0x847   : > { %v2515_v5 = vpop.eup %2514  ;;  %2526 = vtanh.f32 %v1907_v3 }
 0x848   : > { %v2517_v6 = vpop.eup %2516  ;;  %v1918_v8 = vadd.f32 1.0, %v2515_v5  ;;  %2528 = vtanh.f32 %v1905_v4  ;;  %v1949_v62 = vpop.permute.xlu1 %1948 }
 0x849   : > { %v2519_v9 = vpop.eup %2518  ;;  %v1916_v11 = vadd.f32 1.0, %v2517_v6 }
 0x84a   : > { %v2521_v12 = vpop.eup %2520  ;;  %v1919_v21 = vadd.f32 1.0, %v2519_v9  ;;  %v1926_v26 = vmul.f32 %v1918_v8, %v1862_v19  ;;  %v1974_v2 = vpop.permute.xlu0 %1973  ;;  %v881_v19 = vld [vmem:[%s3106_s23] sm:$0xf] }
 0x84b   : > { %v1917_v25 = vadd.f32 1.0, %v2521_v12  ;;  %v1924_v28 = vmul.f32 %v1916_v11, %v1860_v23 }
 0x84c   : > { %v1927_v27 = vmul.f32 %v1919_v21, %v1863_v20  ;;  %v1959_v18 = vpop.permute.xlu1 %1958  ;;  %v1292_v20 = vadd.f32 %v2945_v59, %v2763_v52 }
 0x84d   : > { %v1925_v29 = vmul.f32 %v1917_v25, %v1861_v24 }
 0x84e   : > { %v1933_v30 = vpack.c.bf16 %v1927_v27, %v1926_v26 }
 0x84f   : > { %v2523_v31 = vpop.eup %2522  ;;  %v1932_v32 = vpack.c.bf16 %v1925_v29, %v1924_v28 }
 0x850   : > { %v2525_v33 = vpop.eup %2524  ;;  %v1922_v35 = vadd.f32 1.0, %v2523_v31  ;;  %v1969_v47 = vpop.permute.xlu1 %1968 }
 0x851   : > { %v2527_v37 = vpop.eup %2526  ;;  %2433 = vmatprep.subr.bf16.mxu1 %v1932_v32  ;;  %v1920_v7 = vadd.f32 1.0, %v2525_v33 }
 0x852   : > { %v2529_v38 = vpop.eup %2528  ;;  %2434 = vmatpush3.bf16.msra.mxu1 %v1932_v32  ;;  %v1923_v39 = vadd.f32 1.0, %v2527_v37  ;;  %v1930_v50 = vmul.f32 %v1922_v35, %v1866_v13 }
 0x853   : > { %2435 = vmatprep.subr.bf16.mxu1 %v1933_v30  ;;  %v1921_v49 = vadd.f32 1.0, %v2529_v38  ;;  %v1928_v54 = vmul.f32 %v1920_v7, %v1864_v22 }
 0x854   : > { %v1931_v53 = vmul.f32 %v1923_v39, %v1867_v10 }
 0x855   : > { %v1929_v55 = vmul.f32 %v1921_v49, %v1865_v14 }
 0x856   : > { %2436 = vmatpush3.bf16.msra.mxu1 %v1933_v30  ;;  %v1935_v56 = vpack.c.bf16 %v1931_v53, %v1930_v50 }
 0x857   : > { %v1934_v58 = vpack.c.bf16 %v1929_v55, %v1928_v54 }
 0x859   : > { %2437 = vmatprep.subr.bf16.mxu1 %v1934_v58 }
 0x85a   : > { %2438 = vmatpush3.bf16.msra.mxu1 %v1934_v58 }
 0x85b   : > { %2439 = vmatprep.subr.bf16.mxu1 %v1935_v56 }
 0x85e   : > { %2440 = vmatpush3.bf16.msra.mxu1 %v1935_v56 }
 0x861   : > { %2442 = vmatmul.mubr.msk.bf16.vlgmr.msra.gmra.mrb[24].mxu1 %vm1246_vm2, %v2495_v34 }
 0x862   : > { %2445 = vmatprep.mubr.msk.bf16.mxu1 %vm1246_vm2, %v2496_v41 }
 0x869   : > { %2446 = vmatmul.mubr.msk.bf16.gmra.mrb[28].mxu1 %vm1246_vm2, %v2497_v51 }
 0x934   : > { %v2443_v17 = vpop.f32.mrb[24].mxu1 }
 0x935   : > { %v2042_v42 = vpop.f32.mrb[25].mxu1  ;;  %v2051_v43 = vadd.f32 %v2443_v17, %v1949_v62 }
 0x936   : > { %v2444_v15 = vpop.f32.mrb[26].mxu1  ;;  %v2043_v0 = vadd.f32 %v2042_v42, %v1939_v57 }
 0x937   : > { %v2054_v44 = vadd.f32 %v2444_v15, %v1954_v63  ;;  %v2045_v45 = vpop.f32.mrb[27].mxu1 }
 0x938   : > { %v2046_v1 = vadd.f32 %v2045_v45, %v1944_v61 }
 0x939   : > { %v2074_v48 = vpack.c.bf16 %v2054_v44, %v2051_v43 }
 0x93a   : > { %v2073_v36 = vpack.c.bf16 %v2046_v1, %v2043_v0 }
 0x93c   : > { %v2447_v40 = vpop.f32.mrb[28].mxu1  ;;  %2450 = vmatpush3.bf16.msra.mxu0 %v2073_v36 }
 0x93d   : > { %v2058_v60 = vpop.f32.mrb[29].mxu1  ;;  %2451 = vmatprep.subr.bf16.mxu0 %v2538_v16  ;;  %v2067_v4 = vadd.f32 %v2447_v40, %v1969_v47 }
 0x93e   : > { %v2448_v3 = vpop.f32.mrb[30].mxu1  ;;  %v2059_v8 = vadd.f32 %v2058_v60, %v1959_v18 }
 0x93f   : > { %v2070_v5 = vadd.f32 %v2448_v3, %v1974_v2  ;;  %v2061_v6 = vpop.f32.mrb[31].mxu1 }
 0x940   : > { %v2062_v9 = vadd.f32 %v2061_v6, %v1964_v46  ;;  %2452 = vmatpush3.bf16.msra.mxu0 %v2074_v48 }
 0x941   : > { %v2076_v11 = vpack.c.bf16 %v2070_v5, %v2067_v4  ;;  %2453 = vmatprep.subr.bf16.mxu0 %v2538_v16 }
 0x942   : > { %v2075_v12 = vpack.c.bf16 %v2062_v9, %v2059_v8 }
 0x944   : > { %2454 = vmatpush3.bf16.msra.mxu0 %v2075_v12 }
 0x945   : > { %2455 = vmatprep.subr.bf16.mxu0 %v2538_v16 }
 0x948   : > { %2456 = vmatpush3.bf16.msra.mxu0 %v2076_v11 }
 0x94b   : > { %2458 = vmatmul.mubr.msk.bf16.vlgmr.msra.gmra.mrb[24].mxu0 %vm1246_vm2, %v881_v19 }
 0xa1e   : > { %v2114_v21 = vpop.f32.mrb[24].mxu0 }
 0xa1f   : > { %v2121_v23 = vadd.f32 %v2114_v21, %v1292_v20  ;;  %v2459_v24 = vpop.f32.mrb[25].mxu0 }
 0xa20   : > { %v2117_v25 = vpop.f32.mrb[26].mxu0 }
 0xa21   : > { %2123 = vst.msk [vmem:[%s2942_s28 + $0x8] sm:$0xff] %vm885_vm0, %v2121_v23  ;;  %v2460_v26 = vpop.f32.mrb[27].mxu0 }
 0xa22 PF: > { %s36_s29 = sadd.s32 1, %s2536_s29  }
 0xa23   : > { %p33_p4 = scmp.ge.s32.totalorder %s36_s29, 4  }
 0xa25   :  { %35 = sbr.rel (!%p33_p4) target bundleno = 11 (0xb), region = 161 }

// kernel: fnet_decoder_forward.3
= control target key start
LH: loop header
LB: loop body
LE: loop exit
PB: predicated region body
PF: predicated region fallthrough
CT: control target
= control target key end

     0   :  { %s3362_s0 = inlined_call_operand.vmem [shape: f32[2,16,32], index: 0, kind: input, shape index: {}]   ;;  %s3363_s1 = inlined_call_operand.vmem [shape: f32[2,8,32], index: 1, kind: input, shape index: {}]   ;;  %s3364_s2 = inlined_call_operand.vmem [shape: bf16[32,32], index: 2, kind: input, shape index: {}]   ;;  %s3365_s3 = inlined_call_operand.vmem [shape: bf16[32,32], index: 3, kind: input, shape index: {}]   ;;  %s3366_s4 = inlined_call_operand.vmem [shape: bf16[16,32], index: 4, kind: input, shape index: {}]   ;;  %s3367_s5 = inlined_call_operand.vmem [shape: bf16[8,16], index: 5, kind: input, shape index: {}]   ;;  %s3368_s6 = inlined_call_operand.vmem [shape: f32[1,32], index: 6, kind: input, shape index: {}]   ;;  %s3369_s7 = inlined_call_operand.vmem [shape: f32[1,32], index: 7, kind: input, shape index: {}]   ;;  %s3370_s8 = inlined_call_operand.vmem [shape: f32[1,32], index: 8, kind: input, shape index: {}]   ;;  %s3371_s9 = inlined_call_operand.vmem [shape: f32[1,32], index: 9, kind: input, shape index: {}]   ;;  %s3372_s10 = inlined_call_operand.vmem [shape: bf16[32,64], index: 10, kind: input, shape index: {}]   ;;  %s3373_s11 = inlined_call_operand.vmem [shape: f32[1,64], index: 11, kind: input, shape index: {}]   ;;  %s3374_s12 = inlined_call_operand.vmem [shape: bf16[64,32], index: 12, kind: input, shape index: {}]   ;;  %s3375_s13 = inlined_call_operand.vmem [shape: f32[1,32], index: 13, kind: input, shape index: {}]   ;;  %s3376_s14 = inlined_call_operand.vmem [shape: f32[1,32], index: 14, kind: input, shape index: {}]   ;;  %s3377_s15 = inlined_call_operand.vmem [shape: f32[1,32], index: 15, kind: input, shape index: {}]   ;;  %s3378_s16 = inlined_call_operand.vmem [shape: f32[64,1], index: 16, kind: input, shape index: {}]   ;;  %s3379_s17 = inlined_call_operand.vmem [shape: f32[64,1], index: 17, kind: input, shape index: {}]   ;;  %s3380_s18 = inlined_call_operand.vmem [shape: bf16[64,64], index: 18, kind: input, shape index: {}]   ;;  %s3381_s19 = inlined_call_operand.vmem [shape: f32[64,1], index: 19, kind: input, shape index: {}]   ;;  %s3382_s20 = inlined_call_operand.vmem [shape: bf16[64,64], index: 20, kind: input, shape index: {}]   ;;  %s3383_s21 = inlined_call_operand.vmem [shape: f32[64,1], index: 21, kind: input, shape index: {}]   ;;  %s3384_s22 = inlined_call_operand.vmem [shape: bf16[64,8], index: 22, kind: input, shape index: {}]   ;;  %s3385_s23 = inlined_call_operand.vmem [shape: bf16[8,64], index: 23, kind: input, shape index: {}]   ;;  %s3386_s24 = inlined_call_operand.hbm [shape: f32[2,16,32], index: 24, kind: output, shape index: {0}]   ;;  %s3387_s25 = inlined_call_operand.hbm [shape: f32[2,8,32], index: 25, kind: output, shape index: {1}]  }
   0x1   :  { %3395 = sst [smem:[#allocation11_spill]] %s3362_s0 }
   0x2   :  { %3396 = sst [smem:[#allocation12_spill]] %s3363_s1 }
   0x3   :  { %3397 = sst [smem:[#allocation13_spill]] %s3364_s2 }
   0x4   :  { %3398 = sst [smem:[#allocation14_spill]] %s3365_s3 }
   0x5   :  { %3399 = sst [smem:[#allocation15_spill]] %s3366_s4 }
   0x6   :  { %3400 = sst [smem:[#allocation16_spill]] %s3367_s5 }
   0x7   :  { %3401 = sst [smem:[#allocation17_spill]] %s3368_s6 }
   0x8   :  { %3402 = sst [smem:[#allocation18_spill]] %s3369_s7 }
   0x9   :  { %3403 = sst [smem:[#allocation19_spill]] %s3370_s8 }
   0xa   :  { %3404 = sst [smem:[#allocation20_spill]] %s3371_s9 }
   0xb   :  { %3405 = sst [smem:[#allocation21_spill]] %s3372_s10 }
   0xc   :  { %3406 = sst [smem:[#allocation22_spill]] %s3373_s11 }
   0xd   :  { %3407 = sst [smem:[#allocation23_spill]] %s3374_s12 }
   0xe   :  { %3408 = sst [smem:[#allocation24_spill]] %s3375_s13 }
   0xf   :  { %3409 = sst [smem:[#allocation25_spill]] %s3376_s14 }
  0x10   :  { %31 = vsyncpa [#allocation3], 0 }
  0x11   :  { %33 = vsyncpa [#allocation3 + $0x1], 0 }
  0x12   :  { %34 = vsyncpa [#allocation5], 0 }
  0x13   :  { %36 = vsyncpa [#allocation5 + $0x1], 0  ;;  %s2842_s29 = smov 0   ;;  %s2844_s2 = smov 0  }
  0x14   :  { %s2846_s6 = smov 0   ;;  %s2848_s30 = smov 0  }
  0x15 LB: > { %3410 = sst [smem:[#allocation8_spill]] %s2699_s6  ;;  %s2863_s7 = sadd.s32 4294967295, %s2703_s30   ;;  %s2703_s30 = sphi %s2848_s30, %s3430_s30   ;;  %s2699_s6 = sphi %s2846_s6, %s3432_s6   ;;  %s2695_s2 = sphi %s2844_s2, %s3434_s2   ;;  %s2691_s29 = sphi %s2842_s29, %s3433_s29  }
  0x16   : > { %s2261_s3 = sadd.s32 4294967294, %s2703_s30   ;;  %s2867_s26 = sadd.s32 1, %s2703_s30  }
  0x17   : > { %3411 = sst [smem:[#allocation9_spill]] %s2867_s26  ;;  %s563_s1 = sadd.s32 1, %s2699_s6 }
  0x18   : > { %s560_s8 = ssub.s32 %s2703_s30, %s2867_s26  ;;  %p573_p0 = scmp.ne.s32.totalorder %s2699_s6, %s2695_s2 }
  0x19   : > { %p561_p1 = scmp.eq.s32.totalorder %s560_s8, 0  ;;  %p574_p2 = scmp.eq.s32.totalorder %s2863_s7, 1 }
  0x1a   : > { %p579_p3 = scmp.ne.s32.totalorder %s2695_s2, %s2691_s29  ;;  %p580_p4 = scmp.eq.s32.totalorder %s2261_s3, 1 }
  0x1b   : > { %s2878_s27 = scalar_select %p561_p1, %s2699_s6, %s563_s1  }
  0x1c   : > { %p2880_p5 = por %p574_p2, %p573_p0  ;;  %p2884_p6 = por %p580_p4, %p579_p3 }
  0x1d   : > { %3412 = sst [smem:[#allocation10_spill]] %s2878_s27  ;;  %p2264_p7 = scmp.ge.s32.totalorder %s2703_s30, 1 }
  0x1e   : > { %p705_p8 = scmp.lt.s32.totalorder %s2703_s30, 3 }
  0x20   : > { %p706_p9 = pnand %p2264_p7, %p705_p8 }
  0x21   : > { %p782_p10 = scmp.lt.s32.totalorder (!%p706_p9), %s2863_s7, 1  ;;  %vm883_vm0 = vcmask (!%p706_p9), 261120   ;;  %s3415_s1 = sld [smem:[#allocation11_spill]] (!%p706_p9)  ;;  %v2705_v16 = vmov (!%p706_p9), 0.0   ;;  %vm2706_vm1 = vmmov (!%p706_p9), 0   ;;  %vm1244_vm2 = vcmask (!%p706_p9), 523264  }
  0x22   : > { %709 = sbr.rel (%p706_p9) target bundleno = 2627 (0xa43), region = 116  ;;  %s3416_s3 = sld [smem:[#allocation13_spill]] (!%p706_p9)  ;;  %2382 = vmatprep.subr.bf16.mxu0 (!%p706_p9), %v2705_v16  ;;  %2390 = vmatprep.subr.bf16.mxu1 (!%p706_p9), %v2705_v16  ;;  %vm1403_vm3 = vcmask (!%p706_p9), 130048   ;;  %vm1468_vm4 = vcmask (!%p706_p9), 64512   ;;  %vm1481_vm5 = vcmask (!%p706_p9), 1043456  }
  0x23   : > { %s3417_s27 = sld [smem:[#allocation14_spill]] (!%p706_p9)  ;;  %2386 = vmatprep.mubr.msk.bf16.mxu0 (!%p706_p9), %vm2706_vm1, %v2705_v16  ;;  %2394 = vmatprep.mubr.msk.bf16.mxu1 (!%p706_p9), %vm2706_vm1, %v2705_v16  ;;  %s3419_s0 = sld [smem:[#allocation18_spill]] (!%p706_p9) }
  0x24   : > { %s3422_s10 = sld [smem:[#allocation21_spill]] (!%p706_p9)  ;;  %s3425_s14 = sld [smem:[#allocation25_spill]] (!%p706_p9) }
  0x25   : > { %s3426_s12 = sld [smem:[#allocation23_spill]] (!%p706_p9)  ;;  %s3427_s11 = sld [smem:[#allocation22_spill]] (!%p706_p9) }
  0x26   : > { %s3429_s13 = sld [smem:[#allocation24_spill]] (!%p706_p9) }
  0x28   : > { %v2913_v14 = vld [vmem:[%s3416_s3] sm:$0xff] (!%p706_p9)   ;;  %v2927_v17 = vld [vmem:[%s3416_s3 + $0x8] sm:$0xff] (!%p706_p9)   ;;  %s3421_s3 = sld [smem:[#allocation12_spill]] (!%p706_p9) }
  0x29   : > { %s2892_s9 = scalar_select %p782_p10, %s2863_s7, 1  ;;  %v2918_v15 = vld [vmem:[%s3417_s27] sm:$0xff]   ;;  %2383 = vmatpush3.bf16.msra.mxu0 %v2913_v14  ;;  %v2932_v18 = vld [vmem:[%s3417_s27 + $0x8] sm:$0xff]  }
  0x2a   : > { %2391 = vmatpush3.bf16.msra.mxu1 %v2918_v15  ;;  %2384 = vmatprep.subr.bf16.mxu0 %v2705_v16  ;;  %v2271_v31 = vld [vmem:[%s3419_s0] ss:$0 sm:$0xff]  ;;  %s3428_s0 = sld [smem:[#allocation16_spill]] }
  0x2b   : > { %s2329_s5 = sshll.u32 %s2892_s9, 4  ;;  %2392 = vmatprep.subr.bf16.mxu1 %v2705_v16 }
  0x2c   : > { %s786_s8 = scalar_lea.vmem %s3415_s1, %s2329_s5  ;;  %s3418_s1 = sld [smem:[#allocation17_spill]] }
  0x2d   : > { %v2898_v0 = vld [vmem:[%s786_s8] sm:$0xff]  ;;  %v2900_v1 = vld [vmem:[%s786_s8 + $0x8] sm:$0xff]  ;;  %2385 = vmatpush3.bf16.msra.mxu0 %v2927_v17  ;;  %s2269_s8 = sshll.u32 %s2892_s9, 3 }
  0x2e   : > { %v884_v2 = vsel %vm883_vm0, %v2898_v0, 0.0  ;;  %v887_v3 = vsel %vm883_vm0, %v2900_v1, 0.0  ;;  %2393 = vmatpush3.bf16.msra.mxu1 %v2932_v18  ;;  %2398 = vmatprep.subr.bf16.mxu0 %v2705_v16  ;;  %s790_s27 = scalar_lea.vmem %s3421_s3, %s2269_s8  ;;  %s3423_s8 = sld [smem:[#allocation19_spill]] }
  0x2f   : > { %885 = vadd.xlane.f32.xlu0 %v884_v2  ;;  %2406 = vmatprep.subr.bf16.mxu1 %v2705_v16  ;;  %v882_v51 = vld [vmem:[%s790_s27] sm:$0xff]  ;;  %s3424_s27 = sld [smem:[#allocation20_spill]] }
  0x30   : > { %v1291_v56 = vsel %vm883_vm0, %v882_v51, 0.0 }
  0x32   : > { %v2270_v27 = vld [vmem:[%s3418_s1] ss:$0 sm:$0xff]  ;;  %s3420_s1 = sld [smem:[#allocation15_spill]] }
  0x33   : > { %888 = vadd.xlane.f32.xlu0 %v887_v3 }
  0x38   : > { %v2558_v46 = vld [vmem:[%s3420_s1] sm:$0xff]  }
  0xbc   : > { %v886_v4 = vpop.xlane.xlu0 %885 }
  0xbd   : > { %v891_v5 = vmul.f32 0.03125, %v886_v4 }
  0xbf   : > { %v893_v6 = vsub.f32 %v2898_v0, %v891_v5 }
  0xc0   : > { %v889_v7 = vpop.xlane.xlu0 %888 }
  0xc1   : > { %v892_v8 = vmul.f32 0.03125, %v889_v7  ;;  %v895_v9 = vmul.f32 %v893_v6, %v893_v6 }
  0xc3   : > { %v894_v10 = vsub.f32 %v2900_v1, %v892_v8  ;;  %v897_v11 = vsel %vm883_vm0, %v895_v9, 0.0  ;;  %v2559_v8 = vld [vmem:[%s3422_s10] sm:$0xff]   ;;  %v2560_v9 = vld [vmem:[%s3422_s10 + $0x8] sm:$0xff]  }
  0xc4   : > { %898 = vadd.xlane.f32.xlu1 %v897_v11 }
  0xc5   : > { %v896_v12 = vmul.f32 %v894_v10, %v894_v10 }
  0xc7   : > { %v900_v13 = vsel %vm883_vm0, %v896_v12, 0.0 }
  0xc8   : > { %901 = vadd.xlane.f32.xlu1 %v900_v13 }
 0x151   : > { %v899_v19 = vpop.xlane.xlu1 %898 }
 0x152   : > { %v903_v20 = vmul.f32 0.03125, %v899_v19 }
 0x154   : > { %v905_v21 = vadd.f32 1e-05, %v903_v20 }
 0x155   : > { %v902_v22 = vpop.xlane.xlu1 %901 }
 0x156   : > { %2577 = vrsqrt.f32 %v905_v21  ;;  %v904_v23 = vmul.f32 0.03125, %v902_v22 }
 0x158   : > { %v906_v24 = vadd.f32 1e-05, %v904_v23 }
 0x15a   : > { %2579 = vrsqrt.f32 %v906_v24 }
 0x160   : > { %v2578_v25 = vpop.eup %2577 }
 0x161   : > { %v909_v26 = vmul.f32 %v2578_v25, %v893_v6  ;;  %v2280_v25 = vld [vmem:[%s3423_s8] ss:$0 sm:$0xff]  ;;  %s3144_s8 = sand.u32 1, %s2695_s2  }
 0x162   : > { %s2266_s9 = sshll.u32 %s3144_s8, 3 }
 0x163   : > { %v917_v30 = vmul.f32 %v2270_v27, %v909_v26  ;;  %s3158_s10 = scalar_lea.vmem [#allocation4], %s2266_s9 }
 0x164   : > { %v2580_v28 = vpop.eup %2579  ;;  %s2158_s5 = sshll.u32 %s3158_s10, 4  ;;  %s2159_s5 = int_to_ptr.vmem [resolvable:$true] %s2158_s5 }
 0x165   : > { %v910_v29 = vmul.f32 %v2580_v28, %v894_v10  ;;  %v925_v33 = vadd.f32 %v2271_v31, %v917_v30 }
 0x167   : > { %v918_v32 = vmul.f32 %v2270_v27, %v910_v29 }
 0x169   : > { %v926_v34 = vadd.f32 %v2271_v31, %v918_v32  ;;  %v2281_v31 = vld [vmem:[%s3424_s27] ss:$0 sm:$0xff]  ;;  %s2265_s27 = sshll.u32 %s3144_s8, 4 }
 0x16a   : > { %s3154_s3 = scalar_lea.vmem [#allocation2], %s2265_s27 }
 0x16b   : > { %v927_v35 = vpack.c.bf16 %v926_v34, %v925_v33  ;;  %v2292_v34 = vld [vmem:[%s3425_s14] ss:$0 sm:$0xff] }
 0x16d   : > { %2387 = vmatmul.mubr.msk.bf16.vlgmr.msra.gmra.mrb[0].mxu0 %vm883_vm0, %v927_v35  ;;  %2395 = vmatmul.mubr.msk.bf16.vlgmr.msra.gmra.mrb[0].mxu1 %vm883_vm0, %v927_v35 }
 0x16e   : > { %2402 = vmatprep.mubr.msk.bf16.mxu0 %vm2706_vm1, %v2705_v16  ;;  %2410 = vmatprep.mubr.msk.bf16.mxu1 %vm2706_vm1, %v2705_v16 }
 0x16f   : > { %2407 = vmatpush3.bf16.msra.mxu1 %v2559_v8 }
 0x170   : > { %2408 = vmatprep.subr.bf16.mxu1 %v2705_v16 }
 0x173   : > { %2409 = vmatpush3.bf16.msra.mxu1 %v2560_v9 }
 0x174   : > { %2426 = vmatprep.subr.bf16.mxu1 %v2705_v16 }
 0x240   : > { %v977_v36 = vpop.f32.mrb[0].mxu0  ;;  %v1030_v37 = vpop.f32.mrb[0].mxu1 }
 0x241   : > { %v2388_v38 = vpop.f32.mrb[1].mxu0  ;;  %v2396_v39 = vpop.f32.mrb[1].mxu1 }
 0x242   : > { %v980_v40 = vpop.f32.mrb[2].mxu0  ;;  %v1033_v41 = vpop.f32.mrb[2].mxu1  ;;  %v2293_v39 = vld [vmem:[%s3377_s15] ss:$0 sm:$0xff] }
 0x243   : > { %v1037_v42 = vpack.c.bf16 %v980_v40, %v977_v36  ;;  %v1038_v43 = vpack.c.bf16 %v1033_v41, %v1030_v37  ;;  %v2389_v44 = vpop.f32.mrb[3].mxu0  ;;  %v2397_v45 = vpop.f32.mrb[3].mxu1 }
 0x245   : > { %2399 = vmatpush3.bf16.msra.mxu0 %v1037_v42  ;;  %v2282_v42 = vld [vmem:[%s3427_s11] ss:$0 sm:$0xff]  ;;  %s2326_s11 = sshll.u32 %s2863_s7, 7 }
 0x246   : > { %2400 = vmatprep.subr.bf16.mxu0 %v2705_v16  ;;  %s3287_s1 = scalar_lea.hbm %s3387_s25, %s2326_s11 }
 0x249   : > { %2401 = vmatpush3.bf16.msra.mxu0 %v1038_v43 }
 0x24a   : > { %2414 = vmatprep.subr.bf16.mxu0 %v2705_v16 }
 0x24c   : > { %2403 = vmatmul.mubr.msk.bf16.vlgmr.msra.gmra.mrb[4].mxu0 %vm883_vm0, %v2558_v46 }
 0x24d   : > { %2422 = vmatprep.mubr.msk.bf16.mxu0 %vm2706_vm1, %v2705_v16 }
 0x31f   : > { %v1081_v47 = vpop.f32.mrb[4].mxu0 }
 0x320   : > { %v2969_v48 = vadd.f32 %v1081_v47, %v2898_v0  ;;  %v2404_v49 = vpop.f32.mrb[5].mxu0 }
 0x321   : > { %v1084_v50 = vpop.f32.mrb[6].mxu0 }
 0x322   : > { %v2972_v52 = vadd.f32 %v1084_v50, %v2900_v1  ;;  %v2405_v53 = vpop.f32.mrb[7].mxu0  ;;  %v1090_v54 = vsel %vm883_vm0, %v2969_v48, 0.0 }
 0x323   : > { %1091 = vadd.xlane.f32.xlu0 %v1090_v54 }
 0x324   : > { %v1093_v55 = vsel %vm883_vm0, %v2972_v52, 0.0 }
 0x325   : > { %1094 = vadd.xlane.f32.xlu1 %v1093_v55 }
 0x327   : > { %1292 = vadd.xlane.f32.xlu0 %v1291_v56 }
 0x3b0   : > { %v1092_v57 = vpop.xlane.xlu0 %1091 }
 0x3b1   : > { %v1096_v58 = vmul.f32 0.03125, %v1092_v57 }
 0x3b2   : > { %v1095_v59 = vpop.xlane.xlu1 %1094 }
 0x3b3   : > { %v1098_v60 = vsub.f32 %v2969_v48, %v1096_v58  ;;  %v1097_v61 = vmul.f32 0.03125, %v1095_v59 }
 0x3b4   : > { %v1293_v62 = vpop.xlane.xlu0 %1292 }
 0x3b5   : > { %v1099_v63 = vsub.f32 %v2972_v52, %v1097_v61  ;;  %v1294_v0 = vmul.f32 0.03125, %v1293_v62  ;;  %v1100_v1 = vmul.f32 %v1098_v60, %v1098_v60 }
 0x3b7   : > { %v1295_v2 = vsub.f32 %v882_v51, %v1294_v0  ;;  %v1102_v3 = vsel %vm883_vm0, %v1100_v1, 0.0  ;;  %v1101_v4 = vmul.f32 %v1099_v63, %v1099_v63 }
 0x3b8   : > { %1103 = vadd.xlane.f32.xlu1 %v1102_v3 }
 0x3b9   : > { %v1105_v5 = vsel %vm883_vm0, %v1101_v4, 0.0  ;;  %v1296_v6 = vmul.f32 %v1295_v2, %v1295_v2 }
 0x3ba   : > { %1106 = vadd.xlane.f32.xlu0 %v1105_v5 }
 0x3bb   : > { %v1297_v7 = vsel %vm883_vm0, %v1296_v6, 0.0 }
 0x3bc   : > { %1298 = vadd.xlane.f32.xlu1 %v1297_v7 }
 0x445   : > { %v1104_v10 = vpop.xlane.xlu1 %1103 }
 0x446   : > { %v1108_v11 = vmul.f32 0.03125, %v1104_v10 }
 0x447   : > { %v1107_v12 = vpop.xlane.xlu0 %1106 }
 0x448   : > { %v1110_v13 = vadd.f32 1e-05, %v1108_v11  ;;  %v1109_v19 = vmul.f32 0.03125, %v1107_v12 }
 0x449   : > { %v1299_v20 = vpop.xlane.xlu1 %1298 }
 0x44a   : > { %2581 = vrsqrt.f32 %v1110_v13  ;;  %v1111_v21 = vadd.f32 1e-05, %v1109_v19  ;;  %v1300_v22 = vmul.f32 0.03125, %v1299_v20  ;;  %v802_v20 = vld [vmem:[%s3428_s0] sm:$0xf]  ;;  %s2129_s0 = scalar_lea.sflag [#allocation5], %s3144_s8 }
 0x44c   : > { %2583 = vrsqrt.f32 %v1111_v21  ;;  %v1301_v23 = vadd.f32 1e-05, %v1300_v22  ;;  %v2565_v21 = vld [vmem:[%s3384_s22] sm:$0xff]   ;;  %v824_v22 = vld [vmem:[%s3378_s16 + $0x8] sm:$0xff] }
 0x44e   : > { %2585 = vrsqrt.f32 %v1301_v23  ;;  %v2707_v23 = vmov 0  }
 0x44f   : > { %2553 = vset.pattern.permute.xlu1 %v2707_v23  ;;  %2552 = vset.pattern.permute.xlu0 %v2707_v23 }
 0x450   : > { %1628 = vperm.xlu1 %2553, %v824_v22  }
 0x454   : > { %v2582_v24 = vpop.eup %2581 }
 0x455   : > { %v1114_v26 = vmul.f32 %v2582_v24, %v1098_v60  ;;  %v831_v24 = vld [vmem:[%s3379_s17] sm:$0xff] }
 0x456   : > { %v2584_v27 = vpop.eup %2583  ;;  %1671 = vperm.xlu1 %2553, %v831_v24  }
 0x457   : > { %v1122_v28 = vmul.f32 %v2280_v25, %v1114_v26  ;;  %v1115_v29 = vmul.f32 %v2584_v27, %v1099_v63  ;;  %v828_v26 = vld [vmem:[%s3378_s16 + $0x28] sm:$0xff] }
 0x458   : > { %v2586_v30 = vpop.eup %2585  ;;  %v832_v27 = vld [vmem:[%s3379_s17 + $0x8] sm:$0xff] }
 0x459   : > { %v1123_v32 = vmul.f32 %v2280_v25, %v1115_v29  ;;  %v1303_v33 = vmul.f32 %v2586_v30, %v1295_v2  ;;  %v1130_v35 = vadd.f32 %v2281_v31, %v1122_v28  ;;  %v823_v25 = vld [vmem:[%s3378_s16] sm:$0xff]  ;;  %v836_v28 = vld [vmem:[%s3379_s17 + $0x28] sm:$0xff]  ;;  %v825_v29 = vld [vmem:[%s3378_s16 + $0x10] sm:$0xff] }
 0x45a   : > { %1623 = vperm.xlu0 %2552, %v823_v25   ;;  %1676 = vperm.xlu1 %2553, %v832_v27   ;;  %v830_v30 = vld [vmem:[%s3378_s16 + $0x38] sm:$0xff] }
 0x45b   : > { %v1131_v36 = vadd.f32 %v2281_v31, %v1123_v32  ;;  %v1310_v38 = vmul.f32 %v2292_v34, %v1303_v33  ;;  %v826_v31 = vld [vmem:[%s3378_s16 + $0x18] sm:$0xff]  ;;  %v833_v33 = vld [vmem:[%s3379_s17 + $0x10] sm:$0xff]  ;;  %v848_v34 = vld [vmem:[%s3381_s19 + $0x8] sm:$0xff] }
 0x45c   : > { %v838_v32 = vld [vmem:[%s3379_s17 + $0x38] sm:$0xff] }
 0x45d   : > { %v1132_v37 = vpack.c.bf16 %v1131_v36, %v1130_v35  ;;  %v1317_v40 = vadd.f32 %v2293_v39, %v1310_v38  ;;  %v834_v35 = vld [vmem:[%s3379_s17 + $0x18] sm:$0xff]  ;;  %v852_v38 = vld [vmem:[%s3381_s19 + $0x28] sm:$0xff]  ;;  %v835_v39 = vld [vmem:[%s3379_s17 + $0x20] sm:$0xff] }
 0x45e   : > { %1648 = vperm.xlu0 %2552, %v828_v26   ;;  %1633 = vperm.xlu1 %2553, %v825_v29   ;;  %v850_v36 = vld [vmem:[%s3381_s19 + $0x18] sm:$0xff] }
 0x45f   : > { %2411 = vmatmul.mubr.msk.bf16.vlgmr.msra.gmra.mrb[4].mxu1 %vm883_vm0, %v1132_v37  ;;  %v1318_v41 = vpack.c.bf16 %v1317_v40, %v1317_v40  ;;  %v827_v37 = vld [vmem:[%s3378_s16 + $0x20] sm:$0xff]  ;;  %v854_v40 = vld [vmem:[%s3381_s19 + $0x38] sm:$0xff] }
 0x460   : > { %2427 = vmatpush3.bf16.msra.mxu1 %v2913_v14  ;;  %2430 = vmatprep.mubr.msk.bf16.mxu1 %vm2706_vm1, %v2705_v16  ;;  %v2561_v14 = vld [vmem:[%s3426_s12] sm:$0xff]  }
 0x461   : > { %2428 = vmatprep.subr.bf16.mxu1 %v2705_v16  ;;  %2415 = vmatpush3.bf16.msra.mxu0 %v2561_v14  ;;  %v864_v14 = vld [vmem:[%s3383_s21 + $0x8] sm:$0xff] }
 0x462   : > { %2416 = vmatprep.subr.bf16.mxu0 %v2705_v16  ;;  %1696 = vperm.xlu0 %2552, %v836_v28  }
 0x463   : > { %1638 = vperm.xlu1 %2553, %v826_v31  }
 0x464   : > { %2429 = vmatpush3.bf16.msra.mxu1 %v2927_v17  ;;  %v2563_v17 = vld [vmem:[%s3426_s12 + $0x10] sm:$0xff]  }
 0x465   : > { %2434 = vmatprep.subr.bf16.mxu1 %v2705_v16 }
 0x466   : > { %1658 = vperm.xlu0 %2552, %v830_v30  }
 0x467   : > { %2431 = vmatmul.mubr.msk.bf16.vlgmr.msra.gmra.mrb[8].mxu1 %vm883_vm0, %v1318_v41  ;;  %1681 = vperm.xlu1 %2553, %v833_v33  }
 0x468   : > { %2435 = vmatpush3.bf16.msra.mxu1 %v2918_v15  ;;  %2438 = vmatprep.mubr.msk.bf16.mxu1 %vm2706_vm1, %v2705_v16  ;;  %v2562_v15 = vld [vmem:[%s3426_s12 + $0x8] sm:$0xff]  }
 0x469   : > { %2436 = vmatprep.subr.bf16.mxu1 %v2705_v16  ;;  %2417 = vmatpush3.bf16.msra.mxu0 %v2562_v15  ;;  %v837_v15 = vld [vmem:[%s3379_s17 + $0x30] sm:$0xff] }
 0x46a   : > { %2418 = vmatprep.subr.bf16.mxu0 %v2705_v16  ;;  %1706 = vperm.xlu0 %2552, %v838_v32  }
 0x46b   : > { %1686 = vperm.xlu1 %2553, %v834_v35  }
 0x46c   : > { %2437 = vmatpush3.bf16.msra.mxu1 %v2932_v18  ;;  %v2564_v18 = vld [vmem:[%s3426_s12 + $0x18] sm:$0xff]   ;;  %s2609_s12 = scalar_lea.vmem %s2159_s5, 128 }
 0x46d   : > { %2419 = vmatpush3.bf16.msra.mxu0 %v2563_v17  ;;  %v866_v17 = vld [vmem:[%s3383_s21 + $0x18] sm:$0xff]  ;;  %p2610_p11 = scmp.ne.s32.totalorder %s2159_s5, %s2609_s12 }
 0x46e   : > { %2420 = vmatprep.subr.bf16.mxu0 %v2705_v16  ;;  %1728 = vperm.xlu0 %2552, %v848_v34  }
 0x46f   : > { %2439 = vmatmul.mubr.msk.bf16.vlgmr.msra.gmra.mrb[12].mxu1 %vm883_vm0, %v1318_v41  ;;  %1643 = vperm.xlu1 %2553, %v827_v37   ;;  %v829_v41 = vld [vmem:[%s3378_s16 + $0x30] sm:$0xff]  ;;  %p2611_p12 = pnand %p2610_p11, %p2880_p5 }
 0x470   : > { %2450 = vmatprep.mubr.msk.bf16.mxu1 %vm1468_vm4, %v2565_v21 }
 0x471   : > { %2421 = vmatpush3.bf16.msra.mxu0 %v2564_v18  ;;  %v847_v18 = vld [vmem:[%s3381_s19] sm:$0xff]  ;;  %p2612_p13 = pneg %p2611_p12 }
 0x472   : > { %2442 = vmatprep.subr.bf16.mxu0 %v2705_v16  ;;  %1738 = vperm.xlu0 %2552, %v850_v36  }
 0x473   : > { %1691 = vperm.xlu1 %2553, %v835_v39  }
 0x476   : > { %1748 = vperm.xlu0 %2552, %v852_v38  }
 0x477   : > { %1653 = vperm.xlu1 %2553, %v829_v41  }
 0x47a   : > { %1758 = vperm.xlu0 %2552, %v854_v40  }
 0x47b   : > { %1701 = vperm.xlu1 %2553, %v837_v15  }
 0x47e   : > { %1941 = vperm.xlu0 %2552, %v864_v14  }
 0x47f   : > { %1723 = vperm.xlu1 %2553, %v847_v18  }
 0x482   : > { %1951 = vperm.xlu0 %2552, %v866_v17  }
 0x4cf   : > { %v3186_v36 = vpop.permute.xlu1 %1628 }
 0x4d5   : > { %v3188_v40 = vpop.permute.xlu1 %1671 }
 0x532   : > { %v1188_v43 = vpop.f32.mrb[4].mxu1 }
 0x533   : > { %v1189_v44 = vadd.f32 %v2282_v42, %v1188_v43  ;;  %v2412_v45 = vpop.f32.mrb[5].mxu1  ;;  %v849_v43 = vld [vmem:[%s3381_s19 + $0x10] sm:$0xff] }
 0x534   : > { %v1191_v46 = vpop.f32.mrb[6].mxu1  ;;  %1733 = vperm.xlu1 %2553, %v849_v43   ;;  %v851_v45 = vld [vmem:[%s3381_s19 + $0x20] sm:$0xff] }
 0x535   : > { %v1197_v47 = vmul.f32 0.044715, %v1189_v44  ;;  %v1192_v49 = vadd.f32 %v2282_v42, %v1191_v46  ;;  %v2413_v50 = vpop.f32.mrb[7].mxu1  ;;  %v1195_v9 = vmul.f32 0.5, %v1189_v44  ;;  %v868_v42 = vld [vmem:[%s3383_s21 + $0x28] sm:$0xff]  ;;  %v853_v46 = vld [vmem:[%s3381_s19 + $0x30] sm:$0xff] }
 0x536   : > { %1961 = vperm.xlu0 %2552, %v868_v42   ;;  %v867_v50 = vld [vmem:[%s3383_s21 + $0x20] sm:$0xff] }
 0x537   : > { %v1199_v51 = vmul.f32 %v1197_v47, %v1189_v44  ;;  %v1198_v53 = vmul.f32 0.044715, %v1192_v49  ;;  %v1196_v10 = vmul.f32 0.5, %v1192_v49  ;;  %v863_v47 = vld [vmem:[%s3383_s21] sm:$0xff] }
 0x538   : > { %1743 = vperm.xlu1 %2553, %v851_v45  }
 0x539   : > { %v1201_v54 = vmul.f32 %v1199_v51, %v1189_v44  ;;  %v1200_v55 = vmul.f32 %v1198_v53, %v1192_v49  ;;  %v869_v51 = vld [vmem:[%s3383_s21 + $0x30] sm:$0xff]  ;;  %v2286_v53 = vld [vmem:[%s3429_s13] ss:$0 sm:$0xff]  ;;  %s2708_s13 = smov [#allocation4]  }
 0x53a   : > { %v1356_v56 = vpop.f32.mrb[8].mxu1  ;;  %s2613_s14 = sshll.u32 %s2708_s13, 4  ;;  %s2614_s14 = int_to_ptr.vmem [resolvable:$false] %s2613_s14 }
 0x53b   : > { %v1203_v57 = vadd.f32 %v1201_v54, %v1189_v44  ;;  %v1202_v58 = vmul.f32 %v1200_v55, %v1192_v49  ;;  %v2432_v59 = vpop.f32.mrb[9].mxu1  ;;  %v870_v44 = vld [vmem:[%s3383_s21 + $0x38] sm:$0xff]  ;;  %s2615_s27 = scalar_lea.vmem %s2614_s14, 256  ;;  %p2616_p0 = scmp.lt.s32.totalorder %s2159_s5, %s2614_s14 }
 0x53c   : > { %v1359_v60 = vpop.f32.mrb[10].mxu1  ;;  %1971 = vperm.xlu0 %2552, %v870_v44   ;;  %1753 = vperm.xlu1 %2553, %v853_v46   ;;  %p2617_p1 = scmp.lt.s32.totalorder %s2615_s27, %s2609_s12 }
 0x53d   : > { %v1205_v61 = vmul.f32 0.7978846, %v1203_v57  ;;  %v1204_v62 = vadd.f32 %v1202_v58, %v1192_v49  ;;  %v2433_v63 = vpop.f32.mrb[11].mxu1  ;;  %v865_v49 = vld [vmem:[%s3383_s21 + $0x10] sm:$0xff] }
 0x53e   : > { %p2618_p2 = por %p2617_p1, %p2616_p0 }
 0x53f   : > { %2587 = vtanh.f32 %v1205_v61  ;;  %v1206_v0 = vmul.f32 0.7978846, %v1204_v62 }
 0x540   : > { %1936 = vperm.xlu1 %2553, %v863_v47   ;;  %v3190_v47 = vpop.permute.xlu1 %1676  ;;  %p2619_p3 = pnand %p2618_p2, %p2612_p13 }
 0x541   : > { %2589 = vtanh.f32 %v1206_v0 }
 0x542   : > { %v1396_v1 = vpop.f32.mrb[12].mxu1 }
 0x543   : > { %v1402_v2 = vpack.c.bf16 %v1396_v1, %v1356_v56  ;;  %v2440_v3 = vpop.f32.mrb[13].mxu1 }
 0x544   : > { %v1399_v4 = vpop.f32.mrb[14].mxu1  ;;  %1946 = vperm.xlu1 %2553, %v865_v49   ;;  %v2567_v3 = vld [vmem:[%s3384_s22 + $0x10] sm:$0xff]  }
 0x545   : > { %v2441_v5 = vpop.f32.mrb[15].mxu1  ;;  %v2568_v4 = vld [vmem:[%s3384_s22 + $0x18] sm:$0xff]  }
 0x546   : > { %v2569_v5 = vld [vmem:[%s3380_s18] sm:$0xff]  }
 0x548   : > { %1956 = vperm.xlu1 %2553, %v867_v50  }
 0x549   : > { %v2588_v6 = vpop.eup %2587 }
 0x54a   : > { %v1209_v7 = vadd.f32 1.0, %v2588_v6 }
 0x54b   : > { %v2590_v8 = vpop.eup %2589 }
 0x54c   : > { %v1210_v11 = vadd.f32 1.0, %v2590_v8  ;;  %v1211_v12 = vmul.f32 %v1209_v7, %v1195_v9  ;;  %1966 = vperm.xlu1 %2553, %v869_v51  }
 0x54e   : > { %v1212_v13 = vmul.f32 %v1210_v11, %v1196_v10 }
 0x550   : > { %v1213_v19 = vpack.c.bf16 %v1212_v13, %v1211_v12 }
 0x552   : > { %2423 = vmatmul.mubr.msk.bf16.vlgmr.msra.gmra.mrb[8].mxu0 %vm1244_vm2, %v1213_v19 }
 0x553   : > { %2443 = vmatpush3.bf16.msra.mxu0 %v1402_v2  ;;  %2444 = vmatprep.mubr.msk.bf16.mxu0 %vm2706_vm1, %v2705_v16  ;;  %v2566_v2 = vld [vmem:[%s3384_s22 + $0x8] sm:$0xff]  }
 0x55a   : > { %2445 = vmatmul.mubr.msk.bf16.vlgmr.msra.gmra.mrb[12].mxu0 %vm1403_vm3, %v802_v20 }
 0x55b   : > { %2466 = vmatprep.mubr.msk.bf16.mxu0 %vm1244_vm2, %v2569_v5 }
 0x625   : > { %v1282_v54 = vpop.f32.mrb[8].mxu0 }
 0x626   : > { %v1283_v55 = vadd.f32 %v2286_v53, %v1282_v54  ;;  %v2424_v56 = vpop.f32.mrb[9].mxu0 }
 0x627   : > { %v1285_v57 = vpop.f32.mrb[10].mxu0 }
 0x628   : > { %v1289_v58 = vadd.f32 %v1283_v55, %v2969_v48  ;;  %v3151_v59 = vadd.f32 %v2286_v53, %v1285_v57  ;;  %v2425_v60 = vpop.f32.mrb[11].mxu0 }
 0x629   : > { %v1634_v60 = vpop.permute.xlu1 %1633 }
 0x62a   : > { %2120 = vst.msk [vmem:[%s3154_s3] sm:$0xff] %vm883_vm0, %v1289_v58 }
 0x62d   : > { %v1441_v61 = vpop.f32.mrb[12].mxu0  ;;  %v1639_v5 = vpop.permute.xlu1 %1638 }
 0x62e   : > { %v1447_v62 = vpack.c.bf16 %v1441_v61, %v1441_v61  ;;  %2122 = vst.msk [vmem:[%s3158_s10] sm:$0xff] %vm883_vm0, %v1441_v61  ;;  %v2446_v63 = vpop.f32.mrb[13].mxu0 }
 0x62f   : > { %v1444_v0 = vpop.f32.mrb[14].mxu0 }
 0x630   : > { %v2447_v48 = vpop.f32.mrb[15].mxu0  ;;  %2502 = vmatprep.subr.msk.bf16.mxu1 %vm1481_vm5, %v1447_v62  ;;  %v1483_v1 = vsel %vm1481_vm5, %v1447_v62, 0 }
 0x631   : > { %2449 = vmatpush3.bf16.msra.mxu1 %v1483_v1 }
 0x634   : > { %2451 = vmatmul.mubr.msk.bf16.vlgmr.msra.gmra.mrb[16].mxu1 %vm1468_vm4, %v2566_v2 }
 0x635   : > { %2454 = vmatprep.mubr.msk.bf16.mxu1 %vm1468_vm4, %v2567_v3 }
 0x63c   : > { %2455 = vmatmul.mubr.msk.bf16.gmra.mrb[20].mxu1 %vm1468_vm4, %v2568_v4 }
 0x707   : > { %v2452_v6 = vpop.f32.mrb[16].mxu1 }
 0x708   : > { %v1519_v7 = vpop.f32.mrb[17].mxu1  ;;  %v1553_v13 = vsel %vm883_vm0, %v2452_v6, 0.0 }
 0x709   : > { %v2453_v8 = vpop.f32.mrb[18].mxu1  ;;  %v1550_v10 = vsel %vm883_vm0, %v1519_v7, 0.0 }
 0x70a   : > { %v1522_v9 = vpop.f32.mrb[19].mxu1  ;;  %v1555_v20 = vsel %vm883_vm0, %v2453_v8, 0.0 }
 0x70b   : > { %v1551_v11 = vsel %vm883_vm0, %v1522_v9, 0.0 }
 0x70c   : > { %v1552_v12 = vadd.f32 %v1551_v11, %v1550_v10  ;;  %v1682_v11 = vpop.permute.xlu1 %1681 }
 0x70e   : > { %v1554_v19 = vadd.f32 %v1553_v13, %v1552_v12 }
 0x70f   : > { %v2456_v21 = vpop.f32.mrb[20].mxu1 }
 0x710   : > { %v1535_v22 = vpop.f32.mrb[21].mxu1  ;;  %v1556_v23 = vadd.f32 %v1555_v20, %v1554_v19  ;;  %v1561_v30 = vsel %vm883_vm0, %v2456_v21, 0.0  ;;  %v1687_v20 = vpop.permute.xlu1 %1686 }
 0x711   : > { %v1557_v24 = vsel %vm883_vm0, %v1535_v22, 0.0  ;;  %v2457_v25 = vpop.f32.mrb[22].mxu1 }
 0x712   : > { %v1558_v26 = vadd.f32 %v1557_v24, %v1556_v23  ;;  %v1538_v27 = vpop.f32.mrb[23].mxu1  ;;  %v1563_v32 = vsel %vm883_vm0, %v2457_v25, 0.0 }
 0x713   : > { %v1559_v28 = vsel %vm883_vm0, %v1538_v27, 0.0 }
 0x714   : > { %v1560_v29 = vadd.f32 %v1559_v28, %v1558_v26 }
 0x716   : > { %v1562_v31 = vadd.f32 %v1561_v30, %v1560_v29 }
 0x718   : > { %v1564_v33 = vadd.f32 %v1563_v32, %v1562_v31 }
 0x71a   : > { %v1565_v34 = vrot.slane %v1564_v33, 4 }
 0x71c   : > { %v1566_v35 = vadd.f32 %v1565_v34, %v1564_v33 }
 0x71e   : > { %v1567_v37 = vrot.slane %v1566_v35, 2 }
 0x720   : > { %v1568_v38 = vadd.f32 %v1567_v37, %v1566_v35 }
 0x722   : > { %v1569_v39 = vrot.slane %v1568_v38, 1 }
 0x724   : > { %v1570_v41 = vadd.f32 %v1569_v39, %v1568_v38 }
 0x726   : > { %v1572_v14 = vmul.f32 0.015625, %v1570_v41 }
 0x728   : > { %v1578_v15 = vsub.f32 %v1538_v27, %v1572_v14  ;;  %v1579_v17 = vsub.f32 %v2456_v21, %v1572_v14  ;;  %v1580_v18 = vsub.f32 %v2457_v25, %v1572_v14  ;;  %v1573_v42 = vsub.f32 %v1519_v7, %v1572_v14  ;;  %v1644_v25 = vpop.permute.xlu1 %1643 }
 0x729   : > { %v1574_v43 = vsub.f32 %v1522_v9, %v1572_v14  ;;  %v1575_v44 = vsub.f32 %v2452_v6, %v1572_v14  ;;  %v1576_v45 = vsub.f32 %v2453_v8, %v1572_v14  ;;  %v1577_v46 = vsub.f32 %v1535_v22, %v1572_v14  ;;  %v1624_v22 = vpop.permute.xlu0 %1623 }
 0x72a   : > { %v1581_v49 = vmul.f32 %v1573_v42, %v1573_v42  ;;  %v1586_v62 = vmul.f32 %v1578_v15, %v1578_v15  ;;  %v1587_v48 = vmul.f32 %v1579_v17, %v1579_v17  ;;  %v1588_v4 = vmul.f32 %v1580_v18, %v1580_v18 }
 0x72b   : > { %v1582_v50 = vmul.f32 %v1574_v43, %v1574_v43  ;;  %v1583_v51 = vmul.f32 %v1575_v44, %v1575_v44  ;;  %v1584_v54 = vmul.f32 %v1576_v45, %v1576_v45  ;;  %v1585_v57 = vmul.f32 %v1577_v46, %v1577_v46 }
 0x72c   : > { %v1589_v53 = vsel %vm883_vm0, %v1581_v49, 0.0  ;;  %v1598_v3 = vsel %vm883_vm0, %v1586_v62, 0.0  ;;  %v1600_v7 = vsel %vm883_vm0, %v1587_v48, 0.0  ;;  %v1602_v9 = vsel %vm883_vm0, %v1588_v4, 0.0  ;;  %v1692_v29 = vpop.permute.xlu1 %1691 }
 0x72d   : > { %v1590_v55 = vsel %vm883_vm0, %v1582_v50, 0.0  ;;  %v1592_v58 = vsel %vm883_vm0, %v1583_v51, 0.0  ;;  %v1594_v63 = vsel %vm883_vm0, %v1584_v54, 0.0  ;;  %v1596_v1 = vsel %vm883_vm0, %v1585_v57, 0.0  ;;  %v1649_v27 = vpop.permute.xlu0 %1648 }
 0x72e   : > { %v1591_v56 = vadd.f32 %v1590_v55, %v1589_v53 }
 0x730   : > { %v1593_v61 = vadd.f32 %v1592_v58, %v1591_v56  ;;  %v1654_v31 = vpop.permute.xlu1 %1653 }
 0x731   : > { %v1697_v30 = vpop.permute.xlu0 %1696 }
 0x732   : > { %v1595_v0 = vadd.f32 %v1594_v63, %v1593_v61 }
 0x734   : > { %v1597_v2 = vadd.f32 %v1596_v1, %v1595_v0  ;;  %v1702_v55 = vpop.permute.xlu1 %1701 }
 0x735   : > { %v1659_v32 = vpop.permute.xlu0 %1658 }
 0x736   : > { %v1599_v6 = vadd.f32 %v1598_v3, %v1597_v2 }
 0x738   : > { %v1601_v8 = vadd.f32 %v1600_v7, %v1599_v6  ;;  %v1724_v2 = vpop.permute.xlu1 %1723 }
 0x73a   : > { %v1603_v10 = vadd.f32 %v1602_v9, %v1601_v8 }
 0x73c   : > { %v1604_v12 = vrot.slane %v1603_v10, 4  ;;  %v1734_v4 = vpop.permute.xlu1 %1733 }
 0x73e   : > { %v1605_v13 = vadd.f32 %v1604_v12, %v1603_v10 }
 0x740   : > { %v1606_v19 = vrot.slane %v1605_v13, 2  ;;  %v1744_v9 = vpop.permute.xlu1 %1743 }
 0x742   : > { %v1607_v21 = vadd.f32 %v1606_v19, %v1605_v13 }
 0x744   : > { %v1608_v23 = vrot.slane %v1607_v21, 1 }
 0x746   : > { %v1609_v24 = vadd.f32 %v1608_v23, %v1607_v21 }
 0x748   : > { %v1610_v26 = vmul.f32 0.015625, %v1609_v24 }
 0x74a   : > { %v1611_v28 = vadd.f32 1e-05, %v1610_v26 }
 0x74c   : > { %2591 = vrsqrt.f32 %v1611_v28 }
 0x756   : > { %v2592_v33 = vpop.eup %2591 }
 0x757   : > { %v1617_v34 = vmul.f32 %v2592_v33, %v1577_v46  ;;  %v1619_v35 = vmul.f32 %v2592_v33, %v1579_v17  ;;  %v1613_v37 = vmul.f32 %v2592_v33, %v1573_v42  ;;  %v1618_v38 = vmul.f32 %v2592_v33, %v1578_v15  ;;  %v1707_v15 = vpop.permute.xlu0 %1706 }
 0x758   : > { %v1620_v39 = vmul.f32 %v2592_v33, %v1580_v18  ;;  %v1614_v41 = vmul.f32 %v2592_v33, %v1574_v43  ;;  %v1615_v14 = vmul.f32 %v2592_v33, %v1575_v44  ;;  %v1616_v49 = vmul.f32 %v2592_v33, %v1576_v45 }
 0x759   : > { %v1665_v50 = vmul.f32 %v1644_v25, %v1617_v34  ;;  %v1667_v51 = vmul.f32 %v1654_v31, %v1619_v35  ;;  %v1661_v53 = vmul.f32 %v1624_v22, %v1613_v37  ;;  %v1666_v54 = vmul.f32 %v1649_v27, %v1618_v38 }
 0x75a   : > { %v1668_v56 = vmul.f32 %v1659_v32, %v1620_v39  ;;  %v1662_v57 = vmul.f32 %v3186_v36, %v1614_v41  ;;  %v1663_v58 = vmul.f32 %v1634_v60, %v1615_v14  ;;  %v1664_v61 = vmul.f32 %v1639_v5, %v1616_v49  ;;  %v2570_v36 = vld [vmem:[%s3380_s18 + $0x8] sm:$0xff]   ;;  %v2573_v60 = vld [vmem:[%s3382_s20] sm:$0xff]  }
 0x75b   : > { %v1713_v62 = vadd.f32 %v1692_v29, %v1665_v50  ;;  %v1715_v63 = vadd.f32 %v1702_v55, %v1667_v51  ;;  %v1709_v17 = vadd.f32 %v3188_v40, %v1661_v53  ;;  %v1714_v42 = vadd.f32 %v1697_v30, %v1666_v54  ;;  %v2571_v40 = vld [vmem:[%s3380_s18 + $0x10] sm:$0xff]   ;;  %2482 = vmatprep.mubr.msk.bf16.mxu1 %vm1244_vm2, %v2573_v60  ;;  %v1729_v3 = vpop.permute.xlu0 %1728  ;;  %v1754_v29 = vpop.permute.xlu1 %1753 }
 0x75c   : > { %v1716_v18 = vadd.f32 %v1707_v15, %v1668_v56  ;;  %v1710_v43 = vadd.f32 %v3190_v47, %v1662_v57  ;;  %v1711_v44 = vadd.f32 %v1682_v11, %v1663_v58  ;;  %v1712_v45 = vadd.f32 %v1687_v20, %v1664_v61  ;;  %v2572_v47 = vld [vmem:[%s3380_s18 + $0x18] sm:$0xff]  }
 0x75d   : > { %v1719_v46 = vpack.c.bf16 %v1714_v42, %v1713_v62 }
 0x75e   : > { %v1720_v0 = vpack.c.bf16 %v1716_v18, %v1715_v63  ;;  %v1717_v48 = vpack.c.bf16 %v1710_v43, %v1709_v17  ;;  %v1718_v1 = vpack.c.bf16 %v1712_v45, %v1711_v44 }
 0x75f   : > { %v1739_v5 = vpop.permute.xlu0 %1738 }
 0x760   : > { %2458 = vmatprep.subr.bf16.mxu0 %v1717_v48 }
 0x761   : > { %2459 = vmatpush3.bf16.msra.mxu0 %v1717_v48 }
 0x762   : > { %2460 = vmatprep.subr.bf16.mxu0 %v1718_v1 }
 0x763   : > { %v1749_v20 = vpop.permute.xlu0 %1748 }
 0x765   : > { %2461 = vmatpush3.bf16.msra.mxu0 %v1718_v1 }
 0x766   : > { %2462 = vmatprep.subr.bf16.mxu0 %v1719_v46 }
 0x767   : > { %v1759_v38 = vpop.permute.xlu0 %1758 }
 0x769   : > { %2463 = vmatpush3.bf16.msra.mxu0 %v1719_v46 }
 0x76a   : > { %2464 = vmatprep.subr.bf16.mxu0 %v1720_v0 }
 0x76d   : > { %2465 = vmatpush3.bf16.msra.mxu0 %v1720_v0 }
 0x76e   : > { %2490 = vmatprep.subr.bf16.mxu0 %v2705_v16 }
 0x770   : > { %2467 = vmatmul.mubr.msk.bf16.vlgmr.msra.gmra.mrb[16].mxu0 %vm1244_vm2, %v2570_v36 }
 0x771   : > { %2470 = vmatprep.mubr.msk.bf16.mxu0 %vm1244_vm2, %v2571_v40 }
 0x778   : > { %2471 = vmatmul.mubr.msk.bf16.gmra.mrb[20].mxu0 %vm1244_vm2, %v2572_v47 }
 0x779   : > { %2498 = vmatprep.mubr.msk.bf16.mxu0 %vm2706_vm1, %v2705_v16 }
 0x843   : > { %v2468_v6 = vpop.f32.mrb[16].mxu0 }
 0x844   : > { %v3222_v7 = vadd.f32 %v2468_v6, %v1734_v4  ;;  %v1827_v8 = vpop.f32.mrb[17].mxu0 }
 0x845   : > { %v3224_v10 = vadd.f32 %v1827_v8, %v1724_v2  ;;  %v2469_v11 = vpop.f32.mrb[18].mxu0 }
 0x846   : > { %v1868_v12 = vmul.f32 0.044715, %v3222_v7  ;;  %v3227_v13 = vadd.f32 %v2469_v11, %v1739_v5  ;;  %v1830_v19 = vpop.f32.mrb[19].mxu0 }
 0x847   : > { %v1866_v21 = vmul.f32 0.044715, %v3224_v10  ;;  %v3230_v22 = vadd.f32 %v1830_v19, %v1729_v3  ;;  %v1860_v19 = vmul.f32 0.5, %v3222_v7 }
 0x848   : > { %v1876_v23 = vmul.f32 %v1868_v12, %v3222_v7  ;;  %v1869_v24 = vmul.f32 0.044715, %v3227_v13 }
 0x849   : > { %v1874_v25 = vmul.f32 %v1866_v21, %v3224_v10  ;;  %v1867_v26 = vmul.f32 0.044715, %v3230_v22 }
 0x84a   : > { %v1884_v27 = vmul.f32 %v1876_v23, %v3222_v7  ;;  %v1877_v28 = vmul.f32 %v1869_v24, %v3227_v13  ;;  %v1858_v23 = vmul.f32 0.5, %v3224_v10  ;;  %v1859_v24 = vmul.f32 0.5, %v3230_v22 }
 0x84b   : > { %v1882_v30 = vmul.f32 %v1874_v25, %v3224_v10  ;;  %v1875_v31 = vmul.f32 %v1867_v26, %v3230_v22  ;;  %v2472_v32 = vpop.f32.mrb[20].mxu0 }
 0x84c   : > { %v1885_v33 = vmul.f32 %v1877_v28, %v3227_v13  ;;  %v3241_v34 = vadd.f32 %v2472_v32, %v1754_v29  ;;  %v1843_v35 = vpop.f32.mrb[21].mxu0  ;;  %v1892_v37 = vadd.f32 %v1884_v27, %v3222_v7 }
 0x84d   : > { %v1883_v39 = vmul.f32 %v1875_v31, %v3230_v22  ;;  %v3245_v41 = vadd.f32 %v1843_v35, %v1744_v9  ;;  %v2473_v14 = vpop.f32.mrb[22].mxu0  ;;  %v1890_v49 = vadd.f32 %v1882_v30, %v3224_v10 }
 0x84e   : > { %v1872_v50 = vmul.f32 0.044715, %v3241_v34  ;;  %v1855_v51 = vadd.f32 %v2473_v14, %v1759_v38  ;;  %v1846_v53 = vpop.f32.mrb[23].mxu0  ;;  %v1893_v54 = vadd.f32 %v1885_v33, %v3227_v13  ;;  %v1900_v55 = vmul.f32 0.7978846, %v1892_v37 }
 0x84f   : > { %v1870_v56 = vmul.f32 0.044715, %v3245_v41  ;;  %v1847_v57 = vadd.f32 %v1846_v53, %v1749_v20  ;;  %v1891_v58 = vadd.f32 %v1883_v39, %v3230_v22  ;;  %v1898_v61 = vmul.f32 0.7978846, %v1890_v49 }
 0x850   : > { %v1880_v62 = vmul.f32 %v1872_v50, %v3241_v34  ;;  %v1873_v63 = vmul.f32 0.044715, %v1855_v51  ;;  %v1901_v17 = vmul.f32 0.7978846, %v1893_v54  ;;  %2593 = vtanh.f32 %v1900_v55 }
 0x851   : > { %v1878_v42 = vmul.f32 %v1870_v56, %v3245_v41  ;;  %v1871_v15 = vmul.f32 0.044715, %v1847_v57  ;;  %v1899_v18 = vmul.f32 0.7978846, %v1891_v58  ;;  %2595 = vtanh.f32 %v1898_v61  ;;  %v1942_v61 = vpop.permute.xlu0 %1941 }
 0x852   : > { %v1888_v43 = vmul.f32 %v1880_v62, %v3241_v34  ;;  %v1881_v44 = vmul.f32 %v1873_v63, %v1855_v51  ;;  %2597 = vtanh.f32 %v1901_v17  ;;  %v1861_v20 = vmul.f32 0.5, %v3227_v13 }
 0x853   : > { %v1886_v45 = vmul.f32 %v1878_v42, %v3245_v41  ;;  %v1879_v46 = vmul.f32 %v1871_v15, %v1847_v57  ;;  %2599 = vtanh.f32 %v1899_v18  ;;  %v1864_v13 = vmul.f32 0.5, %v3241_v34 }
 0x854   : > { %v1889_v0 = vmul.f32 %v1881_v44, %v1855_v51  ;;  %v1896_v48 = vadd.f32 %v1888_v43, %v3241_v34  ;;  %v1865_v10 = vmul.f32 0.5, %v1855_v51  ;;  %v1862_v22 = vmul.f32 0.5, %v3245_v41  ;;  %v2574_v34 = vld [vmem:[%s3382_s20 + $0x8] sm:$0xff]  }
 0x855   : > { %v1887_v1 = vmul.f32 %v1879_v46, %v1847_v57  ;;  %v1894_v36 = vadd.f32 %v1886_v45, %v3245_v41  ;;  %v1863_v14 = vmul.f32 0.5, %v1847_v57  ;;  %v2575_v41 = vld [vmem:[%s3382_s20 + $0x10] sm:$0xff]   ;;  %v1952_v63 = vpop.permute.xlu0 %1951 }
 0x856   : > { %v1897_v40 = vadd.f32 %v1889_v0, %v1855_v51  ;;  %v1904_v47 = vmul.f32 0.7978846, %v1896_v48  ;;  %v2576_v51 = vld [vmem:[%s3382_s20 + $0x18] sm:$0xff]  }
 0x857   : > { %v1895_v60 = vadd.f32 %v1887_v1, %v1847_v57  ;;  %v1902_v2 = vmul.f32 0.7978846, %v1894_v36  ;;  %v1937_v57 = vpop.permute.xlu1 %1936 }
 0x858   : > { %v1905_v3 = vmul.f32 0.7978846, %v1897_v40  ;;  %2601 = vtanh.f32 %v1904_v47 }
 0x859   : > { %v1903_v4 = vmul.f32 0.7978846, %v1895_v60  ;;  %2603 = vtanh.f32 %v1902_v2  ;;  %v1962_v46 = vpop.permute.xlu0 %1961 }
 0x85a   : > { %v2594_v5 = vpop.eup %2593  ;;  %2605 = vtanh.f32 %v1905_v3 }
 0x85b   : > { %v2596_v6 = vpop.eup %2595  ;;  %v1916_v8 = vadd.f32 1.0, %v2594_v5  ;;  %2607 = vtanh.f32 %v1903_v4  ;;  %v1947_v62 = vpop.permute.xlu1 %1946 }
 0x85c   : > { %v2598_v9 = vpop.eup %2597  ;;  %v1914_v11 = vadd.f32 1.0, %v2596_v6 }
 0x85d   : > { %v2600_v12 = vpop.eup %2599  ;;  %v1917_v21 = vadd.f32 1.0, %v2598_v9  ;;  %v1924_v26 = vmul.f32 %v1916_v8, %v1860_v19  ;;  %v1972_v2 = vpop.permute.xlu0 %1971  ;;  %v879_v19 = vld [vmem:[%s3385_s23] sm:$0xf] }
 0x85e   : > { %v1915_v25 = vadd.f32 1.0, %v2600_v12  ;;  %v1922_v28 = vmul.f32 %v1914_v11, %v1858_v23 }
 0x85f   : > { %v1925_v27 = vmul.f32 %v1917_v21, %v1861_v20  ;;  %v1957_v18 = vpop.permute.xlu1 %1956 }
 0x860   : > { %v1923_v29 = vmul.f32 %v1915_v25, %v1859_v24 }
 0x861   : > { %v1931_v30 = vpack.c.bf16 %v1925_v27, %v1924_v26 }
 0x862   : > { %v2602_v31 = vpop.eup %2601  ;;  %v1930_v32 = vpack.c.bf16 %v1923_v29, %v1922_v28 }
 0x863   : > { %v2604_v33 = vpop.eup %2603  ;;  %v1920_v35 = vadd.f32 1.0, %v2602_v31  ;;  %v1967_v47 = vpop.permute.xlu1 %1966 }
 0x864   : > { %v2606_v37 = vpop.eup %2605  ;;  %2474 = vmatprep.subr.bf16.mxu1 %v1930_v32  ;;  %v1918_v7 = vadd.f32 1.0, %v2604_v33 }
 0x865   : > { %v2608_v38 = vpop.eup %2607  ;;  %2475 = vmatpush3.bf16.msra.mxu1 %v1930_v32  ;;  %v1921_v39 = vadd.f32 1.0, %v2606_v37  ;;  %v1928_v50 = vmul.f32 %v1920_v35, %v1864_v13 }
 0x866   : > { %2476 = vmatprep.subr.bf16.mxu1 %v1931_v30  ;;  %v1919_v49 = vadd.f32 1.0, %v2608_v38  ;;  %v1926_v54 = vmul.f32 %v1918_v7, %v1862_v22 }
 0x867   : > { %v1929_v53 = vmul.f32 %v1921_v39, %v1865_v10 }
 0x868   : > { %v1927_v55 = vmul.f32 %v1919_v49, %v1863_v14 }
 0x869   : > { %2477 = vmatpush3.bf16.msra.mxu1 %v1931_v30  ;;  %v1933_v56 = vpack.c.bf16 %v1929_v53, %v1928_v50 }
 0x86a   : > { %v1932_v58 = vpack.c.bf16 %v1927_v55, %v1926_v54 }
 0x86c   : > { %2478 = vmatprep.subr.bf16.mxu1 %v1932_v58 }
 0x86d   : > { %2479 = vmatpush3.bf16.msra.mxu1 %v1932_v58 }
 0x86e   : > { %2480 = vmatprep.subr.bf16.mxu1 %v1933_v56 }
 0x871   : > { %2481 = vmatpush3.bf16.msra.mxu1 %v1933_v56 }
 0x874   : > { %2483 = vmatmul.mubr.msk.bf16.vlgmr.msra.gmra.mrb[24].mxu1 %vm1244_vm2, %v2574_v34 }
 0x875   : > { %2486 = vmatprep.mubr.msk.bf16.mxu1 %vm1244_vm2, %v2575_v41 }
 0x87c   : > { %2487 = vmatmul.mubr.msk.bf16.gmra.mrb[28].mxu1 %vm1244_vm2, %v2576_v51 }
 0x947   : > { %v2484_v17 = vpop.f32.mrb[24].mxu1 }
 0x948   : > { %v2040_v42 = vpop.f32.mrb[25].mxu1  ;;  %v2049_v43 = vadd.f32 %v2484_v17, %v1947_v62 }
 0x949   : > { %v2485_v15 = vpop.f32.mrb[26].mxu1  ;;  %v2041_v0 = vadd.f32 %v2040_v42, %v1937_v57 }
 0x94a   : > { %v2052_v44 = vadd.f32 %v2485_v15, %v1952_v63  ;;  %v2043_v45 = vpop.f32.mrb[27].mxu1 }
 0x94b   : > { %v2044_v48 = vadd.f32 %v2043_v45, %v1942_v61 }
 0x94c   : > { %v2072_v1 = vpack.c.bf16 %v2052_v44, %v2049_v43 }
 0x94d   : > { %v2071_v36 = vpack.c.bf16 %v2044_v48, %v2041_v0 }
 0x94f   : > { %v2488_v40 = vpop.f32.mrb[28].mxu1  ;;  %2491 = vmatpush3.bf16.msra.mxu0 %v2071_v36 }
 0x950   : > { %v2056_v60 = vpop.f32.mrb[29].mxu1  ;;  %2492 = vmatprep.subr.bf16.mxu0 %v2705_v16  ;;  %v2065_v4 = vadd.f32 %v2488_v40, %v1967_v47 }
 0x951   : > { %v2489_v3 = vpop.f32.mrb[30].mxu1  ;;  %v2057_v8 = vadd.f32 %v2056_v60, %v1957_v18 }
 0x952   : > { %v2068_v5 = vadd.f32 %v2489_v3, %v1972_v2  ;;  %v2059_v6 = vpop.f32.mrb[31].mxu1 }
 0x953   : > { %v2060_v9 = vadd.f32 %v2059_v6, %v1962_v46  ;;  %2493 = vmatpush3.bf16.msra.mxu0 %v2072_v1 }
 0x954   : > { %v2074_v11 = vpack.c.bf16 %v2068_v5, %v2065_v4  ;;  %2494 = vmatprep.subr.bf16.mxu0 %v2705_v16 }
 0x955   : > { %v2073_v12 = vpack.c.bf16 %v2060_v9, %v2057_v8 }
 0x957   : > { %2495 = vmatpush3.bf16.msra.mxu0 %v2073_v12 }
 0x958   : > { %2496 = vmatprep.subr.bf16.mxu0 %v2705_v16 }
 0x95b   : > { %2497 = vmatpush3.bf16.msra.mxu0 %v2074_v11 }
 0x95e   : > { %2499 = vmatmul.mubr.msk.bf16.vlgmr.msra.gmra.mrb[24].mxu0 %vm1244_vm2, %v879_v19 }
 0x95f   : > { %2622 = shalt.err (!%p2619_p3)
}
 0x960   : > { %s2623_s10 = scalar_lea.hbm %s3287_s1, 128  ;;  %s2627_s13 = scalar_lea.hbm %s3387_s25, 256 }
 0x961   : > { %p2624_p4 = scmp.ne.s32.totalorder %s3287_s1, %s2623_s10  ;;  %p2628_p9 = scmp.lt.u32.totalorder %s3287_s1, %s3387_s25 }
 0x962   : > { %p2629_p10 = scmp.lt.u32.totalorder %s2627_s13, %s2623_s10  ;;  %p2631_p12 = scmp.lt.u32.totalorder %s2623_s10, %s3287_s1 }
 0x963   : > { %p2625_p7 = pnand %p2624_p4, %p2880_p5 }
 0x964   : > { %p2630_p11 = por %p2629_p10, %p2628_p9 }
 0x965   : > { %p2626_p8 = pneg %p2625_p7 }
 0x966   : > { %p2632_p13 = por %p2631_p12, %p2630_p11 }
 0x968   : > { %p2633_p0 = pnand %p2632_p13, %p2626_p8 }
 0x96a   : > { %2636 = shalt.err (!%p2633_p0)
}
 0x96b   : > { %2504 = dma.vmem_to_hbm [thread:$0]  (%p2880_p5), %s2159_s5, 128, %s3287_s1, %s2129_s0   ;;  %v1290_v16 = vadd.f32 %v3151_v59, %v2972_v52 }
 0x96c   : > { %s2142_s12 = sshll.u32 %s3154_s3, 4  ;;  %s2330_s26 = sshll.u32 %s2863_s7, 8  ;;  %s3317_s12 = int_to_ptr.vmem [resolvable:$true] %s2142_s12 }
 0x96d   : > { %s3315_s9 = scalar_lea.hbm %s3386_s24, %s2330_s26  ;;  %s2124_s7 = scalar_lea.sflag [#allocation3], %s3144_s8 }
 0x96e   : > { %s2637_s1 = scalar_lea.vmem %s3317_s12, 256  ;;  %s2709_s5 = smov [#allocation2]  }
 0x96f   : > { %p2638_p1 = scmp.ne.s32.totalorder %s3317_s12, %s2637_s1  ;;  %s2641_s0 = sshll.u32 %s2709_s5, 4  ;;  %s2642_s0 = int_to_ptr.vmem [resolvable:$false] %s2641_s0 }
 0x970   : > { %s2643_s11 = scalar_lea.vmem %s2642_s0, 512  ;;  %p2644_p4 = scmp.lt.s32.totalorder %s3317_s12, %s2642_s0 }
 0x971   : > { %p2639_p2 = pnand %p2638_p1, %p2880_p5  ;;  %p2645_p7 = scmp.lt.s32.totalorder %s2643_s11, %s2637_s1 }
 0x973   : > { %p2640_p3 = pneg %p2639_p2  ;;  %p2646_p8 = por %p2645_p7, %p2644_p4 }
 0x975   : > { %p2647_p9 = pnand %p2646_p8, %p2640_p3 }
 0xa31   : > { %v2112_v20 = vpop.f32.mrb[24].mxu0 }
 0xa32   : > { %v2119_v21 = vadd.f32 %v2112_v20, %v1290_v16  ;;  %v2500_v23 = vpop.f32.mrb[25].mxu0 }
 0xa33   : > { %v2115_v24 = vpop.f32.mrb[26].mxu0 }
 0xa34   : > { %2121 = vst.msk [vmem:[%s3154_s3 + $0x8] sm:$0xff] %vm883_vm0, %v2119_v21  ;;  %v2501_v25 = vpop.f32.mrb[27].mxu0 }
 0xa35   : > { %2650 = shalt.err (!%p2647_p9)
}
 0xa36   : > { %s2651_s3 = scalar_lea.hbm %s3315_s9, 256  ;;  %s2655_s14 = scalar_lea.hbm %s3386_s24, 512 }
 0xa37   : > { %p2652_p10 = scmp.ne.s32.totalorder %s3315_s9, %s2651_s3  ;;  %p2656_p13 = scmp.lt.u32.totalorder %s3315_s9, %s3386_s24 }
 0xa38   : > { %p2657_p0 = scmp.lt.u32.totalorder %s2655_s14, %s2651_s3  ;;  %p2659_p2 = scmp.lt.u32.totalorder %s2651_s3, %s3315_s9 }
 0xa39   : > { %p2653_p11 = pnand %p2652_p10, %p2880_p5 }
 0xa3a   : > { %p2658_p1 = por %p2657_p0, %p2656_p13 }
 0xa3b   : > { %p2654_p12 = pneg %p2653_p11 }
 0xa3c   : > { %p2660_p3 = por %p2659_p2, %p2658_p1 }
 0xa3e   : > { %p2661_p4 = pnand %p2660_p3, %p2654_p12 }
 0xa40   : > { %2664 = shalt.err (!%p2661_p4)
}
 0xa41   : > { %s2710_s10 = smov 128   ;;  %s2711_s1 = smov 8  }
 0xa42   : > { %2503 = dma.vmem_to_hbm [thread:$0]  (%p2880_p5), %s3317_s12, 256, %s3315_s9, %s2124_s7, %s2710_s10, %s2710_s10, %s2711_s1  }
 0xa43 PF: > { %p2514_p7 = scmp.ge.s32.totalorder %s2703_s30, 2  ;;  %s2170_s5 = sand.u32 1, %s2691_s29  }
 0xa44   : > { %s2171_s0 = scalar_lea.sflag [#allocation3], %s2170_s5 }
 0xa45   : > { %p2508_p8 = pnand %p2514_p7, %p2884_p6 }
 0xa47   : > { %2682 = dma.done.wait (!%p2508_p8), %s2171_s0, 256  }
 0xa48   : > { %2684 = vsyncadd (!%p2508_p8), %s2171_s0, 4294967040  ;;  %s2180_s11 = scalar_lea.sflag [#allocation5], %s2170_s5 }
 0xa49   : > { %2686 = dma.done.wait (!%p2508_p8), %s2180_s11, 128  }
 0xa4a   : > { %2688 = vsyncadd (!%p2508_p8), %s2180_s11, 4294967168  ;;  %s3430_s30 = sld [smem:[#allocation9_spill]]  ;;  %s3431_s3 = sld [smem:[#allocation8_spill]] }
 0xa4b   : > { %s3432_s6 = sld [smem:[#allocation10_spill]]  ;;  %s3433_s29 = smov %s2695_s2 }
 0xa50   : > { %p39_p5 = scmp.ge.s32.totalorder %s3430_s30, 4   ;;  %s3434_s2 = smov %s3431_s3 }
 0xa52   :  { %41 = sbr.rel (!%p39_p5) target bundleno = 21 (0x15), region = 171 }
 0xa59   :  { %2185 = vsyncpa [#allocation3], 1 }
 0xa5a   :  { %2187 = vsyncpa [#allocation3 + $0x1], 1 }
 0xa5b   :  { %2188 = vsyncpa [#allocation5], 1 }
 0xa5c   :  { %2190 = vsyncpa [#allocation5 + $0x1], 1 }

</bundles_post_ra>
